<compile_context>
chip_gen: v5e
topology: v5e:2x2
jax: 0.10.0
libtpu: 0.0.40
codegen_flags: <defaults>
</compile_context>

<pallas_src>
import functools

import jax
import jax.numpy as jnp
from jax import lax
from jax.experimental import pallas as pl
from jax.experimental.pallas import tpu as pltpu

JITTER = 1e-6   # tiny diagonal jitter so the no-pivot solve of the PSD RBF Gram is safe


# ----------------------------------------------------------------------------
# Fused kernel: block-diag MLP -> add_noise -> per-view RBF Gram -> GP posterior
# Single invocation (no grid); everything stays in VMEM.
# ----------------------------------------------------------------------------
def _dgp_fused_kernel(x_ref, w1_ref, b1_ref, w2_ref, b2_ref, noise_ref, y_ref,
                      k_ref, mu_ref, var_ref, *,
                      batch, total_pts, n_obs, n_views, rbf_size, jitter):
    B, T, Z, D = batch, total_pts, n_views, rbf_size
    n, m = n_obs, total_pts - n_obs

    # ---- 2-layer MLP for all (batch, view) rows at once (2 MXU matmuls) ----
    x = x_ref[...]                                                        # (B*T, Z*R)
    h = jnp.dot(x, w1_ref[...], preferred_element_type=jnp.float32) + b1_ref[...]
    h = jnp.maximum(h, 0.0)                                               # relu
    f = jnp.dot(h, w2_ref[...], preferred_element_type=jnp.float32) + b2_ref[...]  # (B*T, Z*D)

    # ---- add_noise: x + (x/20) * U(-1,1) (noise precomputed in the wrapper) ----
    f = f + (f * 0.05) * noise_ref[...]

    f3 = f.reshape(B, T, Z * D)                                           # split leading dim only

    # Loop-invariant iota masks (hoisted; TPU wants >=2-D iota).
    eye_t = (lax.broadcasted_iota(jnp.int32, (T, T), 0) ==
             lax.broadcasted_iota(jnp.int32, (T, T), 1))                  # (T, T) bool
    jit_eye = jnp.where(
        lax.broadcasted_iota(jnp.int32, (n, n), 0) ==
        lax.broadcasted_iota(jnp.int32, (n, n), 1),
        jnp.float32(jitter), jnp.float32(0.0))                            # (n, n)
    rows = lax.broadcasted_iota(jnp.int32, (n, 1), 0)                     # (n, 1)

    k_parts, mu_parts, var_parts = [], [], []
    for z in range(Z):                                                    # static unroll (Z=3)
        fz = f3[:, :, z * D:(z + 1) * D]                                  # (B, T, D)
        gram = lax.dot_general(fz, fz, (((2,), (2,)), ((0,), (0,))),
                               preferred_element_type=jnp.float32)        # (B, T, T), batched
        gdiag = jnp.where(eye_t, gram, 0.0)
        sq_col = jnp.sum(gdiag, axis=-1, keepdims=True)                   # (B, T, 1) ||f_i||^2
        sq_row = jnp.sum(gdiag, axis=-2, keepdims=True)                   # (B, 1, T)
        d2 = jnp.maximum(sq_col + sq_row - 2.0 * gram, 0.0)
        kz = jnp.exp(-0.5 * d2)                                           # (B, T, T), symmetric
        k_parts.append(kz.reshape(B, T * T))                              # lane-dense slab

        # ---- fused GP posterior: Gauss-Jordan solve of the jittered observed Gram ----
        cn = kz[:, :n, :n] + jit_eye                                      # (B, n, n)
        kt = kz[:, n:, :n]                                                # (B, m, n)
        kc = kz[:, :n, n:]                                                # (B, n, m) == kt^T
        y_z = y_ref[:, :, z:z + 1]                                        # (B, n, 1)
        aug = jnp.concatenate([cn, y_z, kc], axis=-1)                     # (B, n, n+1+m)
        for k in range(n):                                                # unrolled, no pivoting
            pnorm = aug[:, k:k + 1, :] / aug[:, k:k + 1, k:k + 1]         # (B, 1, n+1+m)
            colk = aug[:, :, k:k + 1]                                     # (B, n, 1)
            is_k = rows == k
            aug = aug - jnp.where(is_k, 0.0, colk) * pnorm
            aug = jnp.where(is_k, pnorm, aug)
        a_vec = aug[:, :, n:n + 1]                                        # (B, n, 1) = cn^{-1} y
        v_mat = aug[:, :, n + 1:]                                         # (B, n, m) = cn^{-1} kc

        mu_z = lax.dot_general(a_vec, kt, (((1,), (2,)), ((0,), (0,))),
                               preferred_element_type=jnp.float32)        # (B, 1, m) = kt cn^{-1} y
        quad = jnp.sum(kc * v_mat, axis=1, keepdims=True)                 # (B, 1, m) = diag(kt cn^{-1} kc)
        cq = jnp.concatenate(
            [kz[:, n + j:n + j + 1, n + j:n + j + 1] for j in range(m)],
            axis=-1)                                                      # (B, 1, m)
        mu_parts.append(mu_z)
        var_parts.append(cq - quad)

    k_ref[...] = jnp.concatenate(k_parts, axis=-1)                        # (B, Z*T*T)
    mu_ref[...] = jnp.concatenate(mu_parts, axis=-1).reshape(B, Z * m)    # (B, Z*m)
    var_ref[...] = jnp.concatenate(var_parts, axis=-1).reshape(B, Z * m)  # (B, Z*m)


def fused_dgp_kernels(x2d, w1_bd, b1, w2_bd, b2, noise, point_y, *,
                      batch, total_pts, n_obs, n_views, rbf_size, jitter=JITTER):
    B, T, Z, D = batch, total_pts, n_views, rbf_size
    m = T - n_obs
    kern = functools.partial(
        _dgp_fused_kernel, batch=B, total_pts=T, n_obs=n_obs,
        n_views=Z, rbf_size=D, jitter=jitter)

    flops = (2 * (B * T) * (x2d.shape[-1] * w1_bd.shape[-1]
                            + w1_bd.shape[-1] * w2_bd.shape[-1])
             + 2 * B * Z * T * T * D + 4 * B * Z * n_obs ** 3)
    nbytes = 4 * (x2d.size + w1_bd.size + b1.size + w2_bd.size + b2.size
                  + noise.size + point_y.size + B * Z * T * T + 2 * B * Z * m)
    vspec = pl.BlockSpec(memory_space=pltpu.MemorySpace.VMEM)

    return pl.pallas_call(
        kern,
        out_shape=(jax.ShapeDtypeStruct((B, Z * T * T), jnp.float32),
                   jax.ShapeDtypeStruct((B, Z * m), jnp.float32),
                   jax.ShapeDtypeStruct((B, Z * m), jnp.float32)),
        in_specs=[vspec] * 7,
        out_specs=(vspec, vspec, vspec),
        cost_estimate=pl.CostEstimate(flops=flops,
                                      transcendentals=B * Z * T * T,
                                      bytes_accessed=nbytes),
    )(x2d, w1_bd, b1, w2_bd, b2, noise, point_y)


# ----------------------------------------------------------------------------
# DGP forward (training branch: test_data=False)
# ----------------------------------------------------------------------------
@jax.jit
def dgp_forward(params, point_y, point_x, target_x, key):
    B, n_obs, Z = point_y.shape
    R = point_x.shape[-1]
    D = params["w2_bd"].shape[-1] // Z

    lam = jnp.concatenate([point_x, target_x], axis=1)           # (B, T, Z, R)
    T = lam.shape[1]
    m = T - n_obs
    x2d = lam.reshape(B * T, Z * R)                              # free row-major reshape

    k_noise, k_eps = jax.random.split(key)
    noise = jax.random.uniform(k_noise, (B * T, Z * D), jnp.float32,
                               minval=-1.0, maxval=1.0)          # add_noise U(-1,1)

    k_flat, mu_flat, var_flat = fused_dgp_kernels(
        x2d, params["w1_bd"], params["b1"], params["w2_bd"], params["b2"],
        noise, point_y,
        batch=B, total_pts=T, n_obs=n_obs, n_views=Z, rbf_size=D)

    kernels = k_flat.reshape(B, Z, T, T)
    mu = jnp.transpose(mu_flat.reshape(B, Z, m), (0, 2, 1))      # (B, m, Z)
    var = jnp.transpose(var_flat.reshape(B, Z, m), (0, 2, 1))

    # TODO(synk): the reference uses torch.solve (LU, no jitter); we clamp var at 0 before
    # sqrt so roundoff never produces NaN — semantics otherwise identical.
    sigma = jnp.sqrt(jnp.maximum(var, 0.0))
    sigma = jnp.where(sigma < 1e-5, jnp.full_like(sigma, 1e-5), sigma)

    eps = jax.random.normal(k_eps, mu.shape, jnp.float32)
    target_y = mu + sigma * eps                                  # Normal(mu, sigma).rsample()

    diag = jnp.diagonal(kernels, axis1=-2, axis2=-1)             # (B, Z, T)

    # TODO(synk): 'q_view' (a torch Normal object) has no array equivalent; mu/logvar returned.
    return {
        "view_latent": target_y,
        "view_mu": mu,
        "view_logvar": 2.0 * jnp.log(sigma),
        "diag": diag,
        "kernel": kernels,
    }


# ----------------------------------------------------------------------------
# Parameters: per-view MLPs packed once into one block-diagonal MLP.
# ----------------------------------------------------------------------------
def init_params(key, z_dim, rule_dim, hidden, rbf_size):
    k1, k2, k3, k4 = jax.random.split(key, 4)
    return {
        "w1": jax.random.normal(k1, (z_dim, rule_dim, hidden), jnp.float32) * 0.5,
        "b1": jax.random.normal(k2, (z_dim, hidden), jnp.float32) * 0.1,
        "w2": jax.random.normal(k3, (z_dim, hidden, rbf_size), jnp.float32) * 0.5,
        "b2": jax.random.normal(k4, (z_dim, rbf_size), jnp.float32) * 0.1,
    }


def prepare_params(raw):
    # One-time weight prep: block-diagonal packing -> one pair of MXU matmuls in the kernel.
    w1, b1, w2, b2 = raw["w1"], raw["b1"], raw["w2"], raw["b2"]
    Z, R, H = w1.shape
    D = w2.shape[-1]
    eye = jnp.eye(Z, dtype=w1.dtype)
    w1_bd = jnp.einsum("zab,zy->zayb", w1, eye).reshape(Z * R, Z * H)
    w2_bd = jnp.einsum("zab,zy->zayb", w2, eye).reshape(Z * H, Z * D)
    return {"w1_bd": w1_bd, "b1": b1.reshape(1, Z * H),
            "w2_bd": w2_bd, "b2": b2.reshape(1, Z * D)}


# ----------------------------------------------------------------------------
# Pure-JAX reference (mirrors the PyTorch module) for a tolerance check.
# ----------------------------------------------------------------------------
def reference_parts(raw, lam, noise, point_y, jitter):
    B, T, Z, R = lam.shape
    D = raw["w2"].shape[-1]
    n = point_y.shape[1]
    feats = []
    for z in range(Z):
        xz = lam[:, :, z, :]
        h = jnp.maximum(xz @ raw["w1"][z] + raw["b1"][z], 0.0)
        feats.append((h @ raw["w2"][z] + raw["b2"][z])[:, None])          # (B,1,T,D)
    f = jnp.concatenate(feats, axis=1)                                    # (B,Z,T,D)
    nz = jnp.transpose(noise.reshape(B, T, Z, D), (0, 2, 1, 3))
    f = f + (f / 20.0) * nz
    diff = f[:, :, :, None, :] - f[:, :, None, :, :]
    kern = jnp.exp(-0.5 * jnp.sum(diff ** 2, axis=-1))                    # (B,Z,T,T)
    cn = kern[:, :, :n, :n] + jitter * jnp.eye(n, dtype=kern.dtype)
    kt = kern[:, :, n:, :n]
    kc = kern[:, :, :n, n:]
    cq = jnp.diagonal(kern[:, :, n:, n:], axis1=-2, axis2=-1)
    y = jnp.transpose(point_y, (0, 2, 1))[..., None]
    a = jnp.linalg.solve(cn, y)
    v = jnp.linalg.solve(cn, kc)
    mu = jnp.matmul(kt, a)[..., 0]
    var = cq - jnp.einsum("bzmn,bznm->bzm", kt, v)
    return kern, jnp.transpose(mu, (0, 2, 1)), jnp.transpose(var, (0, 2, 1))


if __name__ == "__main__":
    key = jax.random.PRNGKey(0)
    B, n_obs, n_tgt = 2, 5, 3
    Z, R, H, D = 3, 4, 32, 16      # latent_view_size, rule_dim, gp_feat_list[0], rbf_size

    kp, ky, kx, ktx, kf = jax.random.split(key, 5)
    raw = init_params(kp, Z, R, H, D)
    params = prepare_params(raw)
    point_y = jax.random.normal(ky, (B, n_obs, Z), jnp.float32)
    point_x = jax.random.normal(kx, (B, n_obs, Z, R), jnp.float32)
    target_x = jax.random.normal(ktx, (B, n_tgt, Z, R), jnp.float32)

    out = jax.block_until_ready(dgp_forward(params, point_y, point_x, target_x, kf))

    T = n_obs + n_tgt
    assert out["kernel"].shape == (B, Z, T, T)
    assert out["view_latent"].shape == (B, n_tgt, Z)
    assert out["view_mu"].shape == (B, n_tgt, Z)
    assert out["view_logvar"].shape == (B, n_tgt, Z)
    assert out["diag"].shape == (B, Z, T)
    for v in out.values():
        assert bool(jnp.all(jnp.isfinite(v)))

    # Cross-check against the pure-JAX reference with the identical noise draw
    # (mirrors the key split inside dgp_forward).
    k_noise_chk, _ = jax.random.split(kf)
    noise_chk = jax.random.uniform(k_noise_chk, (B * T, Z * D), jnp.float32,
                                   minval=-1.0, maxval=1.0)
    lam = jnp.concatenate([point_x, target_x], axis=1)
    ref_kern, ref_mu, ref_var = reference_parts(raw, lam, noise_chk, point_y, JITTER)
    ref_sigma = jnp.sqrt(jnp.maximum(ref_var, 0.0))
    ref_sigma = jnp.where(ref_sigma < 1e-5, jnp.full_like(ref_sigma, 1e-5), ref_sigma)
    out_sig2 = jnp.exp(out["view_logvar"])

    assert bool(jnp.allclose(out["kernel"], ref_kern, rtol=5e-2, atol=5e-3))
    assert bool(jnp.allclose(out["view_mu"], ref_mu, rtol=5e-2, atol=5e-3))
    assert bool(jnp.allclose(out_sig2, ref_sigma ** 2, rtol=5e-2, atol=5e-3))

    print("KERNEL_OK")
</pallas_src>

<mosaic_0001>
module attributes {stable_mosaic.version = 11 : i64} {
  func.func @_dgp_fused_kernel(%arg0: memref<16x12xf32, #tpu.memory_space<vmem>>, %arg1: memref<12x96xf32, #tpu.memory_space<vmem>>, %arg2: memref<1x96xf32, #tpu.memory_space<vmem>>, %arg3: memref<96x48xf32, #tpu.memory_space<vmem>>, %arg4: memref<1x48xf32, #tpu.memory_space<vmem>>, %arg5: memref<16x48xf32, #tpu.memory_space<vmem>>, %arg6: memref<2x5x3xf32, #tpu.memory_space<vmem>>, %arg7: memref<2x192xf32, #tpu.memory_space<vmem>>, %arg8: memref<2x9xf32, #tpu.memory_space<vmem>>, %arg9: memref<2x9xf32, #tpu.memory_space<vmem>>) attributes {dimension_semantics = [], scalar_prefetch = 0 : i64, scratch_operands = 0 : i64, tpu.core_type = #tpu.core_type<tc>} {
    %c0 = arith.constant 0 : index
    %c0_0 = arith.constant 0 : index
    %0 = vector.load %arg0[%c0, %c0_0] : memref<16x12xf32, #tpu.memory_space<vmem>>, vector<16x12xf32>
    %c0_1 = arith.constant 0 : index
    %c0_2 = arith.constant 0 : index
    %1 = vector.load %arg1[%c0_1, %c0_2] : memref<12x96xf32, #tpu.memory_space<vmem>>, vector<12x96xf32>
    %cst = arith.constant dense<0.000000e+00> : vector<16x96xf32>
    %2 = tpu.matmul %0, %1, %cst {dimension_numbers = #tpu.dot_dimension_numbers<[1], [0], [0], [1], [0, 0, 1, 1], [], []>} : vector<16x12xf32>, vector<12x96xf32>, vector<16x96xf32> -> vector<16x96xf32>
    %c0_3 = arith.constant 0 : index
    %c0_4 = arith.constant 0 : index
    %3 = vector.load %arg2[%c0_3, %c0_4] : memref<1x96xf32, #tpu.memory_space<vmem>>, vector<1x96xf32>
    %4 = vector.broadcast %3 : vector<1x96xf32> to vector<16x96xf32>
    %5 = arith.addf %2, %4 : vector<16x96xf32>
    %cst_5 = arith.constant 0.000000e+00 : f32
    %6 = vector.broadcast %cst_5 : f32 to vector<16x96xf32>
    %7 = arith.maximumf %5, %6 : vector<16x96xf32>
    %c0_6 = arith.constant 0 : index
    %c0_7 = arith.constant 0 : index
    %8 = vector.load %arg3[%c0_6, %c0_7] : memref<96x48xf32, #tpu.memory_space<vmem>>, vector<96x48xf32>
    %cst_8 = arith.constant dense<0.000000e+00> : vector<16x48xf32>
    %9 = tpu.matmul %7, %8, %cst_8 {dimension_numbers = #tpu.dot_dimension_numbers<[1], [0], [0], [1], [0, 0, 1, 1], [], []>} : vector<16x96xf32>, vector<96x48xf32>, vector<16x48xf32> -> vector<16x48xf32>
    %c0_9 = arith.constant 0 : index
    %c0_10 = arith.constant 0 : index
    %10 = vector.load %arg4[%c0_9, %c0_10] : memref<1x48xf32, #tpu.memory_space<vmem>>, vector<1x48xf32>
    %11 = vector.broadcast %10 : vector<1x48xf32> to vector<16x48xf32>
    %12 = arith.addf %9, %11 : vector<16x48xf32>
    %cst_11 = arith.constant 5.000000e-02 : f32
    %13 = vector.broadcast %cst_11 : f32 to vector<16x48xf32>
    %14 = arith.mulf %12, %13 : vector<16x48xf32>
    %c0_12 = arith.constant 0 : index
    %c0_13 = arith.constant 0 : index
    %15 = vector.load %arg5[%c0_12, %c0_13] : memref<16x48xf32, #tpu.memory_space<vmem>>, vector<16x48xf32>
    %16 = arith.mulf %14, %15 : vector<16x48xf32>
    %17 = arith.addf %12, %16 : vector<16x48xf32>
    %18 = vector.shape_cast %17 : vector<16x48xf32> to vector<2x8x48xf32>
    %19 = tpu.iota {dimensions = array<i32: 0>} : vector<8x8xi32>
    %20 = tpu.iota {dimensions = array<i32: 1>} : vector<8x8xi32>
    %21 = arith.cmpi eq, %19, %20 : vector<8x8xi32>
    %22 = tpu.iota {dimensions = array<i32: 0>} : vector<5x5xi32>
    %23 = tpu.iota {dimensions = array<i32: 1>} : vector<5x5xi32>
    %24 = arith.cmpi eq, %22, %23 : vector<5x5xi32>
    %cst_14 = arith.constant 9.99999997E-7 : f32
    %cst_15 = arith.constant 0.000000e+00 : f32
    %25 = vector.broadcast %cst_14 : f32 to vector<5x5xf32>
    %26 = vector.broadcast %cst_15 : f32 to vector<5x5xf32>
    %27 = arith.select %24, %25, %26 : vector<5x5xi1>, vector<5x5xf32>
    %28 = tpu.iota {dimensions = array<i32: 0>} : vector<5x1xi32>
    %29 = vector.extract_strided_slice %18 {offsets = [0, 0, 0], sizes = [2, 8, 16], strides = [1, 1, 1]} : vector<2x8x48xf32> to vector<2x8x16xf32>
    %cst_16 = arith.constant dense<0.000000e+00> : vector<2x8x8xf32>
    %30 = tpu.matmul %29, %29, %cst_16 {dimension_numbers = #tpu.dot_dimension_numbers<[2], [2], [1], [1], [0, 0, 0, 1, 1, 1], [0], [0]>} : vector<2x8x16xf32>, vector<2x8x16xf32>, vector<2x8x8xf32> -> vector<2x8x8xf32>
    %cst_17 = arith.constant 0.000000e+00 : f32
    %31 = vector.shape_cast %21 : vector<8x8xi1> to vector<1x8x8xi1>
    %32 = vector.broadcast %31 : vector<1x8x8xi1> to vector<2x8x8xi1>
    %33 = vector.broadcast %cst_17 : f32 to vector<2x8x8xf32>
    %34 = arith.select %32, %30, %33 : vector<2x8x8xi1>, vector<2x8x8xf32>
    %cst_18 = arith.constant dense<0.000000e+00> : vector<2x8xf32>
    %35 = vector.multi_reduction <add>, %34, %cst_18 [2] : vector<2x8x8xf32> to vector<2x8xf32>
    %36 = vector.shape_cast %35 : vector<2x8xf32> to vector<2x8x1xf32>
    %cst_19 = arith.constant dense<0.000000e+00> : vector<2x8xf32>
    %37 = vector.multi_reduction <add>, %34, %cst_19 [1] : vector<2x8x8xf32> to vector<2x8xf32>
    %38 = vector.shape_cast %37 : vector<2x8xf32> to vector<2x1x8xf32>
    %39 = vector.broadcast %36 : vector<2x8x1xf32> to vector<2x8x8xf32>
    %40 = vector.broadcast %38 : vector<2x1x8xf32> to vector<2x8x8xf32>
    %41 = arith.addf %39, %40 : vector<2x8x8xf32>
    %cst_20 = arith.constant 2.000000e+00 : f32
    %42 = vector.broadcast %cst_20 : f32 to vector<2x8x8xf32>
    %43 = arith.mulf %42, %30 : vector<2x8x8xf32>
    %44 = arith.subf %41, %43 : vector<2x8x8xf32>
    %cst_21 = arith.constant 0.000000e+00 : f32
    %45 = vector.broadcast %cst_21 : f32 to vector<2x8x8xf32>
    %46 = arith.maximumf %44, %45 : vector<2x8x8xf32>
    %cst_22 = arith.constant -5.000000e-01 : f32
    %47 = vector.broadcast %cst_22 : f32 to vector<2x8x8xf32>
    %48 = arith.mulf %47, %46 : vector<2x8x8xf32>
    %49 = math.exp %48 : vector<2x8x8xf32>
    %50 = vector.shape_cast %49 : vector<2x8x8xf32> to vector<2x64xf32>
    %51 = vector.extract_strided_slice %49 {offsets = [0, 0, 0], sizes = [2, 5, 5], strides = [1, 1, 1]} : vector<2x8x8xf32> to vector<2x5x5xf32>
    %52 = vector.shape_cast %27 : vector<5x5xf32> to vector<1x5x5xf32>
    %53 = vector.broadcast %52 : vector<1x5x5xf32> to vector<2x5x5xf32>
    %54 = arith.addf %51, %53 : vector<2x5x5xf32>
    %55 = vector.extract_strided_slice %49 {offsets = [0, 5, 0], sizes = [2, 3, 5], strides = [1, 1, 1]} : vector<2x8x8xf32> to vector<2x3x5xf32>
    %56 = vector.extract_strided_slice %49 {offsets = [0, 0, 5], sizes = [2, 5, 3], strides = [1, 1, 1]} : vector<2x8x8xf32> to vector<2x5x3xf32>
    %c0_23 = arith.constant 0 : index
    %c0_24 = arith.constant 0 : index
    %c0_25 = arith.constant 0 : index
    %57 = vector.load %arg6[%c0_23, %c0_24, %c0_25] : memref<2x5x3xf32, #tpu.memory_space<vmem>>, vector<2x5x1xf32>
    %58 = tpu.concatenate %54, %57, %56 in 2 : vector<2x5x5xf32>, vector<2x5x1xf32>, vector<2x5x3xf32> -> vector<2x5x9xf32>
    %59 = vector.extract_strided_slice %58 {offsets = [0, 0, 0], sizes = [2, 1, 9], strides = [1, 1, 1]} : vector<2x5x9xf32> to vector<2x1x9xf32>
    %60 = vector.extract_strided_slice %58 {offsets = [0, 0, 0], sizes = [2, 1, 1], strides = [1, 1, 1]} : vector<2x5x9xf32> to vector<2x1x1xf32>
    %61 = vector.broadcast %60 : vector<2x1x1xf32> to vector<2x1x9xf32>
    %62 = arith.divf %59, %61 : vector<2x1x9xf32>
    %63 = vector.extract_strided_slice %58 {offsets = [0, 0, 0], sizes = [2, 5, 1], strides = [1, 1, 1]} : vector<2x5x9xf32> to vector<2x5x1xf32>
    %c0_i32 = arith.constant 0 : i32
    %64 = vector.broadcast %c0_i32 : i32 to vector<5x1xi32>
    %65 = arith.cmpi eq, %28, %64 : vector<5x1xi32>
    %cst_26 = arith.constant 0.000000e+00 : f32
    %66 = vector.shape_cast %65 : vector<5x1xi1> to vector<1x5x1xi1>
    %67 = vector.broadcast %66 : vector<1x5x1xi1> to vector<2x5x1xi1>
    %68 = vector.broadcast %cst_26 : f32 to vector<2x5x1xf32>
    %69 = arith.select %67, %68, %63 : vector<2x5x1xi1>, vector<2x5x1xf32>
    %70 = vector.broadcast %69 : vector<2x5x1xf32> to vector<2x5x9xf32>
    %71 = vector.broadcast %62 : vector<2x1x9xf32> to vector<2x5x9xf32>
    %72 = arith.mulf %70, %71 : vector<2x5x9xf32>
    %73 = arith.subf %58, %72 : vector<2x5x9xf32>
    %74 = vector.shape_cast %65 : vector<5x1xi1> to vector<1x5x1xi1>
    %75 = vector.broadcast %74 : vector<1x5x1xi1> to vector<2x5x9xi1>
    %76 = vector.shape_cast %62 : vector<2x1x9xf32> to vector<2x1x9xf32>
    %77 = vector.broadcast %76 : vector<2x1x9xf32> to vector<2x5x9xf32>
    %78 = arith.select %75, %77, %73 : vector<2x5x9xi1>, vector<2x5x9xf32>
    %79 = vector.extract_strided_slice %78 {offsets = [0, 1, 0], sizes = [2, 1, 9], strides = [1, 1, 1]} : vector<2x5x9xf32> to vector<2x1x9xf32>
    %80 = vector.extract_strided_slice %78 {offsets = [0, 1, 1], sizes = [2, 1, 1], strides = [1, 1, 1]} : vector<2x5x9xf32> to vector<2x1x1xf32>
    %81 = vector.broadcast %80 : vector<2x1x1xf32> to vector<2x1x9xf32>
    %82 = arith.divf %79, %81 : vector<2x1x9xf32>
    %83 = vector.extract_strided_slice %78 {offsets = [0, 0, 1], sizes = [2, 5, 1], strides = [1, 1, 1]} : vector<2x5x9xf32> to vector<2x5x1xf32>
    %c1_i32 = arith.constant 1 : i32
    %84 = vector.broadcast %c1_i32 : i32 to vector<5x1xi32>
    %85 = arith.cmpi eq, %28, %84 : vector<5x1xi32>
    %cst_27 = arith.constant 0.000000e+00 : f32
    %86 = vector.shape_cast %85 : vector<5x1xi1> to vector<1x5x1xi1>
    %87 = vector.broadcast %86 : vector<1x5x1xi1> to vector<2x5x1xi1>
    %88 = vector.broadcast %cst_27 : f32 to vector<2x5x1xf32>
    %89 = arith.select %87, %88, %83 : vector<2x5x1xi1>, vector<2x5x1xf32>
    %90 = vector.broadcast %89 : vector<2x5x1xf32> to vector<2x5x9xf32>
    %91 = vector.broadcast %82 : vector<2x1x9xf32> to vector<2x5x9xf32>
    %92 = arith.mulf %90, %91 : vector<2x5x9xf32>
    %93 = arith.subf %78, %92 : vector<2x5x9xf32>
    %94 = vector.shape_cast %85 : vector<5x1xi1> to vector<1x5x1xi1>
    %95 = vector.broadcast %94 : vector<1x5x1xi1> to vector<2x5x9xi1>
    %96 = vector.shape_cast %82 : vector<2x1x9xf32> to vector<2x1x9xf32>
    %97 = vector.broadcast %96 : vector<2x1x9xf32> to vector<2x5x9xf32>
    %98 = arith.select %95, %97, %93 : vector<2x5x9xi1>, vector<2x5x9xf32>
    %99 = vector.extract_strided_slice %98 {offsets = [0, 2, 0], sizes = [2, 1, 9], strides = [1, 1, 1]} : vector<2x5x9xf32> to vector<2x1x9xf32>
    %100 = vector.extract_strided_slice %98 {offsets = [0, 2, 2], sizes = [2, 1, 1], strides = [1, 1, 1]} : vector<2x5x9xf32> to vector<2x1x1xf32>
    %101 = vector.broadcast %100 : vector<2x1x1xf32> to vector<2x1x9xf32>
    %102 = arith.divf %99, %101 : vector<2x1x9xf32>
    %103 = vector.extract_strided_slice %98 {offsets = [0, 0, 2], sizes = [2, 5, 1], strides = [1, 1, 1]} : vector<2x5x9xf32> to vector<2x5x1xf32>
    %c2_i32 = arith.constant 2 : i32
    %104 = vector.broadcast %c2_i32 : i32 to vector<5x1xi32>
    %105 = arith.cmpi eq, %28, %104 : vector<5x1xi32>
    %cst_28 = arith.constant 0.000000e+00 : f32
    %106 = vector.shape_cast %105 : vector<5x1xi1> to vector<1x5x1xi1>
    %107 = vector.broadcast %106 : vector<1x5x1xi1> to vector<2x5x1xi1>
    %108 = vector.broadcast %cst_28 : f32 to vector<2x5x1xf32>
    %109 = arith.select %107, %108, %103 : vector<2x5x1xi1>, vector<2x5x1xf32>
    %110 = vector.broadcast %109 : vector<2x5x1xf32> to vector<2x5x9xf32>
    %111 = vector.broadcast %102 : vector<2x1x9xf32> to vector<2x5x9xf32>
    %112 = arith.mulf %110, %111 : vector<2x5x9xf32>
    %113 = arith.subf %98, %112 : vector<2x5x9xf32>
    %114 = vector.shape_cast %105 : vector<5x1xi1> to vector<1x5x1xi1>
    %115 = vector.broadcast %114 : vector<1x5x1xi1> to vector<2x5x9xi1>
    %116 = vector.shape_cast %102 : vector<2x1x9xf32> to vector<2x1x9xf32>
    %117 = vector.broadcast %116 : vector<2x1x9xf32> to vector<2x5x9xf32>
    %118 = arith.select %115, %117, %113 : vector<2x5x9xi1>, vector<2x5x9xf32>
    %119 = vector.extract_strided_slice %118 {offsets = [0, 3, 0], sizes = [2, 1, 9], strides = [1, 1, 1]} : vector<2x5x9xf32> to vector<2x1x9xf32>
    %120 = vector.extract_strided_slice %118 {offsets = [0, 3, 3], sizes = [2, 1, 1], strides = [1, 1, 1]} : vector<2x5x9xf32> to vector<2x1x1xf32>
    %121 = vector.broadcast %120 : vector<2x1x1xf32> to vector<2x1x9xf32>
    %122 = arith.divf %119, %121 : vector<2x1x9xf32>
    %123 = vector.extract_strided_slice %118 {offsets = [0, 0, 3], sizes = [2, 5, 1], strides = [1, 1, 1]} : vector<2x5x9xf32> to vector<2x5x1xf32>
    %c3_i32 = arith.constant 3 : i32
    %124 = vector.broadcast %c3_i32 : i32 to vector<5x1xi32>
    %125 = arith.cmpi eq, %28, %124 : vector<5x1xi32>
    %cst_29 = arith.constant 0.000000e+00 : f32
    %126 = vector.shape_cast %125 : vector<5x1xi1> to vector<1x5x1xi1>
    %127 = vector.broadcast %126 : vector<1x5x1xi1> to vector<2x5x1xi1>
    %128 = vector.broadcast %cst_29 : f32 to vector<2x5x1xf32>
    %129 = arith.select %127, %128, %123 : vector<2x5x1xi1>, vector<2x5x1xf32>
    %130 = vector.broadcast %129 : vector<2x5x1xf32> to vector<2x5x9xf32>
    %131 = vector.broadcast %122 : vector<2x1x9xf32> to vector<2x5x9xf32>
    %132 = arith.mulf %130, %131 : vector<2x5x9xf32>
    %133 = arith.subf %118, %132 : vector<2x5x9xf32>
    %134 = vector.shape_cast %125 : vector<5x1xi1> to vector<1x5x1xi1>
    %135 = vector.broadcast %134 : vector<1x5x1xi1> to vector<2x5x9xi1>
    %136 = vector.shape_cast %122 : vector<2x1x9xf32> to vector<2x1x9xf32>
    %137 = vector.broadcast %136 : vector<2x1x9xf32> to vector<2x5x9xf32>
    %138 = arith.select %135, %137, %133 : vector<2x5x9xi1>, vector<2x5x9xf32>
    %139 = vector.extract_strided_slice %138 {offsets = [0, 4, 0], sizes = [2, 1, 9], strides = [1, 1, 1]} : vector<2x5x9xf32> to vector<2x1x9xf32>
    %140 = vector.extract_strided_slice %138 {offsets = [0, 4, 4], sizes = [2, 1, 1], strides = [1, 1, 1]} : vector<2x5x9xf32> to vector<2x1x1xf32>
    %141 = vector.broadcast %140 : vector<2x1x1xf32> to vector<2x1x9xf32>
    %142 = arith.divf %139, %141 : vector<2x1x9xf32>
    %143 = vector.extract_strided_slice %138 {offsets = [0, 0, 4], sizes = [2, 5, 1], strides = [1, 1, 1]} : vector<2x5x9xf32> to vector<2x5x1xf32>
    %c4_i32 = arith.constant 4 : i32
    %144 = vector.broadcast %c4_i32 : i32 to vector<5x1xi32>
    %145 = arith.cmpi eq, %28, %144 : vector<5x1xi32>
    %cst_30 = arith.constant 0.000000e+00 : f32
    %146 = vector.shape_cast %145 : vector<5x1xi1> to vector<1x5x1xi1>
    %147 = vector.broadcast %146 : vector<1x5x1xi1> to vector<2x5x1xi1>
    %148 = vector.broadcast %cst_30 : f32 to vector<2x5x1xf32>
    %149 = arith.select %147, %148, %143 : vector<2x5x1xi1>, vector<2x5x1xf32>
    %150 = vector.broadcast %149 : vector<2x5x1xf32> to vector<2x5x9xf32>
    %151 = vector.broadcast %142 : vector<2x1x9xf32> to vector<2x5x9xf32>
    %152 = arith.mulf %150, %151 : vector<2x5x9xf32>
    %153 = arith.subf %138, %152 : vector<2x5x9xf32>
    %154 = vector.shape_cast %145 : vector<5x1xi1> to vector<1x5x1xi1>
    %155 = vector.broadcast %154 : vector<1x5x1xi1> to vector<2x5x9xi1>
    %156 = vector.shape_cast %142 : vector<2x1x9xf32> to vector<2x1x9xf32>
    %157 = vector.broadcast %156 : vector<2x1x9xf32> to vector<2x5x9xf32>
    %158 = arith.select %155, %157, %153 : vector<2x5x9xi1>, vector<2x5x9xf32>
    %159 = vector.extract_strided_slice %158 {offsets = [0, 0, 5], sizes = [2, 5, 1], strides = [1, 1, 1]} : vector<2x5x9xf32> to vector<2x5x1xf32>
    %160 = vector.extract_strided_slice %158 {offsets = [0, 0, 6], sizes = [2, 5, 3], strides = [1, 1, 1]} : vector<2x5x9xf32> to vector<2x5x3xf32>
    %cst_31 = arith.constant dense<0.000000e+00> : vector<2x1x3xf32>
    %161 = tpu.matmul %159, %55, %cst_31 {dimension_numbers = #tpu.dot_dimension_numbers<[1], [2], [2], [1], [0, 0, 0, 2, 1, 1], [0], [0]>} : vector<2x5x1xf32>, vector<2x3x5xf32>, vector<2x1x3xf32> -> vector<2x1x3xf32>
    %162 = arith.mulf %56, %160 : vector<2x5x3xf32>
    %cst_32 = arith.constant dense<0.000000e+00> : vector<2x3xf32>
    %163 = vector.multi_reduction <add>, %162, %cst_32 [1] : vector<2x5x3xf32> to vector<2x3xf32>
    %164 = vector.shape_cast %163 : vector<2x3xf32> to vector<2x1x3xf32>
    %165 = vector.extract_strided_slice %49 {offsets = [0, 5, 5], sizes = [2, 1, 1], strides = [1, 1, 1]} : vector<2x8x8xf32> to vector<2x1x1xf32>
    %166 = vector.extract_strided_slice %49 {offsets = [0, 6, 6], sizes = [2, 1, 1], strides = [1, 1, 1]} : vector<2x8x8xf32> to vector<2x1x1xf32>
    %167 = vector.extract_strided_slice %49 {offsets = [0, 7, 7], sizes = [2, 1, 1], strides = [1, 1, 1]} : vector<2x8x8xf32> to vector<2x1x1xf32>
    %168 = tpu.concatenate %165, %166, %167 in 2 : vector<2x1x1xf32>, vector<2x1x1xf32>, vector<2x1x1xf32> -> vector<2x1x3xf32>
    %169 = arith.subf %168, %164 : vector<2x1x3xf32>
    %170 = vector.extract_strided_slice %18 {offsets = [0, 0, 16], sizes = [2, 8, 16], strides = [1, 1, 1]} : vector<2x8x48xf32> to vector<2x8x16xf32>
    %cst_33 = arith.constant dense<0.000000e+00> : vector<2x8x8xf32>
    %171 = tpu.matmul %170, %170, %cst_33 {dimension_numbers = #tpu.dot_dimension_numbers<[2], [2], [1], [1], [0, 0, 0, 1, 1, 1], [0], [0]>} : vector<2x8x16xf32>, vector<2x8x16xf32>, vector<2x8x8xf32> -> vector<2x8x8xf32>
    %cst_34 = arith.constant 0.000000e+00 : f32
    %172 = vector.shape_cast %21 : vector<8x8xi1> to vector<1x8x8xi1>
    %173 = vector.broadcast %172 : vector<1x8x8xi1> to vector<2x8x8xi1>
    %174 = vector.broadcast %cst_34 : f32 to vector<2x8x8xf32>
    %175 = arith.select %173, %171, %174 : vector<2x8x8xi1>, vector<2x8x8xf32>
    %cst_35 = arith.constant dense<0.000000e+00> : vector<2x8xf32>
    %176 = vector.multi_reduction <add>, %175, %cst_35 [2] : vector<2x8x8xf32> to vector<2x8xf32>
    %177 = vector.shape_cast %176 : vector<2x8xf32> to vector<2x8x1xf32>
    %cst_36 = arith.constant dense<0.000000e+00> : vector<2x8xf32>
    %178 = vector.multi_reduction <add>, %175, %cst_36 [1] : vector<2x8x8xf32> to vector<2x8xf32>
    %179 = vector.shape_cast %178 : vector<2x8xf32> to vector<2x1x8xf32>
    %180 = vector.broadcast %177 : vector<2x8x1xf32> to vector<2x8x8xf32>
    %181 = vector.broadcast %179 : vector<2x1x8xf32> to vector<2x8x8xf32>
    %182 = arith.addf %180, %181 : vector<2x8x8xf32>
    %cst_37 = arith.constant 2.000000e+00 : f32
    %183 = vector.broadcast %cst_37 : f32 to vector<2x8x8xf32>
    %184 = arith.mulf %183, %171 : vector<2x8x8xf32>
    %185 = arith.subf %182, %184 : vector<2x8x8xf32>
    %cst_38 = arith.constant 0.000000e+00 : f32
    %186 = vector.broadcast %cst_38 : f32 to vector<2x8x8xf32>
    %187 = arith.maximumf %185, %186 : vector<2x8x8xf32>
    %cst_39 = arith.constant -5.000000e-01 : f32
    %188 = vector.broadcast %cst_39 : f32 to vector<2x8x8xf32>
    %189 = arith.mulf %188, %187 : vector<2x8x8xf32>
    %190 = math.exp %189 : vector<2x8x8xf32>
    %191 = vector.shape_cast %190 : vector<2x8x8xf32> to vector<2x64xf32>
    %192 = vector.extract_strided_slice %190 {offsets = [0, 0, 0], sizes = [2, 5, 5], strides = [1, 1, 1]} : vector<2x8x8xf32> to vector<2x5x5xf32>
    %193 = vector.shape_cast %27 : vector<5x5xf32> to vector<1x5x5xf32>
    %194 = vector.broadcast %193 : vector<1x5x5xf32> to vector<2x5x5xf32>
    %195 = arith.addf %192, %194 : vector<2x5x5xf32>
    %196 = vector.extract_strided_slice %190 {offsets = [0, 5, 0], sizes = [2, 3, 5], strides = [1, 1, 1]} : vector<2x8x8xf32> to vector<2x3x5xf32>
    %197 = vector.extract_strided_slice %190 {offsets = [0, 0, 5], sizes = [2, 5, 3], strides = [1, 1, 1]} : vector<2x8x8xf32> to vector<2x5x3xf32>
    %c0_40 = arith.constant 0 : index
    %c0_41 = arith.constant 0 : index
    %c1 = arith.constant 1 : index
    %198 = vector.load %arg6[%c0_40, %c0_41, %c1] : memref<2x5x3xf32, #tpu.memory_space<vmem>>, vector<2x5x1xf32>
    %199 = tpu.concatenate %195, %198, %197 in 2 : vector<2x5x5xf32>, vector<2x5x1xf32>, vector<2x5x3xf32> -> vector<2x5x9xf32>
    %200 = vector.extract_strided_slice %199 {offsets = [0, 0, 0], sizes = [2, 1, 9], strides = [1, 1, 1]} : vector<2x5x9xf32> to vector<2x1x9xf32>
    %201 = vector.extract_strided_slice %199 {offsets = [0, 0, 0], sizes = [2, 1, 1], strides = [1, 1, 1]} : vector<2x5x9xf32> to vector<2x1x1xf32>
    %202 = vector.broadcast %201 : vector<2x1x1xf32> to vector<2x1x9xf32>
    %203 = arith.divf %200, %202 : vector<2x1x9xf32>
    %204 = vector.extract_strided_slice %199 {offsets = [0, 0, 0], sizes = [2, 5, 1], strides = [1, 1, 1]} : vector<2x5x9xf32> to vector<2x5x1xf32>
    %c0_i32_42 = arith.constant 0 : i32
    %205 = vector.broadcast %c0_i32_42 : i32 to vector<5x1xi32>
    %206 = arith.cmpi eq, %28, %205 : vector<5x1xi32>
    %cst_43 = arith.constant 0.000000e+00 : f32
    %207 = vector.shape_cast %206 : vector<5x1xi1> to vector<1x5x1xi1>
    %208 = vector.broadcast %207 : vector<1x5x1xi1> to vector<2x5x1xi1>
    %209 = vector.broadcast %cst_43 : f32 to vector<2x5x1xf32>
    %210 = arith.select %208, %209, %204 : vector<2x5x1xi1>, vector<2x5x1xf32>
    %211 = vector.broadcast %210 : vector<2x5x1xf32> to vector<2x5x9xf32>
    %212 = vector.broadcast %203 : vector<2x1x9xf32> to vector<2x5x9xf32>
    %213 = arith.mulf %211, %212 : vector<2x5x9xf32>
    %214 = arith.subf %199, %213 : vector<2x5x9xf32>
    %215 = vector.shape_cast %206 : vector<5x1xi1> to vector<1x5x1xi1>
    %216 = vector.broadcast %215 : vector<1x5x1xi1> to vector<2x5x9xi1>
    %217 = vector.shape_cast %203 : vector<2x1x9xf32> to vector<2x1x9xf32>
    %218 = vector.broadcast %217 : vector<2x1x9xf32> to vector<2x5x9xf32>
    %219 = arith.select %216, %218, %214 : vector<2x5x9xi1>, vector<2x5x9xf32>
    %220 = vector.extract_strided_slice %219 {offsets = [0, 1, 0], sizes = [2, 1, 9], strides = [1, 1, 1]} : vector<2x5x9xf32> to vector<2x1x9xf32>
    %221 = vector.extract_strided_slice %219 {offsets = [0, 1, 1], sizes = [2, 1, 1], strides = [1, 1, 1]} : vector<2x5x9xf32> to vector<2x1x1xf32>
    %222 = vector.broadcast %221 : vector<2x1x1xf32> to vector<2x1x9xf32>
    %223 = arith.divf %220, %222 : vector<2x1x9xf32>
    %224 = vector.extract_strided_slice %219 {offsets = [0, 0, 1], sizes = [2, 5, 1], strides = [1, 1, 1]} : vector<2x5x9xf32> to vector<2x5x1xf32>
    %c1_i32_44 = arith.constant 1 : i32
    %225 = vector.broadcast %c1_i32_44 : i32 to vector<5x1xi32>
    %226 = arith.cmpi eq, %28, %225 : vector<5x1xi32>
    %cst_45 = arith.constant 0.000000e+00 : f32
    %227 = vector.shape_cast %226 : vector<5x1xi1> to vector<1x5x1xi1>
    %228 = vector.broadcast %227 : vector<1x5x1xi1> to vector<2x5x1xi1>
    %229 = vector.broadcast %cst_45 : f32 to vector<2x5x1xf32>
    %230 = arith.select %228, %229, %224 : vector<2x5x1xi1>, vector<2x5x1xf32>
    %231 = vector.broadcast %230 : vector<2x5x1xf32> to vector<2x5x9xf32>
    %232 = vector.broadcast %223 : vector<2x1x9xf32> to vector<2x5x9xf32>
    %233 = arith.mulf %231, %232 : vector<2x5x9xf32>
    %234 = arith.subf %219, %233 : vector<2x5x9xf32>
    %235 = vector.shape_cast %226 : vector<5x1xi1> to vector<1x5x1xi1>
    %236 = vector.broadcast %235 : vector<1x5x1xi1> to vector<2x5x9xi1>
    %237 = vector.shape_cast %223 : vector<2x1x9xf32> to vector<2x1x9xf32>
    %238 = vector.broadcast %237 : vector<2x1x9xf32> to vector<2x5x9xf32>
    %239 = arith.select %236, %238, %234 : vector<2x5x9xi1>, vector<2x5x9xf32>
    %240 = vector.extract_strided_slice %239 {offsets = [0, 2, 0], sizes = [2, 1, 9], strides = [1, 1, 1]} : vector<2x5x9xf32> to vector<2x1x9xf32>
    %241 = vector.extract_strided_slice %239 {offsets = [0, 2, 2], sizes = [2, 1, 1], strides = [1, 1, 1]} : vector<2x5x9xf32> to vector<2x1x1xf32>
    %242 = vector.broadcast %241 : vector<2x1x1xf32> to vector<2x1x9xf32>
    %243 = arith.divf %240, %242 : vector<2x1x9xf32>
    %244 = vector.extract_strided_slice %239 {offsets = [0, 0, 2], sizes = [2, 5, 1], strides = [1, 1, 1]} : vector<2x5x9xf32> to vector<2x5x1xf32>
    %c2_i32_46 = arith.constant 2 : i32
    %245 = vector.broadcast %c2_i32_46 : i32 to vector<5x1xi32>
    %246 = arith.cmpi eq, %28, %245 : vector<5x1xi32>
    %cst_47 = arith.constant 0.000000e+00 : f32
    %247 = vector.shape_cast %246 : vector<5x1xi1> to vector<1x5x1xi1>
    %248 = vector.broadcast %247 : vector<1x5x1xi1> to vector<2x5x1xi1>
    %249 = vector.broadcast %cst_47 : f32 to vector<2x5x1xf32>
    %250 = arith.select %248, %249, %244 : vector<2x5x1xi1>, vector<2x5x1xf32>
    %251 = vector.broadcast %250 : vector<2x5x1xf32> to vector<2x5x9xf32>
    %252 = vector.broadcast %243 : vector<2x1x9xf32> to vector<2x5x9xf32>
    %253 = arith.mulf %251, %252 : vector<2x5x9xf32>
    %254 = arith.subf %239, %253 : vector<2x5x9xf32>
    %255 = vector.shape_cast %246 : vector<5x1xi1> to vector<1x5x1xi1>
    %256 = vector.broadcast %255 : vector<1x5x1xi1> to vector<2x5x9xi1>
    %257 = vector.shape_cast %243 : vector<2x1x9xf32> to vector<2x1x9xf32>
    %258 = vector.broadcast %257 : vector<2x1x9xf32> to vector<2x5x9xf32>
    %259 = arith.select %256, %258, %254 : vector<2x5x9xi1>, vector<2x5x9xf32>
    %260 = vector.extract_strided_slice %259 {offsets = [0, 3, 0], sizes = [2, 1, 9], strides = [1, 1, 1]} : vector<2x5x9xf32> to vector<2x1x9xf32>
    %261 = vector.extract_strided_slice %259 {offsets = [0, 3, 3], sizes = [2, 1, 1], strides = [1, 1, 1]} : vector<2x5x9xf32> to vector<2x1x1xf32>
    %262 = vector.broadcast %261 : vector<2x1x1xf32> to vector<2x1x9xf32>
    %263 = arith.divf %260, %262 : vector<2x1x9xf32>
    %264 = vector.extract_strided_slice %259 {offsets = [0, 0, 3], sizes = [2, 5, 1], strides = [1, 1, 1]} : vector<2x5x9xf32> to vector<2x5x1xf32>
    %c3_i32_48 = arith.constant 3 : i32
    %265 = vector.broadcast %c3_i32_48 : i32 to vector<5x1xi32>
    %266 = arith.cmpi eq, %28, %265 : vector<5x1xi32>
    %cst_49 = arith.constant 0.000000e+00 : f32
    %267 = vector.shape_cast %266 : vector<5x1xi1> to vector<1x5x1xi1>
    %268 = vector.broadcast %267 : vector<1x5x1xi1> to vector<2x5x1xi1>
    %269 = vector.broadcast %cst_49 : f32 to vector<2x5x1xf32>
    %270 = arith.select %268, %269, %264 : vector<2x5x1xi1>, vector<2x5x1xf32>
    %271 = vector.broadcast %270 : vector<2x5x1xf32> to vector<2x5x9xf32>
    %272 = vector.broadcast %263 : vector<2x1x9xf32> to vector<2x5x9xf32>
    %273 = arith.mulf %271, %272 : vector<2x5x9xf32>
    %274 = arith.subf %259, %273 : vector<2x5x9xf32>
    %275 = vector.shape_cast %266 : vector<5x1xi1> to vector<1x5x1xi1>
    %276 = vector.broadcast %275 : vector<1x5x1xi1> to vector<2x5x9xi1>
    %277 = vector.shape_cast %263 : vector<2x1x9xf32> to vector<2x1x9xf32>
    %278 = vector.broadcast %277 : vector<2x1x9xf32> to vector<2x5x9xf32>
    %279 = arith.select %276, %278, %274 : vector<2x5x9xi1>, vector<2x5x9xf32>
    %280 = vector.extract_strided_slice %279 {offsets = [0, 4, 0], sizes = [2, 1, 9], strides = [1, 1, 1]} : vector<2x5x9xf32> to vector<2x1x9xf32>
    %281 = vector.extract_strided_slice %279 {offsets = [0, 4, 4], sizes = [2, 1, 1], strides = [1, 1, 1]} : vector<2x5x9xf32> to vector<2x1x1xf32>
    %282 = vector.broadcast %281 : vector<2x1x1xf32> to vector<2x1x9xf32>
    %283 = arith.divf %280, %282 : vector<2x1x9xf32>
    %284 = vector.extract_strided_slice %279 {offsets = [0, 0, 4], sizes = [2, 5, 1], strides = [1, 1, 1]} : vector<2x5x9xf32> to vector<2x5x1xf32>
    %c4_i32_50 = arith.constant 4 : i32
    %285 = vector.broadcast %c4_i32_50 : i32 to vector<5x1xi32>
    %286 = arith.cmpi eq, %28, %285 : vector<5x1xi32>
    %cst_51 = arith.constant 0.000000e+00 : f32
    %287 = vector.shape_cast %286 : vector<5x1xi1> to vector<1x5x1xi1>
    %288 = vector.broadcast %287 : vector<1x5x1xi1> to vector<2x5x1xi1>
    %289 = vector.broadcast %cst_51 : f32 to vector<2x5x1xf32>
    %290 = arith.select %288, %289, %284 : vector<2x5x1xi1>, vector<2x5x1xf32>
    %291 = vector.broadcast %290 : vector<2x5x1xf32> to vector<2x5x9xf32>
    %292 = vector.broadcast %283 : vector<2x1x9xf32> to vector<2x5x9xf32>
    %293 = arith.mulf %291, %292 : vector<2x5x9xf32>
    %294 = arith.subf %279, %293 : vector<2x5x9xf32>
    %295 = vector.shape_cast %286 : vector<5x1xi1> to vector<1x5x1xi1>
    %296 = vector.broadcast %295 : vector<1x5x1xi1> to vector<2x5x9xi1>
    %297 = vector.shape_cast %283 : vector<2x1x9xf32> to vector<2x1x9xf32>
    %298 = vector.broadcast %297 : vector<2x1x9xf32> to vector<2x5x9xf32>
    %299 = arith.select %296, %298, %294 : vector<2x5x9xi1>, vector<2x5x9xf32>
    %300 = vector.extract_strided_slice %299 {offsets = [0, 0, 5], sizes = [2, 5, 1], strides = [1, 1, 1]} : vector<2x5x9xf32> to vector<2x5x1xf32>
    %301 = vector.extract_strided_slice %299 {offsets = [0, 0, 6], sizes = [2, 5, 3], strides = [1, 1, 1]} : vector<2x5x9xf32> to vector<2x5x3xf32>
    %cst_52 = arith.constant dense<0.000000e+00> : vector<2x1x3xf32>
    %302 = tpu.matmul %300, %196, %cst_52 {dimension_numbers = #tpu.dot_dimension_numbers<[1], [2], [2], [1], [0, 0, 0, 2, 1, 1], [0], [0]>} : vector<2x5x1xf32>, vector<2x3x5xf32>, vector<2x1x3xf32> -> vector<2x1x3xf32>
    %303 = arith.mulf %197, %301 : vector<2x5x3xf32>
    %cst_53 = arith.constant dense<0.000000e+00> : vector<2x3xf32>
    %304 = vector.multi_reduction <add>, %303, %cst_53 [1] : vector<2x5x3xf32> to vector<2x3xf32>
    %305 = vector.shape_cast %304 : vector<2x3xf32> to vector<2x1x3xf32>
    %306 = vector.extract_strided_slice %190 {offsets = [0, 5, 5], sizes = [2, 1, 1], strides = [1, 1, 1]} : vector<2x8x8xf32> to vector<2x1x1xf32>
    %307 = vector.extract_strided_slice %190 {offsets = [0, 6, 6], sizes = [2, 1, 1], strides = [1, 1, 1]} : vector<2x8x8xf32> to vector<2x1x1xf32>
    %308 = vector.extract_strided_slice %190 {offsets = [0, 7, 7], sizes = [2, 1, 1], strides = [1, 1, 1]} : vector<2x8x8xf32> to vector<2x1x1xf32>
    %309 = tpu.concatenate %306, %307, %308 in 2 : vector<2x1x1xf32>, vector<2x1x1xf32>, vector<2x1x1xf32> -> vector<2x1x3xf32>
    %310 = arith.subf %309, %305 : vector<2x1x3xf32>
    %311 = vector.extract_strided_slice %18 {offsets = [0, 0, 32], sizes = [2, 8, 16], strides = [1, 1, 1]} : vector<2x8x48xf32> to vector<2x8x16xf32>
    %cst_54 = arith.constant dense<0.000000e+00> : vector<2x8x8xf32>
    %312 = tpu.matmul %311, %311, %cst_54 {dimension_numbers = #tpu.dot_dimension_numbers<[2], [2], [1], [1], [0, 0, 0, 1, 1, 1], [0], [0]>} : vector<2x8x16xf32>, vector<2x8x16xf32>, vector<2x8x8xf32> -> vector<2x8x8xf32>
    %cst_55 = arith.constant 0.000000e+00 : f32
    %313 = vector.shape_cast %21 : vector<8x8xi1> to vector<1x8x8xi1>
    %314 = vector.broadcast %313 : vector<1x8x8xi1> to vector<2x8x8xi1>
    %315 = vector.broadcast %cst_55 : f32 to vector<2x8x8xf32>
    %316 = arith.select %314, %312, %315 : vector<2x8x8xi1>, vector<2x8x8xf32>
    %cst_56 = arith.constant dense<0.000000e+00> : vector<2x8xf32>
    %317 = vector.multi_reduction <add>, %316, %cst_56 [2] : vector<2x8x8xf32> to vector<2x8xf32>
    %318 = vector.shape_cast %317 : vector<2x8xf32> to vector<2x8x1xf32>
    %cst_57 = arith.constant dense<0.000000e+00> : vector<2x8xf32>
    %319 = vector.multi_reduction <add>, %316, %cst_57 [1] : vector<2x8x8xf32> to vector<2x8xf32>
    %320 = vector.shape_cast %319 : vector<2x8xf32> to vector<2x1x8xf32>
    %321 = vector.broadcast %318 : vector<2x8x1xf32> to vector<2x8x8xf32>
    %322 = vector.broadcast %320 : vector<2x1x8xf32> to vector<2x8x8xf32>
    %323 = arith.addf %321, %322 : vector<2x8x8xf32>
    %cst_58 = arith.constant 2.000000e+00 : f32
    %324 = vector.broadcast %cst_58 : f32 to vector<2x8x8xf32>
    %325 = arith.mulf %324, %312 : vector<2x8x8xf32>
    %326 = arith.subf %323, %325 : vector<2x8x8xf32>
    %cst_59 = arith.constant 0.000000e+00 : f32
    %327 = vector.broadcast %cst_59 : f32 to vector<2x8x8xf32>
    %328 = arith.maximumf %326, %327 : vector<2x8x8xf32>
    %cst_60 = arith.constant -5.000000e-01 : f32
    %329 = vector.broadcast %cst_60 : f32 to vector<2x8x8xf32>
    %330 = arith.mulf %329, %328 : vector<2x8x8xf32>
    %331 = math.exp %330 : vector<2x8x8xf32>
    %332 = vector.shape_cast %331 : vector<2x8x8xf32> to vector<2x64xf32>
    %333 = vector.extract_strided_slice %331 {offsets = [0, 0, 0], sizes = [2, 5, 5], strides = [1, 1, 1]} : vector<2x8x8xf32> to vector<2x5x5xf32>
    %334 = vector.shape_cast %27 : vector<5x5xf32> to vector<1x5x5xf32>
    %335 = vector.broadcast %334 : vector<1x5x5xf32> to vector<2x5x5xf32>
    %336 = arith.addf %333, %335 : vector<2x5x5xf32>
    %337 = vector.extract_strided_slice %331 {offsets = [0, 5, 0], sizes = [2, 3, 5], strides = [1, 1, 1]} : vector<2x8x8xf32> to vector<2x3x5xf32>
    %338 = vector.extract_strided_slice %331 {offsets = [0, 0, 5], sizes = [2, 5, 3], strides = [1, 1, 1]} : vector<2x8x8xf32> to vector<2x5x3xf32>
    %c0_61 = arith.constant 0 : index
    %c0_62 = arith.constant 0 : index
    %c2 = arith.constant 2 : index
    %339 = vector.load %arg6[%c0_61, %c0_62, %c2] : memref<2x5x3xf32, #tpu.memory_space<vmem>>, vector<2x5x1xf32>
    %340 = tpu.concatenate %336, %339, %338 in 2 : vector<2x5x5xf32>, vector<2x5x1xf32>, vector<2x5x3xf32> -> vector<2x5x9xf32>
    %341 = vector.extract_strided_slice %340 {offsets = [0, 0, 0], sizes = [2, 1, 9], strides = [1, 1, 1]} : vector<2x5x9xf32> to vector<2x1x9xf32>
    %342 = vector.extract_strided_slice %340 {offsets = [0, 0, 0], sizes = [2, 1, 1], strides = [1, 1, 1]} : vector<2x5x9xf32> to vector<2x1x1xf32>
    %343 = vector.broadcast %342 : vector<2x1x1xf32> to vector<2x1x9xf32>
    %344 = arith.divf %341, %343 : vector<2x1x9xf32>
    %345 = vector.extract_strided_slice %340 {offsets = [0, 0, 0], sizes = [2, 5, 1], strides = [1, 1, 1]} : vector<2x5x9xf32> to vector<2x5x1xf32>
    %c0_i32_63 = arith.constant 0 : i32
    %346 = vector.broadcast %c0_i32_63 : i32 to vector<5x1xi32>
    %347 = arith.cmpi eq, %28, %346 : vector<5x1xi32>
    %cst_64 = arith.constant 0.000000e+00 : f32
    %348 = vector.shape_cast %347 : vector<5x1xi1> to vector<1x5x1xi1>
    %349 = vector.broadcast %348 : vector<1x5x1xi1> to vector<2x5x1xi1>
    %350 = vector.broadcast %cst_64 : f32 to vector<2x5x1xf32>
    %351 = arith.select %349, %350, %345 : vector<2x5x1xi1>, vector<2x5x1xf32>
    %352 = vector.broadcast %351 : vector<2x5x1xf32> to vector<2x5x9xf32>
    %353 = vector.broadcast %344 : vector<2x1x9xf32> to vector<2x5x9xf32>
    %354 = arith.mulf %352, %353 : vector<2x5x9xf32>
    %355 = arith.subf %340, %354 : vector<2x5x9xf32>
    %356 = vector.shape_cast %347 : vector<5x1xi1> to vector<1x5x1xi1>
    %357 = vector.broadcast %356 : vector<1x5x1xi1> to vector<2x5x9xi1>
    %358 = vector.shape_cast %344 : vector<2x1x9xf32> to vector<2x1x9xf32>
    %359 = vector.broadcast %358 : vector<2x1x9xf32> to vector<2x5x9xf32>
    %360 = arith.select %357, %359, %355 : vector<2x5x9xi1>, vector<2x5x9xf32>
    %361 = vector.extract_strided_slice %360 {offsets = [0, 1, 0], sizes = [2, 1, 9], strides = [1, 1, 1]} : vector<2x5x9xf32> to vector<2x1x9xf32>
    %362 = vector.extract_strided_slice %360 {offsets = [0, 1, 1], sizes = [2, 1, 1], strides = [1, 1, 1]} : vector<2x5x9xf32> to vector<2x1x1xf32>
    %363 = vector.broadcast %362 : vector<2x1x1xf32> to vector<2x1x9xf32>
    %364 = arith.divf %361, %363 : vector<2x1x9xf32>
    %365 = vector.extract_strided_slice %360 {offsets = [0, 0, 1], sizes = [2, 5, 1], strides = [1, 1, 1]} : vector<2x5x9xf32> to vector<2x5x1xf32>
    %c1_i32_65 = arith.constant 1 : i32
    %366 = vector.broadcast %c1_i32_65 : i32 to vector<5x1xi32>
    %367 = arith.cmpi eq, %28, %366 : vector<5x1xi32>
    %cst_66 = arith.constant 0.000000e+00 : f32
    %368 = vector.shape_cast %367 : vector<5x1xi1> to vector<1x5x1xi1>
    %369 = vector.broadcast %368 : vector<1x5x1xi1> to vector<2x5x1xi1>
    %370 = vector.broadcast %cst_66 : f32 to vector<2x5x1xf32>
    %371 = arith.select %369, %370, %365 : vector<2x5x1xi1>, vector<2x5x1xf32>
    %372 = vector.broadcast %371 : vector<2x5x1xf32> to vector<2x5x9xf32>
    %373 = vector.broadcast %364 : vector<2x1x9xf32> to vector<2x5x9xf32>
    %374 = arith.mulf %372, %373 : vector<2x5x9xf32>
    %375 = arith.subf %360, %374 : vector<2x5x9xf32>
    %376 = vector.shape_cast %367 : vector<5x1xi1> to vector<1x5x1xi1>
    %377 = vector.broadcast %376 : vector<1x5x1xi1> to vector<2x5x9xi1>
    %378 = vector.shape_cast %364 : vector<2x1x9xf32> to vector<2x1x9xf32>
    %379 = vector.broadcast %378 : vector<2x1x9xf32> to vector<2x5x9xf32>
    %380 = arith.select %377, %379, %375 : vector<2x5x9xi1>, vector<2x5x9xf32>
    %381 = vector.extract_strided_slice %380 {offsets = [0, 2, 0], sizes = [2, 1, 9], strides = [1, 1, 1]} : vector<2x5x9xf32> to vector<2x1x9xf32>
    %382 = vector.extract_strided_slice %380 {offsets = [0, 2, 2], sizes = [2, 1, 1], strides = [1, 1, 1]} : vector<2x5x9xf32> to vector<2x1x1xf32>
    %383 = vector.broadcast %382 : vector<2x1x1xf32> to vector<2x1x9xf32>
    %384 = arith.divf %381, %383 : vector<2x1x9xf32>
    %385 = vector.extract_strided_slice %380 {offsets = [0, 0, 2], sizes = [2, 5, 1], strides = [1, 1, 1]} : vector<2x5x9xf32> to vector<2x5x1xf32>
    %c2_i32_67 = arith.constant 2 : i32
    %386 = vector.broadcast %c2_i32_67 : i32 to vector<5x1xi32>
    %387 = arith.cmpi eq, %28, %386 : vector<5x1xi32>
    %cst_68 = arith.constant 0.000000e+00 : f32
    %388 = vector.shape_cast %387 : vector<5x1xi1> to vector<1x5x1xi1>
    %389 = vector.broadcast %388 : vector<1x5x1xi1> to vector<2x5x1xi1>
    %390 = vector.broadcast %cst_68 : f32 to vector<2x5x1xf32>
    %391 = arith.select %389, %390, %385 : vector<2x5x1xi1>, vector<2x5x1xf32>
    %392 = vector.broadcast %391 : vector<2x5x1xf32> to vector<2x5x9xf32>
    %393 = vector.broadcast %384 : vector<2x1x9xf32> to vector<2x5x9xf32>
    %394 = arith.mulf %392, %393 : vector<2x5x9xf32>
    %395 = arith.subf %380, %394 : vector<2x5x9xf32>
    %396 = vector.shape_cast %387 : vector<5x1xi1> to vector<1x5x1xi1>
    %397 = vector.broadcast %396 : vector<1x5x1xi1> to vector<2x5x9xi1>
    %398 = vector.shape_cast %384 : vector<2x1x9xf32> to vector<2x1x9xf32>
    %399 = vector.broadcast %398 : vector<2x1x9xf32> to vector<2x5x9xf32>
    %400 = arith.select %397, %399, %395 : vector<2x5x9xi1>, vector<2x5x9xf32>
    %401 = vector.extract_strided_slice %400 {offsets = [0, 3, 0], sizes = [2, 1, 9], strides = [1, 1, 1]} : vector<2x5x9xf32> to vector<2x1x9xf32>
    %402 = vector.extract_strided_slice %400 {offsets = [0, 3, 3], sizes = [2, 1, 1], strides = [1, 1, 1]} : vector<2x5x9xf32> to vector<2x1x1xf32>
    %403 = vector.broadcast %402 : vector<2x1x1xf32> to vector<2x1x9xf32>
    %404 = arith.divf %401, %403 : vector<2x1x9xf32>
    %405 = vector.extract_strided_slice %400 {offsets = [0, 0, 3], sizes = [2, 5, 1], strides = [1, 1, 1]} : vector<2x5x9xf32> to vector<2x5x1xf32>
    %c3_i32_69 = arith.constant 3 : i32
    %406 = vector.broadcast %c3_i32_69 : i32 to vector<5x1xi32>
    %407 = arith.cmpi eq, %28, %406 : vector<5x1xi32>
    %cst_70 = arith.constant 0.000000e+00 : f32
    %408 = vector.shape_cast %407 : vector<5x1xi1> to vector<1x5x1xi1>
    %409 = vector.broadcast %408 : vector<1x5x1xi1> to vector<2x5x1xi1>
    %410 = vector.broadcast %cst_70 : f32 to vector<2x5x1xf32>
    %411 = arith.select %409, %410, %405 : vector<2x5x1xi1>, vector<2x5x1xf32>
    %412 = vector.broadcast %411 : vector<2x5x1xf32> to vector<2x5x9xf32>
    %413 = vector.broadcast %404 : vector<2x1x9xf32> to vector<2x5x9xf32>
    %414 = arith.mulf %412, %413 : vector<2x5x9xf32>
    %415 = arith.subf %400, %414 : vector<2x5x9xf32>
    %416 = vector.shape_cast %407 : vector<5x1xi1> to vector<1x5x1xi1>
    %417 = vector.broadcast %416 : vector<1x5x1xi1> to vector<2x5x9xi1>
    %418 = vector.shape_cast %404 : vector<2x1x9xf32> to vector<2x1x9xf32>
    %419 = vector.broadcast %418 : vector<2x1x9xf32> to vector<2x5x9xf32>
    %420 = arith.select %417, %419, %415 : vector<2x5x9xi1>, vector<2x5x9xf32>
    %421 = vector.extract_strided_slice %420 {offsets = [0, 4, 0], sizes = [2, 1, 9], strides = [1, 1, 1]} : vector<2x5x9xf32> to vector<2x1x9xf32>
    %422 = vector.extract_strided_slice %420 {offsets = [0, 4, 4], sizes = [2, 1, 1], strides = [1, 1, 1]} : vector<2x5x9xf32> to vector<2x1x1xf32>
    %423 = vector.broadcast %422 : vector<2x1x1xf32> to vector<2x1x9xf32>
    %424 = arith.divf %421, %423 : vector<2x1x9xf32>
    %425 = vector.extract_strided_slice %420 {offsets = [0, 0, 4], sizes = [2, 5, 1], strides = [1, 1, 1]} : vector<2x5x9xf32> to vector<2x5x1xf32>
    %c4_i32_71 = arith.constant 4 : i32
    %426 = vector.broadcast %c4_i32_71 : i32 to vector<5x1xi32>
    %427 = arith.cmpi eq, %28, %426 : vector<5x1xi32>
    %cst_72 = arith.constant 0.000000e+00 : f32
    %428 = vector.shape_cast %427 : vector<5x1xi1> to vector<1x5x1xi1>
    %429 = vector.broadcast %428 : vector<1x5x1xi1> to vector<2x5x1xi1>
    %430 = vector.broadcast %cst_72 : f32 to vector<2x5x1xf32>
    %431 = arith.select %429, %430, %425 : vector<2x5x1xi1>, vector<2x5x1xf32>
    %432 = vector.broadcast %431 : vector<2x5x1xf32> to vector<2x5x9xf32>
    %433 = vector.broadcast %424 : vector<2x1x9xf32> to vector<2x5x9xf32>
    %434 = arith.mulf %432, %433 : vector<2x5x9xf32>
    %435 = arith.subf %420, %434 : vector<2x5x9xf32>
    %436 = vector.shape_cast %427 : vector<5x1xi1> to vector<1x5x1xi1>
    %437 = vector.broadcast %436 : vector<1x5x1xi1> to vector<2x5x9xi1>
    %438 = vector.shape_cast %424 : vector<2x1x9xf32> to vector<2x1x9xf32>
    %439 = vector.broadcast %438 : vector<2x1x9xf32> to vector<2x5x9xf32>
    %440 = arith.select %437, %439, %435 : vector<2x5x9xi1>, vector<2x5x9xf32>
    %441 = vector.extract_strided_slice %440 {offsets = [0, 0, 5], sizes = [2, 5, 1], strides = [1, 1, 1]} : vector<2x5x9xf32> to vector<2x5x1xf32>
    %442 = vector.extract_strided_slice %440 {offsets = [0, 0, 6], sizes = [2, 5, 3], strides = [1, 1, 1]} : vector<2x5x9xf32> to vector<2x5x3xf32>
    %cst_73 = arith.constant dense<0.000000e+00> : vector<2x1x3xf32>
    %443 = tpu.matmul %441, %337, %cst_73 {dimension_numbers = #tpu.dot_dimension_numbers<[1], [2], [2], [1], [0, 0, 0, 2, 1, 1], [0], [0]>} : vector<2x5x1xf32>, vector<2x3x5xf32>, vector<2x1x3xf32> -> vector<2x1x3xf32>
    %444 = arith.mulf %338, %442 : vector<2x5x3xf32>
    %cst_74 = arith.constant dense<0.000000e+00> : vector<2x3xf32>
    %445 = vector.multi_reduction <add>, %444, %cst_74 [1] : vector<2x5x3xf32> to vector<2x3xf32>
    %446 = vector.shape_cast %445 : vector<2x3xf32> to vector<2x1x3xf32>
    %447 = vector.extract_strided_slice %331 {offsets = [0, 5, 5], sizes = [2, 1, 1], strides = [1, 1, 1]} : vector<2x8x8xf32> to vector<2x1x1xf32>
    %448 = vector.extract_strided_slice %331 {offsets = [0, 6, 6], sizes = [2, 1, 1], strides = [1, 1, 1]} : vector<2x8x8xf32> to vector<2x1x1xf32>
    %449 = vector.extract_strided_slice %331 {offsets = [0, 7, 7], sizes = [2, 1, 1], strides = [1, 1, 1]} : vector<2x8x8xf32> to vector<2x1x1xf32>
    %450 = tpu.concatenate %447, %448, %449 in 2 : vector<2x1x1xf32>, vector<2x1x1xf32>, vector<2x1x1xf32> -> vector<2x1x3xf32>
    %451 = arith.subf %450, %446 : vector<2x1x3xf32>
    %452 = tpu.concatenate %50, %191, %332 in 1 : vector<2x64xf32>, vector<2x64xf32>, vector<2x64xf32> -> vector<2x192xf32>
    %c0_75 = arith.constant 0 : index
    %c0_76 = arith.constant 0 : index
    %453 = vector.load %arg7[%c0_75, %c0_76] : memref<2x192xf32, #tpu.memory_space<vmem>>, vector<2x192xf32>
    tpu.vector_store %arg7[%c0_75, %c0_76], %452 {strides = array<i32>} : memref<2x192xf32, #tpu.memory_space<vmem>>, vector<2x192xf32>,
    %454 = tpu.concatenate %161, %302, %443 in 2 : vector<2x1x3xf32>, vector<2x1x3xf32>, vector<2x1x3xf32> -> vector<2x1x9xf32>
    %455 = vector.shape_cast %454 : vector<2x1x9xf32> to vector<2x9xf32>
    %c0_77 = arith.constant 0 : index
    %c0_78 = arith.constant 0 : index
    %456 = vector.load %arg8[%c0_77, %c0_78] : memref<2x9xf32, #tpu.memory_space<vmem>>, vector<2x9xf32>
    tpu.vector_store %arg8[%c0_77, %c0_78], %455 {strides = array<i32>} : memref<2x9xf32, #tpu.memory_space<vmem>>, vector<2x9xf32>,
    %457 = tpu.concatenate %169, %310, %451 in 2 : vector<2x1x3xf32>, vector<2x1x3xf32>, vector<2x1x3xf32> -> vector<2x1x9xf32>
    %458 = vector.shape_cast %457 : vector<2x1x9xf32> to vector<2x9xf32>
    %c0_79 = arith.constant 0 : index
    %c0_80 = arith.constant 0 : index
    %459 = vector.load %arg9[%c0_79, %c0_80] : memref<2x9xf32, #tpu.memory_space<vmem>>, vector<2x9xf32>
    tpu.vector_store %arg9[%c0_79, %c0_80], %458 {strides = array<i32>} : memref<2x9xf32, #tpu.memory_space<vmem>>, vector<2x9xf32>,
    return
  }
}

</mosaic_0001>

<bundles_post_ra>
// kernel: dgp_forward.3
= control target key start
LH: loop header
LB: loop body
LE: loop exit
PB: predicated region body
PF: predicated region fallthrough
CT: control target
= control target key end

     0   :  { %vm44_vm0 = vcmask 1043456   ;;  %vm37_vm1 = vcmask 97280   ;;  %vm89_vm2 = vcmask 785408   ;;  %vm133_vm3 = vcmask 130048   ;;  %s2430_s27 = smov 4   ;;  %s2431_s30 = smov 1   ;;  %s3357_s1 = inlined_call_operand.vmem [shape: f32[12,96], index: 1, kind: input, shape index: {}]   ;;  %s3358_s0 = inlined_call_operand.vmem [shape: f32[16,12], index: 0, kind: input, shape index: {}]   ;;  %s3359_s3 = inlined_call_operand.vmem [shape: f32[96,48], index: 3, kind: input, shape index: {}]   ;;  %s3360_s2 = inlined_call_operand.vmem [shape: f32[1,96], index: 2, kind: input, shape index: {}]   ;;  %s3361_s4 = inlined_call_operand.vmem [shape: f32[1,48], index: 4, kind: input, shape index: {}]   ;;  %s3362_s5 = inlined_call_operand.vmem [shape: f32[16,48], index: 5, kind: input, shape index: {}]   ;;  %s3363_s6 = inlined_call_operand.vmem [shape: f32[2,5,3], index: 6, kind: input, shape index: {}]   ;;  %s3364_s7 = inlined_call_operand.vmem [shape: f32[2,192], index: 7, kind: output, shape index: {0}]   ;;  %s3365_s8 = inlined_call_operand.vmem [shape: f32[2,9], index: 8, kind: output, shape index: {1}]   ;;  %s3366_s9 = inlined_call_operand.vmem [shape: f32[2,9], index: 9, kind: output, shape index: {2}]  }
   0x1   :  { %v32_v0 = vld [vmem:[%s3357_s1 + $0x8] sm:$0xf]  ;;  %v31_v1 = vld [vmem:[%s3357_s1] sm:$0xff]  ;;  %v84_v3 = vld [vmem:[%s3359_s3 + $0x58] sm:$0xff]  ;;  %v127_v38 = vlaneseq  ;;  %vm184_vm5 = vcmask 64512   ;;  %vm3369_vm6 = vcmask 39936  }
   0x2   :  { %2270 = vmatpush.msk.msra.mxu0 %vm44_vm0, %v32_v0  ;;  %v29_v2 = vld [vmem:[%s3358_s0] sm:$0xff]  ;;  %v83_v4 = vld [vmem:[%s3359_s3 + $0x50] sm:$0xff]  ;;  %100 = vmatpush.msra.mxu1 %v84_v3  ;;  %v82_v5 = vld [vmem:[%s3359_s3 + $0x48] sm:$0xff]  ;;  %vm218_vm7 = vcmask 1047556   ;;  %vm3368_vm8 = vcmask 48128   ;;  %s2439_s10 = smov 96  }
   0x3   :  { %v81_v6 = vld [vmem:[%s3359_s3 + $0x40] sm:$0xff]  ;;  %v80_v7 = vld [vmem:[%s3359_s3 + $0x38] sm:$0xff]  ;;  %v30_v8 = vld [vmem:[%s3358_s0 + $0x8] sm:$0xff]  ;;  %v2585_v39 = vshrl.u32 %v127_v38, 7  ;;  %v130_v40 = vand.u32 127, %v127_v38  ;;  %s2440_s11 = smov 123  }
   0x4   :  { %63 = vmatpush.msra.mxu0 %v31_v1  ;;  %101 = vmatpush.msra.mxu1 %v83_v4  ;;  %v79_v9 = vld [vmem:[%s3359_s3 + $0x30] sm:$0xff]  ;;  %v78_v10 = vld [vmem:[%s3359_s3 + $0x28] sm:$0xff]  ;;  %v77_v11 = vld [vmem:[%s3359_s3 + $0x20] sm:$0xff]  ;;  %s2442_s12 = smov 8   ;;  %s2443_s0 = smov 16  }
   0x5   :  { %2271 = vmatmul.msk.f32.vlgmr.msra.gmra.mxu0 %vm37_vm1, %v29_v2  ;;  %v76_v12 = vld [vmem:[%s3359_s3 + $0x18] sm:$0xff]  ;;  %v75_v13 = vld [vmem:[%s3359_s3 + $0x10] sm:$0xff]  ;;  %v74_v14 = vld [vmem:[%s3359_s3 + $0x8] sm:$0xff]  ;;  %vm2588_vm4 = vcmp.eq.s32.totalorder %v2585_v39, %v130_v40  ;;  %vm376_vm9 = vcmp.eq.s32.totalorder %v2585_v39, 0  ;;  %s2444_s13 = smov 32   ;;  %s2445_s14 = smov 24  }
   0x6   :  { %102 = vmatpush.msra.mxu1 %v82_v5  ;;  %v73_v15 = vld [vmem:[%s3359_s3] sm:$0xff]  ;;  %v122_v32 = vld [vmem:[%s3362_s5 + $0x8] sm:$0xff]  ;;  %s2446_s15 = smov 48   ;;  %s2447_s16 = smov 40  }
   0x7   :  { %v2354_v16 = vld [vmem:[%s3360_s2] ss:$0 sm:$0xff]  ;;  %s2428_s2 = smov 112   ;;  %v313_v37 = vld [vmem:[%s3363_s6 + $0x8] sm:$0x1f]  ;;  %s2448_s19 = smov 56  }
   0x8   :  { %103 = vmatpush.msra.mxu1 %v81_v6  ;;  %v2355_v23 = vld [vmem:[%s3361_s4] ss:$0 sm:$0xff]  ;;  %s2449_s3 = smov 3   ;;  %s2450_s4 = smov 127  }
   0x9   :  { %v121_v26 = vld [vmem:[%s3362_s5] sm:$0xff]  ;;  %s2429_s5 = smov 5   ;;  %s2452_s24 = smov 6  }
   0xa   :  { %104 = vmatpush.msra.mxu1 %v80_v7  ;;  %318 = vrot.lane.b32.xlu2 %v313_v37, %s2429_s5  ;;  %v1007_v48 = vld [vmem:[%s3363_s6] sm:$0x1f] }
   0xc   :  { %105 = vmatpush.msra.mxu1 %v79_v9 }
   0xd   :  { %2272 = vmatmul.msk.f32.gmra.mxu0 %vm37_vm1, %v30_v8 }
   0xe   :  { %106 = vmatpush.msra.mxu1 %v78_v10 }
  0x10   :  { %107 = vmatpush.msra.mxu1 %v77_v11 }
  0x12   :  { %108 = vmatpush.msra.mxu1 %v76_v12  ;;  %1011 = vrot.lane.b32.xlu2 %v1007_v48, %s2430_s27 }
  0x14   :  { %109 = vmatpush.msra.mxu1 %v75_v13  ;;  %v312_v13 = vld [vmem:[%s3363_s6] sm:$0x1f] }
  0x16   :  { %110 = vmatpush.msra.mxu1 %v74_v14 }
  0x18   :  { %111 = vmatpush.msra.mxu1 %v73_v15 }
  0x64   :  { %v319_v37 = vpop.permute.xlu2 %318 }
  0x82   :  { %v65_v17 = vpop.f32.mrf.mxu0 }
  0x83   :  { %v66_v18 = vadd.f32 %v2354_v16, %v65_v17 }
  0x85   :  { %v71_v19 = vmax.f32 %v66_v18, 0.0  ;;  %v2432_v18 = vmov 1983009808  }
  0x87   :  { %2273 = vmatmul.msk.f32.vlgmr.msra.gmra.mxu1 %vm89_vm2, %v71_v19  ;;  %v221_v19 = vunpack.c.l.s4 %v2432_v18 }
  0x8a   :  { %v68_v20 = vpop.f32.mrf.mxu0 }
  0x8b   :  { %v69_v21 = vadd.f32 %v2354_v16, %v68_v20 }
  0x8d   :  { %v72_v22 = vmax.f32 %v69_v21, 0.0  ;;  %v2617_v21 = vunpack.c.0.s8 %v221_v19 }
  0x8f   :  { %2274 = vmatmul.msk.f32.gmra.mxu1 %vm89_vm2, %v72_v22  ;;  %vm439_vm2 = vcmp.eq.s32.totalorder %v2585_v39, 1 }
 0x104   :  { %v113_v24 = vpop.f32.mrf.mxu1 }
 0x105   :  { %v114_v25 = vadd.f32 %v2355_v23, %v113_v24 }
 0x107   :  { %v119_v27 = vmul.f32 0.05, %v114_v25 }
 0x109   :  { %v123_v28 = vmul.f32 %v121_v26, %v119_v27 }
 0x10b   :  { %v2562_v29 = vadd.f32 %v123_v28, %v114_v25 }
 0x10c   :  { %v116_v30 = vpop.f32.mrf.mxu1 }
 0x10d   :  { %v117_v31 = vadd.f32 %v2355_v23, %v116_v30  ;;  %836 = vrot.lane.b32.xlu0 %v2562_v29, %s2428_s2  ;;  %2275 = vmatpush.xpose.msk.msra.mxu2 %vm133_vm3, %v2562_v29 }
 0x10f   :  { %v120_v33 = vmul.f32 0.05, %v117_v31 }
 0x110   :  { %2276 = vmatmul.msk.f32.vlgmr.msra.gmra.mxu2 %vm133_vm3, %v2562_v29 }
 0x111   :  { %v124_v34 = vmul.f32 %v122_v32, %v120_v33 }
 0x113   :  { %v2573_v35 = vadd.f32 %v124_v34, %v117_v31 }
 0x115   :  { %2277 = vmatpush.xpose.msk.msra.mxu3 %vm133_vm3, %v2573_v35 }
 0x118   :  { %2278 = vmatmul.msk.f32.vlgmr.msra.gmra.mxu3 %vm133_vm3, %v2573_v35 }
 0x17f   :  { %v837_v36 = vpop.permute.xlu0 %836 }
 0x180   :  { %2283 = vmatpush.xpose.msk.msrb.mxu0 %vm133_vm3, %v837_v36 }
 0x183   :  { %2284 = vmatmul.msk.f32.vlgmr.msrb.gmra.mxu0 %vm133_vm3, %v837_v36  ;;  %v2433_v36 = vmov 0  }
 0x184   :  { %2325 = vset.pattern.permute.xlu2 %v2433_v36  ;;  %2324 = vset.pattern.permute.xlu1 %v2433_v36 }
 0x185   :  { %2326 = vset.pattern.permute.xlu0 %v2433_v36 }
 0x193   :  { %v154_v42 = vpop.f32.mrf.mxu2 }
 0x194   :  { %v182_v43 = vsel %vm2588_vm4, %v154_v42, 0.0  ;;  %v205_v63 = vmul.f32 2.0, %v154_v42 }
 0x195   :  { %v185_v44 = vsel %vm184_vm5, %v182_v43, 0.0 }
 0x196   :  { %186 = vadd.xlane.f32.xlu1 %v185_v44  ;;  %v191_v49 = vrot.slane %v185_v44, 4 }
 0x198   :  { %v192_v50 = vadd.f32 %v191_v49, %v185_v44 }
 0x19a   :  { %v193_v51 = vrot.slane %v192_v50, 2 }
 0x19b   :  { %v177_v45 = vpop.f32.mrf.mxu3 }
 0x19c   :  { %v183_v46 = vsel %vm2588_vm4, %v177_v45, 0.0  ;;  %v194_v55 = vadd.f32 %v193_v51, %v192_v50  ;;  %v206_v7 = vmul.f32 2.0, %v177_v45  ;;  %v1012_v45 = vpop.permute.xlu2 %1011 }
 0x19d   :  { %v188_v47 = vsel %vm184_vm5, %v183_v46, 0.0 }
 0x19e   :  { %189 = vadd.xlane.f32.xlu0 %v188_v47  ;;  %v197_v52 = vrot.slane %v188_v47, 4  ;;  %v195_v59 = vrot.slane %v194_v55, 1 }
 0x1a0   :  { %v198_v53 = vadd.f32 %v197_v52, %v188_v47  ;;  %v196_v60 = vadd.f32 %v195_v59, %v194_v55 }
 0x1a2   :  { %v199_v58 = vrot.slane %v198_v53, 2 }
 0x1a4   :  { %v200_v61 = vadd.f32 %v199_v58, %v198_v53  ;;  %v2434_v53 = vmov 0.0  }
 0x1a5   :  { %v2648_v55 = vsel %vm2588_vm4, 1e-06, %v2434_v53 }
 0x1a6   :  { %v201_v2 = vrot.slane %v200_v61, 1 }
 0x1a8   :  { %v202_v5 = vadd.f32 %v201_v2, %v200_v61 }
 0x200   :  { %v857_v54 = vpop.f32.mrf.mxu0 }
 0x201   :  { %v884_v56 = vsel %vm2588_vm4, %v857_v54, 0.0  ;;  %v906_v43 = vmul.f32 2.0, %v857_v54 }
 0x202   :  { %v886_v57 = vsel %vm184_vm5, %v884_v56, 0.0 }
 0x203   :  { %887 = vadd.xlane.f32.xlu1 %v886_v57  ;;  %v892_v31 = vrot.slane %v886_v57, 4 }
 0x205   :  { %v893_v32 = vadd.f32 %v892_v31, %v886_v57 }
 0x207   :  { %v894_v33 = vrot.slane %v893_v32, 2 }
 0x209   :  { %v187_v62 = vpop.xlane.xlu1 %186  ;;  %v895_v34 = vadd.f32 %v894_v33, %v893_v32 }
 0x20a   :  { %v203_v0 = vadd.f32 %v196_v60, %v187_v62 }
 0x20b   :  { %v896_v38 = vrot.slane %v895_v34, 1 }
 0x20c   :  { %v207_v1 = vsub.f32 %v203_v0, %v205_v63 }
 0x20d   :  { %v897_v40 = vadd.f32 %v896_v38, %v895_v34 }
 0x20e   :  { %v209_v3 = vmax.f32 %v207_v1, 0.0 }
 0x210   :  { %v211_v4 = vmul.f32 -0.5, %v209_v3 }
 0x211   :  { %v190_v6 = vpop.xlane.xlu0 %189 }
 0x212   :  { %v213_v8 = vmul.f32 1.442695, %v211_v4  ;;  %v204_v9 = vadd.f32 %v202_v5, %v190_v6 }
 0x214   :  { %2356 = vpow2.f32 %v213_v8  ;;  %v208_v10 = vsub.f32 %v204_v9, %v206_v7  ;;  %v2435_v7 = vmov 1  }
 0x216   :  { %v210_v11 = vmax.f32 %v208_v10, 0.0 }
 0x218   :  { %v212_v12 = vmul.f32 -0.5, %v210_v11 }
 0x21a   :  { %v2608_v14 = vpop.eup %2356  ;;  %v215_v15 = vmul.f32 1.442695, %v212_v12 }
 0x21b   :  { %324 = vrot.lane.b32.xlu2 %v2608_v14, %s2431_s30  ;;  %v687_v16 = vrot.slane %v2608_v14, 5  ;;  %v217_v17 = vrot.slane %v2608_v14, 4  ;;  %v310_v57 = vadd.f32 %v2608_v14, %v2648_v55 }
 0x21c   :  { %2358 = vpow2.f32 %v215_v15  ;;  %316 = vrot.lane.b32.xlu1 %v312_v13, %s2429_s5 }
 0x21d   :  { %2279 = vmatpush.xpose.msk.msrb.mxu2 %vm3369_vm6, %v687_v16  ;;  %v219_v20 = vsel %vm218_vm7, 0.0, %v217_v17 }
 0x21e   :  { %v2622_v23 = vperm.slane %v219_v20, %v2617_v21 }
 0x220   :  { %v252_v28 = vrot.slane %v2622_v23, 4 }
 0x222   :  { %v2619_v22 = vpop.eup %2358 }
 0x223   :  { %326 = vrot.lane.b32.xlu2 %v2619_v22, %s2431_s30  ;;  %v749_v24 = vrot.slane %v2619_v22, 5  ;;  %v228_v25 = vrot.slane %v2619_v22, 4  ;;  %v311_v54 = vadd.f32 %v2619_v22, %v2648_v55 }
 0x225   :  { %2281 = vmatpush.xpose.msk.msrb.mxu3 %vm3369_vm6, %v749_v24  ;;  %v229_v26 = vsel %vm218_vm7, 0.0, %v228_v25  ;;  %v332_v58 = vsel %vm3369_vm6, %v311_v54, %v319_v37 }
 0x226   :  { %v2631_v27 = vperm.slane %v229_v26, %v2617_v21 }
 0x228   :  { %v2636_v30 = vsel %vm218_vm7, %v2631_v27, %v252_v28 }
 0x275   :  { %v325_v50 = vpop.permute.xlu2 %324 }
 0x276   :  { %v888_v42 = vpop.xlane.xlu1 %887 }
 0x277   :  { %v904_v44 = vadd.f32 %v897_v40, %v888_v42 }
 0x279   :  { %v908_v46 = vsub.f32 %v904_v44, %v906_v43 }
 0x27b   :  { %v910_v47 = vmax.f32 %v908_v46, 0.0 }
 0x27d   :  { %v912_v48 = vmul.f32 -0.5, %v910_v47  ;;  %v327_v56 = vpop.permute.xlu2 %326 }
 0x27e   :  { %v335_v60 = vsel %vm3368_vm8, %v332_v58, %v327_v56 }
 0x27f   :  { %v914_v49 = vmul.f32 1.442695, %v912_v48  ;;  %v380_v0 = vsel %vm376_vm9, 0.0, %v335_v60 }
 0x281   :  { %2360 = vpow2.f32 %v914_v49 }
 0x287   :  { %v2641_v51 = vpop.eup %2360 }
 0x288   :  { %1019 = vrot.lane.b32.xlu2 %v2641_v51, %s2431_s30  ;;  %v1365_v52 = vrot.slane %v2641_v51, 5  ;;  %v1005_v1 = vadd.f32 %v2641_v51, %v2648_v55 }
 0x28a   :  { %2287 = vmatpush.xpose.msk.msra.mxu3 %vm3369_vm6, %v1365_v52  ;;  %v1025_v2 = vsel %vm3369_vm6, %v1005_v1, %v1012_v45 }
 0x28e   :  { %v317_v59 = vpop.permute.xlu1 %316 }
 0x28f   :  { %v331_v61 = vsel %vm3369_vm6, %v310_v57, %v317_v59 }
 0x290   :  { %343 = vperm.xlu2 %2325, %v335_v60   ;;  %v2659_v62 = vsel %vm3368_vm8, %v331_v61, %v325_v50 }
 0x291   :  { %338 = vperm.xlu1 %2324, %v2659_v62   ;;  %v379_v63 = vsel %vm376_vm9, 0.0, %v2659_v62 }
 0x292   :  { %383 = vperm.xlu0 %2326, %v379_v63  }
 0x299   :  { %388 = vperm.xlu1 %2324, %v380_v0  }
 0x2a1   :  { %2328 = vset.pattern.permute.xlu1 %v2435_v7 }
 0x2e2   :  { %v1020_v3 = vpop.permute.xlu2 %1019 }
 0x2e3   :  { %v2672_v4 = vsel %vm3368_vm8, %v1025_v2, %v1020_v3 }
 0x2e4   :  { %1031 = vperm.xlu2 %2325, %v2672_v4   ;;  %v1069_v6 = vsel %vm376_vm9, 0.0, %v2672_v4 }
 0x2ea   :  { %v344_v5 = vpop.permute.xlu2 %343 }
 0x2eb   :  { %2362 = vrcp.f32 %v344_v5  ;;  %v372_v13 = vand.u32 2147483648, %v344_v5  ;;  %vm366_vm11 = vweird.f32 %v344_v5  ;;  %v370_v15 = vand.u32 2147483647, %v344_v5 }
 0x2ec   :  { %1073 = vperm.xlu2 %2325, %v1069_v6  }
 0x2ed   :  { %v373_v17 = vor.u32 1.1754944e-38, %v372_v13  ;;  %vm371_vm13 = vcmp.eq.f32.partialorder %v370_v15, 8.507059e+37 }
 0x2f1   :  { %v2363_v8 = vpop.eup %2362 }
 0x2f2   :  { %v362_v9 = vmul.f32 %v2363_v8, %v344_v5  ;;  %vm367_vm10 = vweird.f32 %v2363_v8 }
 0x2f3   :  { %vm368_vm12 = vmor %vm366_vm11, %vm367_vm10 }
 0x2f4   :  { %v363_v10 = vsub.f32 1.0, %v362_v9  ;;  %2327 = vset.pattern.permute.xlu2 %v2435_v7 }
 0x2f6   :  { %v364_v11 = vmul.f32 %v2363_v8, %v363_v10 }
 0x2f8   :  { %v365_v12 = vadd.f32 %v2363_v8, %v364_v11 }
 0x2fa   :  { %v369_v16 = vsel %vm368_vm12, %v2363_v8, %v365_v12  ;;  %v2436_v12 = vmov 2  }
 0x2fb   :  { %v374_v19 = vsel %vm371_vm13, %v373_v17, %v369_v16  ;;  %2331 = vset.pattern.permute.xlu0 %v2436_v12 }
 0x2fc   :  { %v375_v20 = vmul.f32 %v374_v19, %v335_v60 }
 0x2fe   :  { %v392_v25 = vperm.slane %v375_v20, 0 }
 0x303   :  { %v339_v18 = vpop.permute.xlu1 %338 }
 0x304   :  { %2364 = vrcp.f32 %v339_v18  ;;  %v357_v33 = vand.u32 2147483648, %v339_v18  ;;  %v355_v38 = vand.u32 2147483647, %v339_v18  ;;  %vm351_vm15 = vweird.f32 %v339_v18  ;;  %v384_v48 = vpop.permute.xlu0 %383 }
 0x306   :  { %v358_v43 = vor.u32 1.1754944e-38, %v357_v33  ;;  %vm356_vm1 = vcmp.eq.f32.partialorder %v355_v38, 8.507059e+37 }
 0x30a   :  { %v2365_v24 = vpop.eup %2364 }
 0x30b   :  { %v347_v26 = vmul.f32 %v2365_v24, %v339_v18  ;;  %v389_v28 = vpop.permute.xlu1 %388  ;;  %vm352_vm14 = vweird.f32 %v2365_v24 }
 0x30c   :  { %v394_v31 = vmul.f32 %v392_v25, %v389_v28  ;;  %vm353_vm0 = vmor %vm351_vm15, %vm352_vm14 }
 0x30d   :  { %v348_v32 = vsub.f32 1.0, %v347_v26 }
 0x30e   :  { %v396_v34 = vsub.f32 %v335_v60, %v394_v31 }
 0x30f   :  { %v349_v37 = vmul.f32 %v2365_v24, %v348_v32 }
 0x310   :  { %v2682_v40 = vsel %vm376_vm9, %v392_v25, %v396_v34 }
 0x311   :  { %v350_v42 = vadd.f32 %v2365_v24, %v349_v37  ;;  %406 = vperm.xlu1 %2328, %v2682_v40   ;;  %v443_v53 = vsel %vm439_vm2, 0.0, %v2682_v40 }
 0x313   :  { %v354_v44 = vsel %vm353_vm0, %v2365_v24, %v350_v42 }
 0x314   :  { %v359_v45 = vsel %vm356_vm1, %v358_v43, %v354_v44 }
 0x315   :  { %v360_v46 = vmul.f32 %v359_v45, %v2659_v62 }
 0x317   :  { %v391_v47 = vperm.slane %v360_v46, 0 }
 0x319   :  { %v393_v49 = vmul.f32 %v391_v47, %v384_v48 }
 0x31b   :  { %v395_v50 = vsub.f32 %v2659_v62, %v393_v49 }
 0x31d   :  { %v2689_v52 = vsel %vm376_vm9, %v391_v47, %v395_v50 }
 0x31e   :  { %401 = vperm.xlu2 %2327, %v2689_v52   ;;  %v442_v11 = vsel %vm439_vm2, 0.0, %v2689_v52 }
 0x326   :  { %451 = vperm.xlu2 %2327, %v443_v53  }
 0x33e   :  { %v1032_v54 = vpop.permute.xlu2 %1031 }
 0x33f   :  { %2366 = vrcp.f32 %v1032_v54  ;;  %v1050_v59 = vand.u32 2147483648, %v1032_v54  ;;  %v1048_v61 = vand.u32 2147483647, %v1032_v54  ;;  %vm1044_vm11 = vweird.f32 %v1032_v54 }
 0x341   :  { %v1051_v63 = vor.u32 1.1754944e-38, %v1050_v59  ;;  %vm1049_vm13 = vcmp.eq.f32.partialorder %v1048_v61, 8.507059e+37 }
 0x345   :  { %v2367_v56 = vpop.eup %2366 }
 0x346   :  { %v1040_v57 = vmul.f32 %v2367_v56, %v1032_v54  ;;  %vm1045_vm10 = vweird.f32 %v2367_v56  ;;  %v1074_v5 = vpop.permute.xlu2 %1073 }
 0x347   :  { %vm1046_vm12 = vmor %vm1044_vm11, %vm1045_vm10  ;;  %vm502_vm10 = vcmp.eq.s32.totalorder %v2585_v39, 2 }
 0x348   :  { %v1041_v58 = vsub.f32 1.0, %v1040_v57 }
 0x34a   :  { %v1042_v60 = vmul.f32 %v2367_v56, %v1041_v58 }
 0x34c   :  { %v1043_v62 = vadd.f32 %v2367_v56, %v1042_v60 }
 0x34e   :  { %v1047_v0 = vsel %vm1046_vm12, %v2367_v56, %v1043_v62 }
 0x34f   :  { %v1052_v1 = vsel %vm1049_vm13, %v1051_v63, %v1047_v0 }
 0x350   :  { %v1053_v2 = vmul.f32 %v1052_v1, %v2672_v4 }
 0x352   :  { %v1081_v3 = vperm.slane %v1053_v2, 0 }
 0x354   :  { %v1083_v6 = vmul.f32 %v1081_v3, %v1074_v5 }
 0x356   :  { %v1085_v8 = vsub.f32 %v2672_v4, %v1083_v6 }
 0x358   :  { %v2700_v9 = vsel %vm376_vm9, %v1081_v3, %v1085_v8 }
 0x359   :  { %1091 = vperm.xlu1 %2328, %v2700_v9   ;;  %v1129_v10 = vsel %vm439_vm2, 0.0, %v2700_v9 }
 0x35a   :  { %1133 = vperm.xlu2 %2327, %v1129_v10  }
 0x361   :  { %446 = vperm.xlu1 %2328, %v442_v11  }
 0x362   :  { %2329 = vset.pattern.permute.xlu2 %v2436_v12 }
 0x369   :  { %2330 = vset.pattern.permute.xlu1 %v2436_v12 }
 0x378   :  { %v402_v17 = vpop.permute.xlu2 %401 }
 0x379   :  { %vm414_vm12 = vweird.f32 %v402_v17  ;;  %v418_v48 = vand.u32 2147483647, %v402_v17 }
 0x380   :  { %v452_v33 = vpop.permute.xlu2 %451 }
 0x383   :  { %v407_v4 = vpop.permute.xlu1 %406 }
 0x384   :  { %2368 = vrcp.f32 %v407_v4  ;;  %v435_v18 = vand.u32 2147483648, %v407_v4  ;;  %v433_v20 = vand.u32 2147483647, %v407_v4  ;;  %vm429_vm15 = vweird.f32 %v407_v4 }
 0x385   :  { %2370 = vrcp.f32 %v402_v17 }
 0x386   :  { %v436_v25 = vor.u32 1.1754944e-38, %v435_v18  ;;  %vm434_vm1 = vcmp.eq.f32.partialorder %v433_v20, 8.507059e+37 }
 0x38a   :  { %v2369_v13 = vpop.eup %2368 }
 0x38b   :  { %v425_v15 = vmul.f32 %v2369_v13, %v407_v4  ;;  %vm430_vm14 = vweird.f32 %v2369_v13  ;;  %v2371_v43 = vpop.eup %2370 }
 0x38c   :  { %vm431_vm0 = vmor %vm429_vm15, %vm430_vm14  ;;  %v410_v44 = vmul.f32 %v2371_v43, %v402_v17  ;;  %vm415_vm11 = vweird.f32 %v2371_v43  ;;  %vm419_vm14 = vcmp.eq.f32.partialorder %v418_v48, 8.507059e+37 }
 0x38d   :  { %v426_v16 = vsub.f32 1.0, %v425_v15  ;;  %vm416_vm13 = vmor %vm414_vm12, %vm415_vm11 }
 0x38e   :  { %v411_v45 = vsub.f32 1.0, %v410_v44 }
 0x38f   :  { %v427_v19 = vmul.f32 %v2369_v13, %v426_v16 }
 0x390   :  { %v412_v46 = vmul.f32 %v2371_v43, %v411_v45 }
 0x391   :  { %v428_v24 = vadd.f32 %v2369_v13, %v427_v19  ;;  %v2437_v19 = vmov 3  }
 0x392   :  { %v413_v47 = vadd.f32 %v2371_v43, %v412_v46 }
 0x393   :  { %v432_v26 = vsel %vm431_vm0, %v2369_v13, %v428_v24 }
 0x394   :  { %v437_v28 = vsel %vm434_vm1, %v436_v25, %v432_v26  ;;  %v417_v49 = vsel %vm416_vm13, %v2371_v43, %v413_v47 }
 0x395   :  { %v438_v31 = vmul.f32 %v437_v28, %v2682_v40 }
 0x397   :  { %v455_v32 = vperm.slane %v438_v31, 1 }
 0x399   :  { %v457_v34 = vmul.f32 %v455_v32, %v452_v33 }
 0x39b   :  { %v459_v37 = vsub.f32 %v2682_v40, %v457_v34  ;;  %v420_v40 = vand.u32 2147483648, %v402_v17 }
 0x39d   :  { %v2717_v38 = vsel %vm439_vm2, %v455_v32, %v459_v37  ;;  %v421_v50 = vor.u32 1.1754944e-38, %v420_v40 }
 0x39e   :  { %469 = vperm.xlu1 %2330, %v2717_v38   ;;  %v506_v42 = vsel %vm502_vm10, 0.0, %v2717_v38 }
 0x39f   :  { %514 = vperm.xlu0 %2331, %v506_v42   ;;  %v422_v54 = vsel %vm419_vm14, %v421_v50, %v417_v49 }
 0x3a0   :  { %v423_v56 = vmul.f32 %v422_v54, %v2689_v52 }
 0x3a2   :  { %v454_v58 = vperm.slane %v423_v56, 1 }
 0x3a7   :  { %2334 = vset.pattern.permute.xlu0 %v2437_v19 }
 0x3cb   :  { %v1092_v53 = vpop.permute.xlu1 %1091 }
 0x3cc   :  { %2372 = vrcp.f32 %v1092_v53  ;;  %v1110_v63 = vand.u32 2147483648, %v1092_v53  ;;  %v1108_v2 = vand.u32 2147483647, %v1092_v53  ;;  %vm1104_vm0 = vweird.f32 %v1092_v53 }
 0x3ce   :  { %v1111_v6 = vor.u32 1.1754944e-38, %v1110_v63  ;;  %vm1109_vm11 = vcmp.eq.f32.partialorder %v1108_v2, 8.507059e+37 }
 0x3d2   :  { %v2373_v57 = vpop.eup %2372 }
 0x3d3   :  { %v1100_v59 = vmul.f32 %v2373_v57, %v1092_v53  ;;  %v447_v60 = vpop.permute.xlu1 %446  ;;  %vm1105_vm15 = vweird.f32 %v2373_v57 }
 0x3d4   :  { %v456_v61 = vmul.f32 %v454_v58, %v447_v60  ;;  %vm1106_vm1 = vmor %vm1104_vm0, %vm1105_vm15  ;;  %vm565_vm0 = vcmp.eq.s32.totalorder %v2585_v39, 3 }
 0x3d5   :  { %v1101_v62 = vsub.f32 1.0, %v1100_v59 }
 0x3d6   :  { %v458_v0 = vsub.f32 %v2689_v52, %v456_v61  ;;  %v1134_v52 = vpop.permute.xlu2 %1133 }
 0x3d7   :  { %v1102_v1 = vmul.f32 %v2373_v57, %v1101_v62 }
 0x3d8   :  { %v2727_v3 = vsel %vm439_vm2, %v454_v58, %v458_v0 }
 0x3d9   :  { %464 = vperm.xlu2 %2329, %v2727_v3   ;;  %v1103_v5 = vadd.f32 %v2373_v57, %v1102_v1  ;;  %v505_v13 = vsel %vm502_vm10, 0.0, %v2727_v3 }
 0x3db   :  { %v1107_v8 = vsel %vm1106_vm1, %v2373_v57, %v1103_v5 }
 0x3dc   :  { %v1112_v10 = vsel %vm1109_vm11, %v1111_v6, %v1107_v8 }
 0x3dd   :  { %v1113_v11 = vmul.f32 %v1112_v10, %v2700_v9 }
 0x3df   :  { %v1141_v4 = vperm.slane %v1113_v11, 1 }
 0x3e1   :  { %509 = vperm.xlu2 %2329, %v505_v13   ;;  %v1143_v15 = vmul.f32 %v1141_v4, %v1134_v52 }
 0x3e3   :  { %v1145_v16 = vsub.f32 %v2700_v9, %v1143_v15 }
 0x3e5   :  { %v2737_v17 = vsel %vm439_vm2, %v1141_v4, %v1145_v16 }
 0x3e6   :  { %1151 = vperm.xlu1 %2330, %v2737_v17   ;;  %v1189_v18 = vsel %vm502_vm10, 0.0, %v2737_v17 }
 0x3e9   :  { %2332 = vset.pattern.permute.xlu2 %v2437_v19 }
 0x3ee   :  { %1193 = vperm.xlu1 %2330, %v1189_v18  }
 0x3f6   :  { %2333 = vset.pattern.permute.xlu1 %v2437_v19 }
 0x410   :  { %v470_v20 = vpop.permute.xlu1 %469 }
 0x411   :  { %2374 = vrcp.f32 %v470_v20  ;;  %v498_v26 = vand.u32 2147483648, %v470_v20  ;;  %v496_v31 = vand.u32 2147483647, %v470_v20  ;;  %vm492_vm13 = vweird.f32 %v470_v20  ;;  %v515_v44 = vpop.permute.xlu0 %514 }
 0x413   :  { %v499_v33 = vor.u32 1.1754944e-38, %v498_v26  ;;  %vm497_vm15 = vcmp.eq.f32.partialorder %v496_v31, 8.507059e+37 }
 0x417   :  { %v2375_v9 = vpop.eup %2374 }
 0x418   :  { %v488_v24 = vmul.f32 %v2375_v9, %v470_v20  ;;  %vm493_vm12 = vweird.f32 %v2375_v9 }
 0x419   :  { %vm494_vm14 = vmor %vm492_vm13, %vm493_vm12 }
 0x41a   :  { %v489_v25 = vsub.f32 1.0, %v488_v24 }
 0x41c   :  { %v490_v28 = vmul.f32 %v2375_v9, %v489_v25 }
 0x41e   :  { %v491_v32 = vadd.f32 %v2375_v9, %v490_v28 }
 0x420   :  { %v495_v34 = vsel %vm494_vm14, %v2375_v9, %v491_v32  ;;  %v2438_v32 = vmov 4  }
 0x421   :  { %v500_v37 = vsel %vm497_vm15, %v499_v33, %v495_v34 }
 0x422   :  { %v501_v42 = vmul.f32 %v500_v37, %v2717_v38 }
 0x424   :  { %v518_v43 = vperm.slane %v501_v42, 2 }
 0x426   :  { %v520_v45 = vmul.f32 %v518_v43, %v515_v44 }
 0x428   :  { %v522_v46 = vsub.f32 %v2717_v38, %v520_v45 }
 0x42a   :  { %v2750_v47 = vsel %vm502_vm10, %v518_v43, %v522_v46 }
 0x42b   :  { %532 = vperm.xlu2 %2332, %v2750_v47   ;;  %v569_v40 = vsel %vm565_vm0, 0.0, %v2750_v47 }
 0x433   :  { %v465_v48 = vpop.permute.xlu2 %464  ;;  %577 = vperm.xlu2 %2332, %v569_v40  }
 0x434   :  { %2376 = vrcp.f32 %v465_v48  ;;  %v483_v54 = vand.u32 2147483648, %v465_v48  ;;  %v481_v56 = vand.u32 2147483647, %v465_v48  ;;  %vm477_vm11 = vweird.f32 %v465_v48 }
 0x436   :  { %v484_v58 = vor.u32 1.1754944e-38, %v483_v54  ;;  %vm482_vm13 = vcmp.eq.f32.partialorder %v481_v56, 8.507059e+37 }
 0x43a   :  { %v2377_v49 = vpop.eup %2376 }
 0x43b   :  { %v473_v50 = vmul.f32 %v2377_v49, %v465_v48  ;;  %vm478_vm1 = vweird.f32 %v2377_v49  ;;  %v510_v63 = vpop.permute.xlu2 %509 }
 0x43c   :  { %vm479_vm12 = vmor %vm477_vm11, %vm478_vm1 }
 0x43d   :  { %v474_v53 = vsub.f32 1.0, %v473_v50 }
 0x43f   :  { %v475_v38 = vmul.f32 %v2377_v49, %v474_v53 }
 0x441   :  { %v476_v57 = vadd.f32 %v2377_v49, %v475_v38 }
 0x443   :  { %v480_v59 = vsel %vm479_vm12, %v2377_v49, %v476_v57 }
 0x444   :  { %v485_v60 = vsel %vm482_vm13, %v484_v58, %v480_v59 }
 0x445   :  { %v486_v61 = vmul.f32 %v485_v60, %v2727_v3 }
 0x447   :  { %v517_v62 = vperm.slane %v486_v61, 2 }
 0x449   :  { %v519_v0 = vmul.f32 %v517_v62, %v510_v63 }
 0x44b   :  { %v521_v1 = vsub.f32 %v2727_v3, %v519_v0 }
 0x44d   :  { %v2761_v2 = vsel %vm502_vm10, %v517_v62, %v521_v1 }
 0x44e   :  { %527 = vperm.xlu1 %2333, %v2761_v2   ;;  %v568_v5 = vsel %vm565_vm0, 0.0, %v2761_v2 }
 0x456   :  { %572 = vperm.xlu1 %2333, %v568_v5  }
 0x458   :  { %v1152_v6 = vpop.permute.xlu1 %1151 }
 0x459   :  { %2378 = vrcp.f32 %v1152_v6  ;;  %v1170_v4 = vand.u32 2147483648, %v1152_v6  ;;  %v1168_v3 = vand.u32 2147483647, %v1152_v6  ;;  %vm1164_vm15 = vweird.f32 %v1152_v6 }
 0x45b   :  { %v1171_v15 = vor.u32 1.1754944e-38, %v1170_v4  ;;  %vm1169_vm11 = vcmp.eq.f32.partialorder %v1168_v3, 8.507059e+37 }
 0x45e   :  { %2335 = vset.pattern.permute.xlu1 %v2438_v32 }
 0x45f   :  { %v2379_v8 = vpop.eup %2378 }
 0x460   :  { %v1160_v10 = vmul.f32 %v2379_v8, %v1152_v6  ;;  %vm1165_vm14 = vweird.f32 %v2379_v8  ;;  %v1194_v24 = vpop.permute.xlu1 %1193 }
 0x461   :  { %vm1166_vm1 = vmor %vm1164_vm15, %vm1165_vm14 }
 0x462   :  { %v1161_v11 = vsub.f32 1.0, %v1160_v10 }
 0x464   :  { %v1162_v52 = vmul.f32 %v2379_v8, %v1161_v11 }
 0x466   :  { %v1163_v13 = vadd.f32 %v2379_v8, %v1162_v52 }
 0x468   :  { %v1167_v16 = vsel %vm1166_vm1, %v2379_v8, %v1163_v13  ;;  %vm3371_vm1 = vcmp.eq.s32.totalorder %v2585_v39, 4 }
 0x469   :  { %v1172_v18 = vsel %vm1169_vm11, %v1171_v15, %v1167_v16 }
 0x46a   :  { %v1173_v20 = vmul.f32 %v1172_v18, %v2737_v17 }
 0x46c   :  { %v1201_v9 = vperm.slane %v1173_v20, 2 }
 0x46e   :  { %v1203_v25 = vmul.f32 %v1201_v9, %v1194_v24 }
 0x470   :  { %v1205_v26 = vsub.f32 %v2737_v17, %v1203_v25 }
 0x472   :  { %v2771_v28 = vsel %vm502_vm10, %v1201_v9, %v1205_v26 }
 0x473   :  { %1211 = vperm.xlu0 %2334, %v2771_v28   ;;  %v1249_v31 = vsel %vm565_vm0, 0.0, %v2771_v28 }
 0x474   :  { %1253 = vperm.xlu2 %2332, %v1249_v31  }
 0x47b   :  { %2336 = vset.pattern.permute.xlu0 %v2438_v32 }
 0x47c   :  { %2337 = vset.pattern.permute.xlu2 %v2438_v32 }
 0x485   :  { %v533_v33 = vpop.permute.xlu2 %532 }
 0x486   :  { %2380 = vrcp.f32 %v533_v33  ;;  %v561_v42 = vand.u32 2147483648, %v533_v33  ;;  %v559_v44 = vand.u32 2147483647, %v533_v33  ;;  %vm555_vm13 = vweird.f32 %v533_v33 }
 0x488   :  { %v562_v46 = vor.u32 1.1754944e-38, %v561_v42  ;;  %vm560_vm15 = vcmp.eq.f32.partialorder %v559_v44, 8.507059e+37 }
 0x48c   :  { %v2381_v17 = vpop.eup %2380 }
 0x48d   :  { %v551_v34 = vmul.f32 %v2381_v17, %v533_v33  ;;  %vm556_vm12 = vweird.f32 %v2381_v17  ;;  %v578_v53 = vpop.permute.xlu2 %577 }
 0x48e   :  { %vm557_vm14 = vmor %vm555_vm13, %vm556_vm12 }
 0x48f   :  { %v552_v37 = vsub.f32 1.0, %v551_v34 }
 0x491   :  { %v553_v43 = vmul.f32 %v2381_v17, %v552_v37 }
 0x493   :  { %v554_v45 = vadd.f32 %v2381_v17, %v553_v43 }
 0x495   :  { %v558_v40 = vsel %vm557_vm14, %v2381_v17, %v554_v45 }
 0x496   :  { %v563_v48 = vsel %vm560_vm15, %v562_v46, %v558_v40 }
 0x497   :  { %v564_v49 = vmul.f32 %v563_v48, %v2750_v47 }
 0x499   :  { %v581_v50 = vperm.slane %v564_v49, 3 }
 0x49b   :  { %v583_v54 = vmul.f32 %v581_v50, %v578_v53 }
 0x49d   :  { %v585_v38 = vsub.f32 %v2750_v47, %v583_v54 }
 0x49f   :  { %v2784_v56 = vsel %vm565_vm0, %v581_v50, %v585_v38 }
 0x4a0   :  { %595 = vperm.xlu1 %2335, %v2784_v56   ;;  %v632_v57 = vsel %vm3371_vm1, 0.0, %v2784_v56 }
 0x4a8   :  { %640 = vperm.xlu1 %2335, %v632_v57  }
 0x4c0   :  { %v528_v58 = vpop.permute.xlu1 %527 }
 0x4c1   :  { %2382 = vrcp.f32 %v528_v58  ;;  %v546_v62 = vand.u32 2147483648, %v528_v58  ;;  %v544_v63 = vand.u32 2147483647, %v528_v58  ;;  %vm540_vm12 = vweird.f32 %v528_v58 }
 0x4c3   :  { %v547_v1 = vor.u32 1.1754944e-38, %v546_v62  ;;  %vm545_vm14 = vcmp.eq.f32.partialorder %v544_v63, 8.507059e+37 }
 0x4c7   :  { %v2383_v59 = vpop.eup %2382 }
 0x4c8   :  { %v536_v60 = vmul.f32 %v2383_v59, %v528_v58  ;;  %vm541_vm11 = vweird.f32 %v2383_v59  ;;  %v573_v11 = vpop.permute.xlu1 %572 }
 0x4c9   :  { %vm542_vm13 = vmor %vm540_vm12, %vm541_vm11 }
 0x4ca   :  { %v537_v61 = vsub.f32 1.0, %v536_v60 }
 0x4cc   :  { %v538_v47 = vmul.f32 %v2383_v59, %v537_v61 }
 0x4ce   :  { %v539_v0 = vadd.f32 %v2383_v59, %v538_v47  ;;  %v1254_v34 = vpop.permute.xlu2 %1253 }
 0x4d0   :  { %v543_v5 = vsel %vm542_vm13, %v2383_v59, %v539_v0 }
 0x4d1   :  { %v548_v6 = vsel %vm545_vm14, %v547_v1, %v543_v5 }
 0x4d2   :  { %v549_v8 = vmul.f32 %v548_v6, %v2761_v2 }
 0x4d4   :  { %v580_v10 = vperm.slane %v549_v8, 3 }
 0x4d6   :  { %v582_v4 = vmul.f32 %v580_v10, %v573_v11 }
 0x4d8   :  { %v584_v52 = vsub.f32 %v2761_v2, %v582_v4 }
 0x4da   :  { %v2795_v3 = vsel %vm565_vm0, %v580_v10, %v584_v52 }
 0x4db   :  { %590 = vperm.xlu0 %2336, %v2795_v3   ;;  %v631_v45 = vsel %vm3371_vm1, 0.0, %v2795_v3 }
 0x4e5   :  { %v1212_v13 = vpop.permute.xlu0 %1211 }
 0x4e6   :  { %2384 = vrcp.f32 %v1212_v13  ;;  %v1230_v20 = vand.u32 2147483648, %v1212_v13  ;;  %v1228_v24 = vand.u32 2147483647, %v1212_v13  ;;  %vm1224_vm11 = vweird.f32 %v1212_v13 }
 0x4e8   :  { %v1231_v26 = vor.u32 1.1754944e-38, %v1230_v20  ;;  %vm1229_vm13 = vcmp.eq.f32.partialorder %v1228_v24, 8.507059e+37 }
 0x4ec   :  { %v2385_v15 = vpop.eup %2384 }
 0x4ed   :  { %v1220_v16 = vmul.f32 %v2385_v15, %v1212_v13  ;;  %vm1225_vm15 = vweird.f32 %v2385_v15 }
 0x4ee   :  { %vm1226_vm12 = vmor %vm1224_vm11, %vm1225_vm15 }
 0x4ef   :  { %v1221_v18 = vsub.f32 1.0, %v1220_v16 }
 0x4f1   :  { %v1222_v9 = vmul.f32 %v2385_v15, %v1221_v18 }
 0x4f3   :  { %v1223_v25 = vadd.f32 %v2385_v15, %v1222_v9 }
 0x4f5   :  { %v1227_v2 = vsel %vm1226_vm12, %v2385_v15, %v1223_v25 }
 0x4f6   :  { %v1232_v31 = vsel %vm1229_vm13, %v1231_v26, %v1227_v2 }
 0x4f7   :  { %v1233_v33 = vmul.f32 %v1232_v31, %v2771_v28 }
 0x4f9   :  { %v1261_v17 = vperm.slane %v1233_v33, 3 }
 0x4fb   :  { %v1263_v37 = vmul.f32 %v1261_v17, %v1254_v34 }
 0x4fd   :  { %v1265_v42 = vsub.f32 %v2771_v28, %v1263_v37 }
 0x4ff   :  { %v2802_v43 = vsel %vm565_vm0, %v1261_v17, %v1265_v42 }
 0x500   :  { %1271 = vperm.xlu2 %2337, %v2802_v43   ;;  %v1309_v44 = vsel %vm3371_vm1, 0.0, %v2802_v43 }
 0x501   :  { %1313 = vperm.xlu1 %2335, %v1309_v44  }
 0x508   :  { %635 = vperm.xlu2 %2337, %v631_v45  }
 0x509   :  { %1511 = vrot.lane.b32.xlu1 %v2562_v29, %s2439_s10 }
 0x512   :  { %v596_v28 = vpop.permute.xlu1 %595 }
 0x513   :  { %2386 = vrcp.f32 %v596_v28  ;;  %v624_v49 = vand.u32 2147483648, %v596_v28  ;;  %v622_v53 = vand.u32 2147483647, %v596_v28  ;;  %vm618_vm15 = vweird.f32 %v596_v28 }
 0x515   :  { %v625_v38 = vor.u32 1.1754944e-38, %v624_v49  ;;  %vm623_vm12 = vcmp.eq.f32.partialorder %v622_v53, 8.507059e+37 }
 0x519   :  { %v2387_v46 = vpop.eup %2386 }
 0x51a   :  { %v614_v40 = vmul.f32 %v2387_v46, %v596_v28  ;;  %vm619_vm14 = vweird.f32 %v2387_v46  ;;  %v641_v29 = vpop.permute.xlu1 %640 }
 0x51b   :  { %vm620_vm11 = vmor %vm618_vm15, %vm619_vm14 }
 0x51c   :  { %v615_v48 = vsub.f32 1.0, %v614_v40 }
 0x51e   :  { %v616_v50 = vmul.f32 %v2387_v46, %v615_v48 }
 0x520   :  { %v617_v54 = vadd.f32 %v2387_v46, %v616_v50 }
 0x522   :  { %v621_v57 = vsel %vm620_vm11, %v2387_v46, %v617_v54 }
 0x523   :  { %v626_v58 = vsel %vm623_vm12, %v625_v38, %v621_v57  ;;  %v2441_v57 = vmov 1934713408  }
 0x524   :  { %v627_v59 = vmul.f32 %v626_v58, %v2784_v56  ;;  %v243_v58 = vunpack.c.l.s4 %v2441_v57 }
 0x526   :  { %v644_v60 = vperm.slane %v627_v59, 4  ;;  %v223_v59 = vperm.slane %v2608_v14, %v2617_v21 }
 0x528   :  { %v646_v61 = vmul.f32 %v644_v60, %v641_v29  ;;  %v2847_v29 = vunpack.c.0.s8 %v243_v58 }
 0x52a   :  { %v648_v62 = vsub.f32 %v2784_v56, %v646_v61 }
 0x52c   :  { %v2817_v47 = vsel %vm3371_vm1, %v644_v60, %v648_v62 }
 0x52d   :  { %714 = vrot.lane.b32.xlu0 %v2817_v47, %s2440_s11 }
 0x535   :  { %860 = vrot.lane.b32.xlu0 %v2573_v35, %s2428_s2 }
 0x54d   :  { %v591_v63 = vpop.permute.xlu0 %590 }
 0x54e   :  { %2388 = vrcp.f32 %v591_v63  ;;  %v609_v6 = vand.u32 2147483648, %v591_v63  ;;  %v607_v56 = vand.u32 2147483647, %v591_v63  ;;  %vm603_vm14 = vweird.f32 %v591_v63 }
 0x550   :  { %v610_v4 = vor.u32 1.1754944e-38, %v609_v6  ;;  %vm608_vm11 = vcmp.eq.f32.partialorder %v607_v56, 8.507059e+37  ;;  %v250_v56 = vrot.slane %v2631_v27, 4 }
 0x554   :  { %v2389_v0 = vpop.eup %2388 }
 0x555   :  { %v599_v1 = vmul.f32 %v2389_v0, %v591_v63  ;;  %vm604_vm13 = vweird.f32 %v2389_v0 }
 0x556   :  { %vm605_vm15 = vmor %vm603_vm14, %vm604_vm13 }
 0x557   :  { %v600_v5 = vsub.f32 1.0, %v599_v1 }
 0x559   :  { %v601_v8 = vmul.f32 %v2389_v0, %v600_v5 }
 0x55a   :  { %v1272_v10 = vpop.permute.xlu2 %1271 }
 0x55b   :  { %2390 = vrcp.f32 %v1272_v10  ;;  %v602_v11 = vadd.f32 %v2389_v0, %v601_v8  ;;  %v1290_v26 = vand.u32 2147483648, %v1272_v10  ;;  %v1288_v33 = vand.u32 2147483647, %v1272_v10 }
 0x55c   :  { %vm1284_vm13 = vweird.f32 %v1272_v10 }
 0x55d   :  { %v606_v52 = vsel %vm605_vm15, %v2389_v0, %v602_v11  ;;  %v1291_v37 = vor.u32 1.1754944e-38, %v1290_v26  ;;  %vm1289_vm15 = vcmp.eq.f32.partialorder %v1288_v33, 8.507059e+37  ;;  %v240_v0 = vrot.slane %v223_v59, 4 }
 0x55e   :  { %v611_v13 = vsel %vm608_vm11, %v610_v4, %v606_v52  ;;  %vm3375_vm11 = vcmask 261120  }
 0x55f   :  { %v612_v15 = vmul.f32 %v611_v13, %v2795_v3 }
 0x561   :  { %v2391_v16 = vpop.eup %2390  ;;  %v643_v18 = vperm.slane %v612_v15, 4 }
 0x562   :  { %v1280_v20 = vmul.f32 %v2391_v16, %v1272_v10  ;;  %v636_v9 = vpop.permute.xlu2 %635  ;;  %vm1285_vm12 = vweird.f32 %v2391_v16  ;;  %v251_v10 = vsel %vm218_vm7, %v250_v56, %v2622_v23 }
 0x563   :  { %v645_v24 = vmul.f32 %v643_v18, %v636_v9  ;;  %vm1286_vm14 = vmor %vm1284_vm13, %vm1285_vm12  ;;  %vm3374_vm12 = vcmask 326656   ;;  %vm3370_vm13 = vcmask 392192  }
 0x564   :  { %v1281_v25 = vsub.f32 1.0, %v1280_v20 }
 0x565   :  { %v647_v2 = vsub.f32 %v2795_v3, %v645_v24  ;;  %v261_v24 = vperm.slane %v2636_v30, %v2847_v29 }
 0x566   :  { %v1282_v31 = vmul.f32 %v2391_v16, %v1281_v25 }
 0x567   :  { %v2827_v17 = vsel %vm3371_vm1, %v643_v18, %v647_v2 }
 0x568   :  { %652 = vrot.lane.b32.xlu2 %v2827_v17, %s2440_s11  ;;  %v1283_v34 = vadd.f32 %v2391_v16, %v1282_v31  ;;  %v1008_v31 = vld [vmem:[%s3363_s6 + $0x8] sm:$0x1f] }
 0x56a   :  { %v1287_v42 = vsel %vm1286_vm14, %v2391_v16, %v1283_v34  ;;  %vm3367_vm14 = vcmask 457728  }
 0x56b   :  { %v1292_v44 = vsel %vm1289_vm15, %v1291_v37, %v1287_v42  ;;  %v268_v42 = vrot.slane %v261_v24, 4  ;;  %vm820_vm15 = vcmask 7168  }
 0x56c   :  { %v1293_v45 = vmul.f32 %v1292_v44, %v2802_v43 }
 0x56d   :  { %v269_v44 = vsel %vm218_vm7, 0.0, %v268_v42 }
 0x56e   :  { %v1321_v3 = vperm.slane %v1293_v45, 4  ;;  %v1683_v45 = vld [vmem:[%s3363_s6 + $0x8] sm:$0x1f] }
 0x570   :  { %1535 = vrot.lane.b32.xlu2 %v2573_v35, %s2439_s10 }
 0x573   :  { %v1314_v28 = vpop.permute.xlu1 %1313 }
 0x574   :  { %v1323_v46 = vmul.f32 %v1321_v3, %v1314_v28 }
 0x576   :  { %v1325_v40 = vsub.f32 %v2802_v43, %v1323_v46  ;;  %v233_v43 = vperm.slane %v2619_v22, %v2617_v21 }
 0x578   :  { %v2837_v48 = vsel %vm3371_vm1, %v1321_v3, %v1325_v40  ;;  %v238_v38 = vrot.slane %v233_v43, 4  ;;  %v241_v1 = vsel %vm218_vm7, %v233_v43, %v240_v0 }
 0x579   :  { %1330 = vrot.lane.b32.xlu1 %v2837_v48, %s2440_s11  ;;  %v249_v6 = vperm.slane %v241_v1, %v2847_v29 }
 0x57a   :  { %v239_v60 = vsel %vm218_vm7, %v238_v38, %v223_v59 }
 0x57b   :  { %v1512_v35 = vpop.permute.xlu1 %1511  ;;  %v2850_v61 = vperm.slane %v239_v60, %v2847_v29  ;;  %v264_v20 = vrot.slane %v249_v6, 4 }
 0x57d   :  { %v262_v62 = vrot.slane %v2850_v61, 4  ;;  %v265_v9 = vsel %vm218_vm7, 0.0, %v264_v20 }
 0x57f   :  { %v263_v63 = vsel %vm218_vm7, 0.0, %v262_v62 }
 0x59f   :  { %v715_v49 = vpop.permute.xlu0 %714 }
 0x5a0   :  { %717 = vxpose.xlu0.b32.start.end [1/1] (short) (narrow) %v715_v49, 8 }
 0x5a7   :  { %v861_v50 = vpop.permute.xlu0 %860 }
 0x5a8   :  { %2285 = vmatpush.xpose.msk.msra.mxu2 %vm133_vm3, %v861_v50 }
 0x5c2   :  { %v653_v53 = vpop.permute.xlu2 %652 }
 0x5c3   :  { %655 = vxpose.xlu2.b32.start.end [1/1] (short) (narrow) %v653_v53, 8 }
 0x5ca   :  { %v1536_v8 = vpop.permute.xlu2 %1535 }
 0x5eb   :  { %v1331_v54 = vpop.permute.xlu1 %1330 }
 0x5ec   :  { %1333 = vxpose.xlu1.b32.start.end [1/1] (short) (narrow) %v1331_v54, 8 }
 0x607   :  { %2339 = vset.pattern.permute.xlu0 %v2433_v36 }
 0x60e   :  { %271 = vrot.lane.b32.xlu0 %v263_v63, %s2442_s12 }
 0x625   :  { %2338 = vset.pattern.permute.xlu2 %v2433_v36 }
 0x63f   :  { %2340 = vset.pattern.permute.xlu1 %v2433_v36  ;;  %v257_v36 = vperm.slane %v251_v10, %v2847_v29 }
 0x641   :  { %v266_v25 = vrot.slane %v257_v36, 4 }
 0x643   :  { %v267_v26 = vsel %vm218_vm7, 0.0, %v266_v25  ;;  %v1682_v25 = vld [vmem:[%s3363_s6] sm:$0x1f]  ;;  %s2451_s6 = smov 64  }
 0x644   :  { %v733_v5 = vpop.trf.xlu0 }
 0x645   :  { %2282 = vmatmul.msk.f32.vlgmr.msrb.gmra.mxu3 %vm3369_vm6, %v733_v5 }
 0x646   :  { %2293 = vmatpush.xpose.msk.msrb.mxu3 %vm133_vm3, %v1536_v8  ;;  %275 = vrot.lane.b32.xlu1 %v249_v6, %s2443_s0 }
 0x64e   :  { %283 = vrot.lane.b32.xlu1 %v257_v36, %s2444_s13 }
 0x65c   :  { %v671_v11 = vpop.trf.xlu2 }
 0x65d   :  { %2280 = vmatmul.msk.f32.vlgmr.msrb.gmra.mxu2 %vm3369_vm6, %v671_v11 }
 0x65e   :  { %2291 = vmatpush.xpose.msk.msrb.mxu2 %vm133_vm3, %v1512_v35 }
 0x665   :  { %2286 = vmatmul.msk.f32.vlgmr.msra.gmra.mxu2 %vm133_vm3, %v861_v50 }
 0x66d   :  { %2292 = vmatmul.msk.f32.vlgmr.msrb.gmra.mxu2 %vm133_vm3, %v1512_v35 }
 0x680   :  { %v272_v38 = vpop.permute.xlu0 %271 }
 0x681   :  { %v298_v0 = vsel %vm184_vm5, %v2850_v61, %v272_v38 }
 0x690   :  { %v1349_v27 = vpop.trf.xlu1 }
 0x691   :  { %2288 = vmatmul.msk.f32.vlgmr.msra.gmra.mxu3 %vm3369_vm6, %v1349_v27 }
 0x699   :  { %2294 = vmatmul.msk.f32.vlgmr.msrb.gmra.mxu3 %vm133_vm3, %v1536_v8 }
 0x6b8   :  { %v276_v35 = vpop.permute.xlu1 %275 }
 0x6b9   :  { %v299_v6 = vsel %vm133_vm3, %v298_v0, %v276_v35 }
 0x6c0   :  { %v284_v10 = vpop.permute.xlu1 %283 }
 0x6c8   :  { %v2888_v2 = vpop.f32.mrf.mxu3 }
 0x6e0   :  { %v2874_v23 = vpop.f32.mrf.mxu2 }
 0x6e8   :  { %v881_v4 = vpop.f32.mrf.mxu2 }
 0x6e9   :  { %v885_v52 = vsel %vm2588_vm4, %v881_v4, 0.0  ;;  %v907_v58 = vmul.f32 2.0, %v881_v4 }
 0x6ea   :  { %v889_v13 = vsel %vm184_vm5, %v885_v52, 0.0 }
 0x6eb   :  { %890 = vadd.xlane.f32.xlu2 %v889_v13  ;;  %v898_v41 = vrot.slane %v889_v13, 4 }
 0x6ed   :  { %v899_v3 = vadd.f32 %v898_v41, %v889_v13  ;;  %v804_v41 = vrot.slane %v2608_v14, 1 }
 0x6ef   :  { %v900_v28 = vrot.slane %v899_v3, 2 }
 0x6f0   :  { %v1532_v15 = vpop.f32.mrf.mxu2 }
 0x6f1   :  { %v1559_v16 = vsel %vm2588_vm4, %v1532_v15, 0.0  ;;  %v901_v49 = vadd.f32 %v900_v28, %v899_v3  ;;  %v1581_v36 = vmul.f32 2.0, %v1532_v15 }
 0x6f2   :  { %v1561_v18 = vsel %vm184_vm5, %v1559_v16, 0.0 }
 0x6f3   :  { %1562 = vadd.xlane.f32.xlu0 %v1561_v18  ;;  %v1567_v46 = vrot.slane %v1561_v18, 4  ;;  %v902_v53 = vrot.slane %v901_v49, 1 }
 0x6f5   :  { %v1568_v40 = vadd.f32 %v1567_v46, %v1561_v18  ;;  %v903_v54 = vadd.f32 %v902_v53, %v901_v49 }
 0x6f7   :  { %v1569_v50 = vrot.slane %v1568_v40, 2 }
 0x6f9   :  { %v1570_v43 = vadd.f32 %v1569_v50, %v1568_v40 }
 0x6fb   :  { %v1571_v62 = vrot.slane %v1570_v43, 1 }
 0x6fd   :  { %v1572_v5 = vadd.f32 %v1571_v62, %v1570_v43 }
 0x703   :  { %279 = vrot.lane.b32.xlu2 %v265_v9, %s2445_s14 }
 0x707   :  { %291 = vrot.lane.b32.xlu0 %v261_v24, %s2446_s15 }
 0x70b   :  { %287 = vrot.lane.b32.xlu2 %v267_v26, %s2447_s16 }
 0x713   :  { %1013 = vrot.lane.b32.xlu2 %v1008_v31, %s2430_s27 }
 0x714   :  { %v2895_v33 = vpop.f32.mrf.mxu3 }
 0x71c   :  { %v2897_v30 = vpop.f32.mrf.mxu3 }
 0x71d   :  { %v1560_v34 = vsel %vm2588_vm4, %v2897_v30, 0.0  ;;  %vm300_vm4 = vcmask 195584   ;;  %v1582_v49 = vmul.f32 2.0, %v2897_v30 }
 0x71e   :  { %v2903_v37 = vsel %vm184_vm5, %v1560_v34, 0.0 }
 0x71f   :  { %1565 = vadd.xlane.f32.xlu1 %v2903_v37  ;;  %v1573_v34 = vrot.slane %v2903_v37, 4 }
 0x721   :  { %v1574_v42 = vadd.f32 %v1573_v34, %v2903_v37 }
 0x738   :  { %295 = vrot.lane.b32.xlu1 %v269_v44, %s2448_s19  ;;  %v1575_v44 = vrot.slane %v1574_v42, 2 }
 0x73a   :  { %v1576_v3 = vadd.f32 %v1575_v44, %v1574_v42 }
 0x73c   :  { %v1577_v28 = vrot.slane %v1576_v3, 1 }
 0x73e   :  { %v1578_v46 = vadd.f32 %v1577_v28, %v1576_v3 }
 0x740   :  { %1688 = vrot.lane.b32.xlu1 %v1683_v45, %s2449_s3  ;;  %v805_v45 = vrot.slane %v2619_v22, 1 }
 0x75e   :  { %v891_v57 = vpop.xlane.xlu2 %890 }
 0x75f   :  { %v905_v59 = vadd.f32 %v903_v54, %v891_v57 }
 0x761   :  { %v909_v60 = vsub.f32 %v905_v59, %v907_v58  ;;  %v812_v59 = vrot.slane %v2608_v14, 2 }
 0x763   :  { %v911_v63 = vmax.f32 %v909_v60, 0.0 }
 0x765   :  { %v913_v1 = vmul.f32 -0.5, %v911_v63 }
 0x766   :  { %v280_v8 = vpop.permute.xlu2 %279  ;;  %v1563_v56 = vpop.xlane.xlu0 %1562 }
 0x767   :  { %v916_v11 = vmul.f32 1.442695, %v913_v1  ;;  %v301_v27 = vsel %vm300_vm4, %v299_v6, %v280_v8  ;;  %v1579_v4 = vadd.f32 %v1572_v5, %v1563_v56 }
 0x768   :  { %v303_v52 = vsel %vm3375_vm11, %v301_v27, %v284_v10 }
 0x769   :  { %2392 = vpow2.f32 %v916_v11  ;;  %v1583_v13 = vsub.f32 %v1579_v4, %v1581_v36 }
 0x76b   :  { %v1585_v16 = vmax.f32 %v1583_v13, 0.0 }
 0x76d   :  { %v1587_v61 = vmul.f32 -0.5, %v1585_v16 }
 0x76e   :  { %v288_v18 = vpop.permute.xlu2 %287 }
 0x76f   :  { %v2917_v20 = vpop.eup %2392  ;;  %v1589_v9 = vmul.f32 1.442695, %v1587_v61  ;;  %v305_v24 = vsel %vm3374_vm12, %v303_v52, %v288_v18 }
 0x770   :  { %1021 = vrot.lane.b32.xlu2 %v2917_v20, %s2431_s30  ;;  %v1427_v15 = vrot.slane %v2917_v20, 5  ;;  %v1006_v62 = vadd.f32 %v2917_v20, %v2648_v55 }
 0x771   :  { %2394 = vpow2.f32 %v1589_v9 }
 0x772   :  { %2289 = vmatpush.xpose.msk.msra.mxu0 %vm3369_vm6, %v1427_v15 }
 0x776   :  { %v1014_v60 = vpop.permute.xlu2 %1013 }
 0x777   :  { %v2927_v26 = vpop.eup %2394  ;;  %v1026_v63 = vsel %vm3369_vm6, %v1006_v62, %v1014_v60 }
 0x778   :  { %1694 = vrot.lane.b32.xlu0 %v2927_v26, %s2431_s30  ;;  %1686 = vrot.lane.b32.xlu2 %v1682_v25, %s2449_s3  ;;  %v2040_v31 = vrot.slane %v2927_v26, 5  ;;  %v1680_v6 = vadd.f32 %v2927_v26, %v2648_v55  ;;  %v933_v25 = vperm.slane %v2917_v20, %v2617_v21 }
 0x779   :  { %v292_v38 = vpop.permute.xlu0 %291 }
 0x77a   :  { %2295 = vmatpush.xpose.msk.msrb.mxu0 %vm3369_vm6, %v2040_v31  ;;  %v307_v30 = vsel %vm3370_vm13, %v305_v24, %v292_v38 }
 0x780   :  { %798 = vrot.lane.b32.xlu0 %v2608_v14, %s2440_s11  ;;  %777 = vrot.lane.b32.xlu2 %v2817_v47, %s2450_s4 }
 0x788   :  { %808 = vrot.lane.b32.xlu0 %v805_v45, %s2440_s11  ;;  %806 = vrot.lane.b32.xlu2 %v804_v41, %s2440_s11 }
 0x792   :  { %v1566_v40 = vpop.xlane.xlu1 %1565 }
 0x793   :  { %v1580_v50 = vadd.f32 %v1578_v46, %v1566_v40  ;;  %v928_v46 = vrot.slane %v2917_v20, 4 }
 0x795   :  { %v1584_v53 = vsub.f32 %v1580_v50, %v1582_v49  ;;  %v918_v50 = vrot.slane %v2641_v51, 4  ;;  %v929_v38 = vsel %vm218_vm7, 0.0, %v928_v46 }
 0x796   :  { %v937_v60 = vperm.slane %v929_v38, %v2617_v21 }
 0x797   :  { %v1586_v47 = vmax.f32 %v1584_v53, 0.0 }
 0x799   :  { %v1588_v35 = vmul.f32 -0.5, %v1586_v47 }
 0x79b   :  { %v1591_v37 = vmul.f32 1.442695, %v1588_v35 }
 0x79d   :  { %2396 = vpow2.f32 %v1591_v37 }
 0x7a3   :  { %v2945_v54 = vpop.eup %2396 }
 0x7a4   :  { %1696 = vrot.lane.b32.xlu1 %v2945_v54, %s2431_s30  ;;  %v2102_v43 = vrot.slane %v2945_v54, 5  ;;  %v1681_v15 = vadd.f32 %v2945_v54, %v2648_v55  ;;  %v938_v55 = vrot.slane %v933_v25, 4 }
 0x7a6   :  { %2297 = vmatpush.xpose.msk.msra.mxu2 %vm3369_vm6, %v2102_v43 }
 0x7aa   :  { %v296_v57 = vpop.permute.xlu1 %295 }
 0x7ab   :  { %v2953_v58 = vsel %vm3367_vm14, %v307_v30, %v296_v57  ;;  %vm3372_vm14 = vcmask 61480  }
 0x7ac   :  { %775 = vrot.lane.b32.xlu1 %v2827_v17, %s2450_s4  ;;  %v813_v17 = vrot.slane %v2619_v22, 2 }
 0x7b2   :  { %v1689_v18 = vpop.permute.xlu1 %1688 }
 0x7b3   :  { %v1701_v31 = vsel %vm3369_vm6, %v1681_v15, %v1689_v18 }
 0x7b4   :  { %800 = vrot.lane.b32.xlu1 %v2619_v22, %s2440_s11 }
 0x7bc   :  { %814 = vrot.lane.b32.xlu1 %v812_v59, %s2440_s11  ;;  %v919_v59 = vsel %vm218_vm7, 0.0, %v918_v50 }
 0x7ca   :  { %v1022_v0 = vpop.permute.xlu2 %1021 }
 0x7cb   :  { %v2965_v1 = vsel %vm3368_vm8, %v1026_v63, %v1022_v0 }
 0x7cc   :  { %1036 = vperm.xlu2 %2338, %v2965_v1   ;;  %v1070_v52 = vsel %vm376_vm9, 0.0, %v2965_v1 }
 0x7d2   :  { %v1687_v5 = vpop.permute.xlu2 %1686 }
 0x7d3   :  { %v1700_v56 = vsel %vm3369_vm6, %v1680_v6, %v1687_v5  ;;  %v927_v5 = vperm.slane %v919_v59, %v2617_v21 }
 0x7d4   :  { %816 = vrot.lane.b32.xlu2 %v813_v17, %s2440_s11 }
 0x7da   :  { %v778_v8 = vpop.permute.xlu2 %777 }
 0x7db   :  { %v782_v13 = vmul.f32 %v2619_v22, %v778_v8  ;;  %v923_v22 = vperm.slane %v2641_v51, %v2617_v21  ;;  %v950_v8 = vrot.slane %v937_v60, 4 }
 0x7dd   :  { %v791_v16 = vsel %vm3372_vm14, %v782_v13, 0.0  ;;  %v940_v3 = vrot.slane %v923_v22, 4  ;;  %v939_v28 = vsel %vm218_vm7, %v938_v55, %v923_v22 }
 0x7de   :  { %v792_v61 = vrot.slane %v791_v16, 4  ;;  %v3009_v37 = vperm.slane %v939_v28, %v2847_v29 }
 0x7df   :  { %v941_v40 = vsel %vm218_vm7, %v933_v25, %v940_v3 }
 0x7e0   :  { %v793_v9 = vadd.f32 %v792_v61, %v791_v16  ;;  %v949_v43 = vperm.slane %v941_v40, %v2847_v29 }
 0x7e2   :  { %v807_v11 = vpop.permute.xlu2 %806  ;;  %v794_v24 = vrot.slane %v793_v9, 2  ;;  %v964_v63 = vrot.slane %v949_v43, 4 }
 0x7e4   :  { %v795_v42 = vadd.f32 %v794_v24, %v793_v9 }
 0x7e6   :  { %v796_v41 = vrot.slane %v795_v42, 1 }
 0x7e8   :  { %v797_v35 = vadd.f32 %v796_v41, %v795_v42 }
 0x7ea   :  { %v1695_v10 = vpop.permute.xlu0 %1694 }
 0x7eb   :  { %v2974_v36 = vsel %vm3368_vm8, %v1700_v56, %v1695_v10  ;;  %v965_v10 = vsel %vm218_vm7, 0.0, %v964_v63 }
 0x7ec   :  { %1706 = vperm.xlu1 %2340, %v2974_v36   ;;  %v1744_v47 = vsel %vm376_vm9, 0.0, %v2974_v36 }
 0x7f2   :  { %v799_v27 = vpop.permute.xlu0 %798 }
 0x7f3   :  { %v2978_v4 = vsel %vm820_vm15, %v799_v27, %v807_v11  ;;  %v952_v27 = vrot.slane %v927_v5, 4 }
 0x7f4   :  { %1078 = vperm.xlu1 %2340, %v1070_v52   ;;  %v951_v52 = vsel %vm218_vm7, %v950_v8, %v927_v5 }
 0x7f5   :  { %v953_v16 = vsel %vm218_vm7, %v937_v60, %v952_v27  ;;  %v957_v18 = vperm.slane %v951_v52, %v2847_v29 }
 0x7f6   :  { %v961_v9 = vperm.slane %v953_v16, %v2847_v29 }
 0x7f7   :  { %v966_v25 = vrot.slane %v957_v18, 4 }
 0x7fc   :  { %2341 = vset.pattern.permute.xlu1 %v2435_v7 }
 0x816   :  { %v1697_v34 = vpop.permute.xlu1 %1696 }
 0x817   :  { %v2992_v44 = vsel %vm3368_vm8, %v1701_v31, %v1697_v34  ;;  %vm3373_vm8 = vcmask 15360   ;;  %v967_v31 = vsel %vm218_vm7, 0.0, %v966_v25 }
 0x818   :  { %1711 = vperm.xlu0 %2339, %v2992_v44   ;;  %v1745_v45 = vsel %vm376_vm9, 0.0, %v2992_v44 }
 0x819   :  { %1753 = vperm.xlu2 %2338, %v1745_v45  }
 0x81e   :  { %v776_v49 = vpop.permute.xlu1 %775 }
 0x81f   :  { %v781_v53 = vmul.f32 %v2608_v14, %v776_v49  ;;  %v962_v14 = vrot.slane %v3009_v37, 4 }
 0x820   :  { %1748 = vperm.xlu0 %2339, %v1744_v47  }
 0x821   :  { %v784_v30 = vsel %vm3372_vm14, %v781_v53, 0.0  ;;  %830 = vrot.lane.b32.xlu2 %v797_v35, %s2440_s11  ;;  %v963_v6 = vsel %vm218_vm7, 0.0, %v962_v14 }
 0x822   :  { %v785_v57 = vrot.slane %v784_v30, 4  ;;  %2342 = vset.pattern.permute.xlu2 %v2435_v7 }
 0x824   :  { %v786_v62 = vadd.f32 %v785_v57, %v784_v30 }
 0x826   :  { %v787_v0 = vrot.slane %v786_v62, 2  ;;  %v801_v17 = vpop.permute.xlu1 %800  ;;  %v1037_v34 = vpop.permute.xlu2 %1036 }
 0x827   :  { %2398 = vrcp.f32 %v1037_v34  ;;  %v1065_v41 = vand.u32 2147483648, %v1037_v34  ;;  %vm1059_vm13 = vweird.f32 %v1037_v34  ;;  %v1063_v3 = vand.u32 2147483647, %v1037_v34 }
 0x828   :  { %v788_v56 = vadd.f32 %v787_v0, %v786_v62  ;;  %971 = vrot.lane.b32.xlu0 %v963_v6, %s2442_s12  ;;  %v809_v62 = vpop.permute.xlu0 %808 }
 0x829   :  { %979 = vrot.lane.b32.xlu2 %v965_v10, %s2445_s14  ;;  %2343 = vset.pattern.permute.xlu0 %v2435_v7  ;;  %v968_v7 = vrot.slane %v961_v9, 4  ;;  %v1066_v46 = vor.u32 1.1754944e-38, %v1065_v41  ;;  %vm1064_vm14 = vcmp.eq.f32.partialorder %v1063_v3, 8.507059e+37  ;;  %v822_v63 = vsel %vm820_vm15, %v801_v17, %v809_v62 }
 0x82a   :  { %v789_v11 = vrot.slane %v788_v56, 1 }
 0x82b   :  { %v969_v15 = vsel %vm218_vm7, 0.0, %v968_v7 }
 0x82c   :  { %v790_v13 = vadd.f32 %v789_v11, %v788_v56 }
 0x82e   :  { %v815_v61 = vpop.permute.xlu1 %814  ;;  %828 = vrot.lane.b32.xlu1 %v790_v13, %s2440_s11  ;;  %v817_v38 = vpop.permute.xlu2 %816 }
 0x82f   :  { %v3032_v24 = vsel %vm3373_vm8, %v2978_v4, %v815_v61  ;;  %v2399_v4 = vpop.eup %2398  ;;  %v3053_v0 = vsel %vm3373_vm8, %v822_v63, %v817_v38 }
 0x830   :  { %983 = vrot.lane.b32.xlu0 %v957_v18, %s2444_s13  ;;  %v1055_v42 = vmul.f32 %v2399_v4, %v1037_v34  ;;  %vm1060_vm6 = vweird.f32 %v2399_v4 }
 0x831   :  { %991 = vrot.lane.b32.xlu2 %v961_v9, %s2446_s15  ;;  %vm1061_vm1 = vmor %vm1059_vm13, %vm1060_vm6 }
 0x832   :  { %v1056_v22 = vsub.f32 1.0, %v1055_v42 }
 0x834   :  { %v1057_v45 = vmul.f32 %v2399_v4, %v1056_v22 }
 0x836   :  { %975 = vrot.lane.b32.xlu1 %v949_v43, %s2443_s0  ;;  %v1058_v55 = vadd.f32 %v2399_v4, %v1057_v45 }
 0x838   :  { %995 = vrot.lane.b32.xlu0 %v969_v15, %s2448_s19  ;;  %v1062_v28 = vsel %vm1061_vm1, %v2399_v4, %v1058_v55 }
 0x839   :  { %v1067_v49 = vsel %vm1064_vm14, %v1066_v46, %v1062_v28 }
 0x83a   :  { %v1068_v50 = vmul.f32 %v1067_v49, %v2965_v1 }
 0x83c   :  { %v1082_v53 = vperm.slane %v1068_v50, 0 }
 0x83e   :  { %987 = vrot.lane.b32.xlu1 %v967_v31, %s2447_s16 }
 0x85e   :  { %v1707_v40 = vpop.permute.xlu1 %1706 }
 0x85f   :  { %2400 = vrcp.f32 %v1707_v40  ;;  %v1725_v10 = vand.u32 2147483648, %v1707_v40  ;;  %vm1719_vm1 = vweird.f32 %v1707_v40  ;;  %v1723_v11 = vand.u32 2147483647, %v1707_v40 }
 0x861   :  { %v1726_v52 = vor.u32 1.1754944e-38, %v1725_v10  ;;  %vm1724_vm14 = vcmp.eq.f32.partialorder %v1723_v11, 8.507059e+37 }
 0x865   :  { %v2401_v59 = vpop.eup %2400 }
 0x866   :  { %v1079_v47 = vpop.permute.xlu1 %1078  ;;  %v1715_v60 = vmul.f32 %v2401_v59, %v1707_v40  ;;  %vm1720_vm6 = vweird.f32 %v2401_v59 }
 0x867   :  { %v1084_v35 = vmul.f32 %v1082_v53, %v1079_v47  ;;  %vm1721_vm13 = vmor %vm1719_vm1, %vm1720_vm6 }
 0x869   :  { %v1086_v43 = vsub.f32 %v2965_v1, %v1084_v35  ;;  %v1716_v1 = vsub.f32 1.0, %v1715_v60 }
 0x86b   :  { %v3045_v30 = vsel %vm376_vm9, %v1082_v53, %v1086_v43  ;;  %v1717_v8 = vmul.f32 %v2401_v59, %v1716_v1 }
 0x86c   :  { %1096 = vperm.xlu1 %2341, %v3045_v30   ;;  %v1130_v14 = vsel %vm439_vm2, 0.0, %v3045_v30 }
 0x86d   :  { %v1718_v56 = vadd.f32 %v2401_v59, %v1717_v8 }
 0x86f   :  { %v1722_v27 = vsel %vm1721_vm13, %v2401_v59, %v1718_v56 }
 0x870   :  { %v1727_v13 = vsel %vm1724_vm14, %v1726_v52, %v1722_v27 }
 0x871   :  { %v1728_v16 = vmul.f32 %v1727_v13, %v2974_v36 }
 0x873   :  { %v1754_v57 = vpop.permute.xlu2 %1753  ;;  %v1756_v18 = vperm.slane %v1728_v16, 0 }
 0x874   :  { %1138 = vperm.xlu1 %2341, %v1130_v14  }
 0x87b   :  { %v3055_v5 = vpop.permute.xlu2 %830 }
 0x87c   :  { %v835_v6 = vsub.f32 %v3053_v0, %v3055_v5 }
 0x88a   :  { %v1712_v17 = vpop.permute.xlu0 %1711 }
 0x88b   :  { %2402 = vrcp.f32 %v1712_v17  ;;  %v1740_v31 = vand.u32 2147483648, %v1712_v17  ;;  %v1738_v42 = vand.u32 2147483647, %v1712_v17  ;;  %vm1734_vm6 = vweird.f32 %v1712_v17 }
 0x88d   :  { %v1741_v41 = vor.u32 1.1754944e-38, %v1740_v31  ;;  %vm1739_vm13 = vcmp.eq.f32.partialorder %v1738_v42, 8.507059e+37 }
 0x891   :  { %v2403_v61 = vpop.eup %2402 }
 0x892   :  { %v1730_v9 = vmul.f32 %v2403_v61, %v1712_v17  ;;  %v1749_v7 = vpop.permute.xlu0 %1748  ;;  %vm1735_vm8 = vweird.f32 %v2403_v61 }
 0x893   :  { %v1758_v15 = vmul.f32 %v1756_v18, %v1749_v7  ;;  %vm1736_vm1 = vmor %vm1734_vm6, %vm1735_vm8 }
 0x894   :  { %v1731_v25 = vsub.f32 1.0, %v1730_v9 }
 0x895   :  { %v1760_v34 = vsub.f32 %v2974_v36, %v1758_v15 }
 0x896   :  { %v1732_v4 = vmul.f32 %v2403_v61, %v1731_v25 }
 0x897   :  { %v3063_v22 = vsel %vm376_vm9, %v1756_v18, %v1760_v34 }
 0x898   :  { %v1733_v45 = vadd.f32 %v2403_v61, %v1732_v4  ;;  %1766 = vperm.xlu0 %2343, %v3063_v22   ;;  %v1804_v55 = vsel %vm439_vm2, 0.0, %v3063_v22 }
 0x899   :  { %1808 = vperm.xlu1 %2341, %v1804_v55  }
 0x89a   :  { %v1737_v36 = vsel %vm1736_vm1, %v2403_v61, %v1733_v45  ;;  %v972_v40 = vpop.permute.xlu0 %971 }
 0x89b   :  { %v1742_v3 = vsel %vm1739_vm13, %v1741_v41, %v1737_v36  ;;  %v998_v43 = vsel %vm184_vm5, %v3009_v37, %v972_v40 }
 0x89c   :  { %v1743_v28 = vmul.f32 %v1742_v3, %v2992_v44 }
 0x89e   :  { %v1757_v46 = vperm.slane %v1743_v28, 0 }
 0x8a0   :  { %v3070_v49 = vpop.permute.xlu1 %828  ;;  %v1759_v50 = vmul.f32 %v1757_v46, %v1754_v57  ;;  %2345 = vset.pattern.permute.xlu0 %v2436_v12  ;;  %v980_v57 = vpop.permute.xlu2 %979 }
 0x8a1   :  { %v834_v53 = vsub.f32 %v3032_v24, %v3070_v49  ;;  %2346 = vset.pattern.permute.xlu1 %v2437_v19 }
 0x8a2   :  { %v1761_v47 = vsub.f32 %v2992_v44, %v1759_v50  ;;  %v984_v59 = vpop.permute.xlu0 %983 }
 0x8a4   :  { %v3079_v35 = vsel %vm376_vm9, %v1757_v46, %v1761_v47 }
 0x8a5   :  { %1771 = vperm.xlu2 %2342, %v3079_v35   ;;  %v1805_v44 = vsel %vm439_vm2, 0.0, %v3079_v35 }
 0x8a8   :  { %v976_v38 = vpop.permute.xlu1 %975  ;;  %v3096_v31 = vpop.permute.xlu2 %991 }
 0x8a9   :  { %v999_v14 = vsel %vm133_vm3, %v998_v43, %v976_v38 }
 0x8aa   :  { %v1000_v60 = vsel %vm300_vm4, %v999_v14, %v980_v57  ;;  %v3107_v45 = vpop.permute.xlu0 %995 }
 0x8ab   :  { %v1001_v62 = vsel %vm3375_vm11, %v1000_v60, %v984_v59 }
 0x8ad   :  { %1813 = vperm.xlu2 %2342, %v1805_v44  }
 0x8b0   :  { %v988_v63 = vpop.permute.xlu1 %987 }
 0x8b1   :  { %v3091_v1 = vsel %vm3374_vm12, %v1001_v62, %v988_v63 }
 0x8b5   :  { %2344 = vset.pattern.permute.xlu2 %v2436_v12 }
 0x8de   :  { %v1097_v37 = vpop.permute.xlu1 %1096 }
 0x8df   :  { %2404 = vrcp.f32 %v1097_v37  ;;  %v1125_v11 = vand.u32 2147483648, %v1097_v37  ;;  %v1123_v52 = vand.u32 2147483647, %v1097_v37  ;;  %vm1119_vm9 = vweird.f32 %v1097_v37 }
 0x8e1   :  { %v1126_v13 = vor.u32 1.1754944e-38, %v1125_v11  ;;  %vm1124_vm6 = vcmp.eq.f32.partialorder %v1123_v52, 8.507059e+37 }
 0x8e5   :  { %v2405_v8 = vpop.eup %2404 }
 0x8e6   :  { %v1115_v56 = vmul.f32 %v2405_v8, %v1097_v37  ;;  %vm1120_vm8 = vweird.f32 %v2405_v8  ;;  %v1139_v7 = vpop.permute.xlu1 %1138 }
 0x8e7   :  { %vm1121_vm14 = vmor %vm1119_vm9, %vm1120_vm8 }
 0x8e8   :  { %v1116_v10 = vsub.f32 1.0, %v1115_v56 }
 0x8ea   :  { %v1117_v27 = vmul.f32 %v2405_v8, %v1116_v10 }
 0x8ec   :  { %v1118_v17 = vadd.f32 %v2405_v8, %v1117_v27 }
 0x8ee   :  { %v1122_v16 = vsel %vm1121_vm14, %v2405_v8, %v1118_v17 }
 0x8ef   :  { %v1127_v61 = vsel %vm1124_vm6, %v1126_v13, %v1122_v16 }
 0x8f0   :  { %v1128_v18 = vmul.f32 %v1127_v61, %v3045_v30 }
 0x8f2   :  { %v1142_v9 = vperm.slane %v1128_v18, 1 }
 0x8f4   :  { %v1144_v15 = vmul.f32 %v1142_v9, %v1139_v7 }
 0x8f6   :  { %v1146_v25 = vsub.f32 %v3045_v30, %v1144_v15 }
 0x8f8   :  { %v3100_v34 = vsel %vm439_vm2, %v1142_v9, %v1146_v25 }
 0x8f9   :  { %1156 = vperm.xlu2 %2344, %v3100_v34   ;;  %v1190_v4 = vsel %vm502_vm10, 0.0, %v3100_v34 }
 0x8fa   :  { %1198 = vperm.xlu0 %2345, %v1190_v4  }
 0x8ff   :  { %v1772_v42 = vpop.permute.xlu2 %1771 }
 0x900   :  { %2406 = vrcp.f32 %v1772_v42  ;;  %v1800_v46 = vand.u32 2147483648, %v1772_v42  ;;  %vm1794_vm13 = vweird.f32 %v1772_v42  ;;  %v1798_v50 = vand.u32 2147483647, %v1772_v42 }
 0x901   :  { %2347 = vset.pattern.permute.xlu2 %v2437_v19 }
 0x902   :  { %v1801_v38 = vor.u32 1.1754944e-38, %v1800_v46  ;;  %vm1799_vm9 = vcmp.eq.f32.partialorder %v1798_v50, 8.507059e+37 }
 0x906   :  { %v2407_v30 = vpop.eup %2406 }
 0x907   :  { %v1790_v55 = vmul.f32 %v2407_v30, %v1772_v42  ;;  %vm1795_vm1 = vweird.f32 %v2407_v30  ;;  %v1814_v17 = vpop.permute.xlu2 %1813 }
 0x908   :  { %vm1796_vm8 = vmor %vm1794_vm13, %vm1795_vm1 }
 0x909   :  { %v1791_v41 = vsub.f32 1.0, %v1790_v55 }
 0x90a   :  { %v1767_v36 = vpop.permute.xlu0 %1766 }
 0x90b   :  { %v1792_v3 = vmul.f32 %v2407_v30, %v1791_v41  ;;  %2408 = vrcp.f32 %v1767_v36  ;;  %v1785_v14 = vand.u32 2147483648, %v1767_v36  ;;  %v1783_v62 = vand.u32 2147483647, %v1767_v36  ;;  %v1809_v52 = vpop.permute.xlu1 %1808 }
 0x90c   :  { %vm1779_vm6 = vweird.f32 %v1767_v36 }
 0x90d   :  { %v1793_v28 = vadd.f32 %v2407_v30, %v1792_v3  ;;  %v1786_v37 = vor.u32 1.1754944e-38, %v1785_v14  ;;  %vm1784_vm11 = vcmp.eq.f32.partialorder %v1783_v62, 8.507059e+37 }
 0x90f   :  { %v1797_v43 = vsel %vm1796_vm8, %v2407_v30, %v1793_v28 }
 0x910   :  { %v1802_v59 = vsel %vm1799_vm9, %v1801_v38, %v1797_v43 }
 0x911   :  { %v2409_v40 = vpop.eup %2408  ;;  %v1803_v63 = vmul.f32 %v1802_v59, %v3079_v35 }
 0x912   :  { %v1775_v47 = vmul.f32 %v2409_v40, %v1767_v36  ;;  %vm1780_vm14 = vweird.f32 %v2409_v40 }
 0x913   :  { %vm1781_vm12 = vmor %vm1779_vm6, %vm1780_vm14  ;;  %v1817_v11 = vperm.slane %v1803_v63, 1 }
 0x914   :  { %v1776_v57 = vsub.f32 1.0, %v1775_v47 }
 0x915   :  { %v1819_v16 = vmul.f32 %v1817_v11, %v1814_v17 }
 0x916   :  { %v1777_v60 = vmul.f32 %v2409_v40, %v1776_v57 }
 0x917   :  { %v1821_v9 = vsub.f32 %v3079_v35, %v1819_v16 }
 0x918   :  { %v1778_v44 = vadd.f32 %v2409_v40, %v1777_v60 }
 0x919   :  { %v3120_v7 = vsel %vm439_vm2, %v1817_v11, %v1821_v9 }
 0x91a   :  { %v1782_v8 = vsel %vm1781_vm12, %v2409_v40, %v1778_v44  ;;  %v1865_v15 = vsel %vm502_vm10, 0.0, %v3120_v7 }
 0x91b   :  { %v1787_v56 = vsel %vm1784_vm11, %v1786_v37, %v1782_v8 }
 0x91c   :  { %v1788_v10 = vmul.f32 %v1787_v56, %v3063_v22 }
 0x91e   :  { %v1816_v27 = vperm.slane %v1788_v10, 1 }
 0x920   :  { %v1818_v13 = vmul.f32 %v1816_v27, %v1809_v52 }
 0x922   :  { %v1820_v61 = vsub.f32 %v3063_v22, %v1818_v13 }
 0x924   :  { %v3114_v18 = vsel %vm439_vm2, %v1816_v27, %v1820_v61 }
 0x925   :  { %1826 = vperm.xlu0 %2345, %v3114_v18   ;;  %v1864_v57 = vsel %vm502_vm10, 0.0, %v3114_v18 }
 0x92d   :  { %1873 = vperm.xlu0 %2345, %v1865_v15  }
 0x935   :  { %1453 = vrot.lane.b32.xlu0 %v2837_v48, %s2450_s4 }
 0x936   :  { %2351 = vset.pattern.permute.xlu0 %v2437_v19 }
 0x953   :  { %v1157_v22 = vpop.permute.xlu2 %1156 }
 0x954   :  { %2410 = vrcp.f32 %v1157_v22  ;;  %v1185_v42 = vand.u32 2147483648, %v1157_v22  ;;  %v1183_v55 = vand.u32 2147483647, %v1157_v22  ;;  %vm1179_vm2 = vweird.f32 %v1157_v22 }
 0x956   :  { %v1186_v36 = vor.u32 1.1754944e-38, %v1185_v42  ;;  %vm1184_vm1 = vcmp.eq.f32.partialorder %v1183_v55, 8.507059e+37 }
 0x95a   :  { %v2411_v25 = vpop.eup %2410 }
 0x95b   :  { %v1175_v35 = vmul.f32 %v2411_v25, %v1157_v22  ;;  %vm1180_vm11 = vweird.f32 %v2411_v25 }
 0x95c   :  { %vm1181_vm12 = vmor %vm1179_vm2, %vm1180_vm11 }
 0x95d   :  { %v1176_v4 = vsub.f32 1.0, %v1175_v35 }
 0x95f   :  { %v1177_v30 = vmul.f32 %v2411_v25, %v1176_v4 }
 0x961   :  { %v1178_v41 = vadd.f32 %v2411_v25, %v1177_v30 }
 0x963   :  { %v1182_v3 = vsel %vm1181_vm12, %v2411_v25, %v1178_v41 }
 0x964   :  { %v1187_v28 = vsel %vm1184_vm1, %v1186_v36, %v1182_v3  ;;  %vm3378_vm1 = vcmask 61480  }
 0x965   :  { %v1188_v48 = vmul.f32 %v1187_v28, %v3100_v34 }
 0x967   :  { %v1202_v46 = vperm.slane %v1188_v48, 2 }
 0x96c   :  { %v1199_v40 = vpop.permute.xlu0 %1198 }
 0x96d   :  { %v1204_v50 = vmul.f32 %v1202_v46, %v1199_v40 }
 0x96f   :  { %v1206_v47 = vsub.f32 %v3100_v34, %v1204_v50  ;;  %v1481_v34 = vrot.slane %v2641_v51, 1 }
 0x971   :  { %v3132_v43 = vsel %vm502_vm10, %v1202_v46, %v1206_v47 }
 0x972   :  { %1216 = vperm.xlu1 %2346, %v3132_v43   ;;  %v1250_v38 = vsel %vm565_vm0, 0.0, %v3132_v43 }
 0x973   :  { %1258 = vperm.xlu2 %2347, %v1250_v38  }
 0x97a   :  { %2349 = vset.pattern.permute.xlu1 %v2436_v12 }
 0x97b   :  { %1868 = vperm.xlu1 %2349, %v1864_v57   ;;  %2348 = vset.pattern.permute.xlu2 %v2436_v12 }
 0x97c   :  { %1831 = vperm.xlu2 %2348, %v3120_v7  }
 0x983   :  { %2350 = vset.pattern.permute.xlu1 %v2437_v19 }
 0x984   :  { %1483 = vrot.lane.b32.xlu2 %v1481_v34, %s2440_s11 }
 0x997   :  { %v1827_v14 = vpop.permute.xlu0 %1826 }
 0x998   :  { %2412 = vrcp.f32 %v1827_v14  ;;  %v1845_v10 = vand.u32 2147483648, %v1827_v14  ;;  %vm1839_vm8 = vweird.f32 %v1827_v14  ;;  %v1843_v19 = vand.u32 2147483647, %v1827_v14 }
 0x99a   :  { %v1846_v61 = vor.u32 1.1754944e-38, %v1845_v10  ;;  %vm1844_vm11 = vcmp.eq.f32.partialorder %v1843_v19, 8.507059e+37 }
 0x99e   :  { %v2413_v60 = vpop.eup %2412 }
 0x99f   :  { %v1835_v62 = vmul.f32 %v2413_v60, %v1827_v14  ;;  %vm1840_vm13 = vweird.f32 %v2413_v60  ;;  %v1874_v27 = vpop.permute.xlu0 %1873 }
 0x9a0   :  { %vm1841_vm9 = vmor %vm1839_vm8, %vm1840_vm13 }
 0x9a1   :  { %v1836_v44 = vsub.f32 1.0, %v1835_v62 }
 0x9a3   :  { %v1837_v37 = vmul.f32 %v2413_v60, %v1836_v44 }
 0x9a5   :  { %v1838_v56 = vadd.f32 %v2413_v60, %v1837_v37 }
 0x9a7   :  { %v1842_v16 = vsel %vm1841_vm9, %v2413_v60, %v1838_v56  ;;  %v1454_v41 = vpop.permute.xlu0 %1453 }
 0x9a8   :  { %v1847_v25 = vsel %vm1844_vm11, %v1846_v61, %v1842_v16  ;;  %v1459_v48 = vmul.f32 %v2641_v51, %v1454_v41  ;;  %v1482_v16 = vrot.slane %v2917_v20, 1 }
 0x9a9   :  { %v1848_v42 = vmul.f32 %v1847_v25, %v3114_v18 }
 0x9aa   :  { %v1461_v38 = vsel %vm3378_vm1, %v1459_v48, 0.0 }
 0x9ab   :  { %v1876_v36 = vperm.slane %v1848_v42, 2  ;;  %v1462_v34 = vrot.slane %v1461_v38, 4 }
 0x9cd   :  { %v3147_v59 = vpop.permute.xlu2 %1258 }
 0x9d6   :  { %v1832_v63 = vpop.permute.xlu2 %1831 }
 0x9d7   :  { %2414 = vrcp.f32 %v1832_v63  ;;  %v1860_v52 = vand.u32 2147483648, %v1832_v63  ;;  %v1858_v13 = vand.u32 2147483647, %v1832_v63  ;;  %vm1854_vm6 = vweird.f32 %v1832_v63 }
 0x9d9   :  { %v1861_v22 = vor.u32 1.1754944e-38, %v1860_v52  ;;  %vm1859_vm12 = vcmp.eq.f32.partialorder %v1858_v13, 8.507059e+37 }
 0x9dd   :  { %v2415_v8 = vpop.eup %2414 }
 0x9de   :  { %v1850_v12 = vmul.f32 %v2415_v8, %v1832_v63  ;;  %vm1855_vm14 = vweird.f32 %v2415_v8 }
 0x9df   :  { %vm1856_vm2 = vmor %vm1854_vm6, %vm1855_vm14  ;;  %vm3379_vm14 = vcmp.eq.s32.totalorder %v2585_v39, 4  ;;  %v2164_v39 = vrot.slane %v2927_v26, 2 }
 0x9e0   :  { %v1851_v11 = vsub.f32 1.0, %v1850_v12 }
 0x9e2   :  { %v1852_v17 = vmul.f32 %v2415_v8, %v1851_v11 }
 0x9e4   :  { %v1853_v9 = vadd.f32 %v2415_v8, %v1852_v17  ;;  %v1217_v15 = vpop.permute.xlu1 %1216 }
 0x9e5   :  { %2416 = vrcp.f32 %v1217_v15  ;;  %v1245_v11 = vand.u32 2147483648, %v1217_v15  ;;  %vm1239_vm13 = vweird.f32 %v1217_v15  ;;  %v1243_v19 = vand.u32 2147483647, %v1217_v15 }
 0x9e6   :  { %v1857_v35 = vsel %vm1856_vm2, %v2415_v8, %v1853_v9  ;;  %v1489_v8 = vrot.slane %v2641_v51, 2 }
 0x9e7   :  { %v1862_v4 = vsel %vm1859_vm12, %v1861_v22, %v1857_v35  ;;  %v1246_v17 = vor.u32 1.1754944e-38, %v1245_v11  ;;  %vm1244_vm9 = vcmp.eq.f32.partialorder %v1243_v19, 8.507059e+37  ;;  %v1598_v19 = vperm.slane %v2927_v26, %v2617_v21 }
 0x9e8   :  { %v1863_v30 = vmul.f32 %v1862_v4, %v3120_v7 }
 0x9ea   :  { %v1877_v55 = vperm.slane %v1863_v30, 2 }
 0x9eb   :  { %v2417_v14 = vpop.eup %2416 }
 0x9ec   :  { %v1879_v3 = vmul.f32 %v1877_v55, %v1874_v27  ;;  %v1235_v60 = vmul.f32 %v2417_v14, %v1217_v15  ;;  %v1490_v15 = vrot.slane %v2917_v20, 2 }
 0x9ed   :  { %v1869_v28 = vpop.permute.xlu1 %1868 }
 0x9ee   :  { %v1878_v46 = vmul.f32 %v1876_v36, %v1869_v28  ;;  %v1881_v40 = vsub.f32 %v3120_v7, %v1879_v3  ;;  %v1463_v7 = vadd.f32 %v1462_v34, %v1461_v38  ;;  %v1236_v44 = vsub.f32 1.0, %v1235_v60 }
 0x9f0   :  { %v1880_v50 = vsub.f32 %v3114_v18, %v1878_v46  ;;  %v3156_v47 = vsel %vm502_vm10, %v1877_v55, %v1881_v40  ;;  %v1464_v62 = vrot.slane %v1463_v7, 2  ;;  %v1237_v12 = vmul.f32 %v2417_v14, %v1236_v44 }
 0x9f1   :  { %1891 = vperm.xlu1 %2350, %v3156_v47   ;;  %v1925_v63 = vsel %vm565_vm0, 0.0, %v3156_v47 }
 0x9f2   :  { %v3162_v57 = vsel %vm502_vm10, %v1876_v36, %v1880_v50  ;;  %v1465_v37 = vadd.f32 %v1464_v62, %v1463_v7  ;;  %v1238_v10 = vadd.f32 %v2417_v14, %v1237_v12  ;;  %vm1240_vm10 = vweird.f32 %v2417_v14 }
 0x9f3   :  { %1886 = vperm.xlu0 %2351, %v3162_v57   ;;  %v1924_v18 = vsel %vm565_vm0, 0.0, %v3162_v57  ;;  %vm1241_vm8 = vmor %vm1239_vm13, %vm1240_vm10 }
 0x9f4   :  { %v1466_v56 = vrot.slane %v1465_v37, 1  ;;  %v1242_v52 = vsel %vm1241_vm8, %v2417_v14, %v1238_v10 }
 0x9f5   :  { %v1247_v13 = vsel %vm1244_vm9, %v1246_v17, %v1242_v52  ;;  %vm3380_vm9 = vcmask 15360  }
 0x9f6   :  { %v1467_v27 = vadd.f32 %v1466_v56, %v1465_v37  ;;  %v1248_v61 = vmul.f32 %v1247_v13, %v3132_v43  ;;  %v1484_v13 = vpop.permute.xlu2 %1483 }
 0x9f8   :  { %v1262_v9 = vperm.slane %v1248_v61, 3 }
 0x9f9   :  { %1928 = vperm.xlu1 %2350, %v1924_v18   ;;  %v1608_v18 = vperm.slane %v2945_v54, %v2617_v21 }
 0x9fb   :  { %1477 = vrot.lane.b32.xlu0 %v2917_v20, %s2440_s11  ;;  %v1613_v56 = vrot.slane %v1608_v18, 4 }
 0x9fc   :  { %2353 = vset.pattern.permute.xlu0 %v2438_v32 }
 0x9fd   :  { %v1614_v17 = vsel %vm218_vm7, %v1613_v56, %v1598_v19 }
 0xa01   :  { %1933 = vperm.xlu1 %2350, %v1925_v63  }
 0xa03   :  { %1491 = vrot.lane.b32.xlu0 %v1489_v8, %s2440_s11 }
 0xa09   :  { %1475 = vrot.lane.b32.xlu1 %v2641_v51, %s2440_s11  ;;  %v1264_v51 = vmul.f32 %v1262_v9, %v3147_v59 }
 0xa0a   :  { %2352 = vset.pattern.permute.xlu1 %v2438_v32 }
 0xa0b   :  { %1503 = vrot.lane.b32.xlu0 %v1467_v27, %s2440_s11  ;;  %v1266_v32 = vsub.f32 %v3132_v43, %v1264_v51 }
 0xa0d   :  { %v3189_v22 = vsel %vm565_vm0, %v1262_v9, %v1266_v32 }
 0xa0e   :  { %v1310_v25 = vsel %vm3379_vm14, 0.0, %v3189_v22 }
 0xa11   :  { %1485 = vrot.lane.b32.xlu1 %v1482_v16, %s2440_s11 }
 0xa19   :  { %1493 = vrot.lane.b32.xlu1 %v1490_v15, %s2440_s11 }
 0xa21   :  { %1276 = vperm.xlu1 %2352, %v3189_v22  }
 0xa29   :  { %1318 = vperm.xlu1 %2352, %v1310_v25  }
 0xa63   :  { %v1892_v35 = vpop.permute.xlu1 %1891 }
 0xa64   :  { %2418 = vrcp.f32 %v1892_v35  ;;  %v1920_v36 = vand.u32 2147483648, %v1892_v35  ;;  %v1918_v48 = vand.u32 2147483647, %v1892_v35  ;;  %vm1914_vm11 = vweird.f32 %v1892_v35 }
 0xa65   :  { %v1887_v4 = vpop.permute.xlu0 %1886 }
 0xa66   :  { %2420 = vrcp.f32 %v1887_v4  ;;  %v1905_v46 = vand.u32 2147483648, %v1887_v4  ;;  %v1903_v50 = vand.u32 2147483647, %v1887_v4  ;;  %v1921_v14 = vor.u32 1.1754944e-38, %v1920_v36 }
 0xa67   :  { %vm1899_vm1 = vweird.f32 %v1887_v4  ;;  %vm1919_vm10 = vcmp.eq.f32.partialorder %v1918_v48, 8.507059e+37 }
 0xa68   :  { %v1906_v44 = vor.u32 1.1754944e-38, %v1905_v46  ;;  %vm1904_vm8 = vcmp.eq.f32.partialorder %v1903_v50, 8.507059e+37 }
 0xa6a   :  { %v2419_v59 = vpop.eup %2418 }
 0xa6b   :  { %v1910_v42 = vmul.f32 %v2419_v59, %v1892_v35  ;;  %v1929_v30 = vpop.permute.xlu1 %1928  ;;  %vm1915_vm6 = vweird.f32 %v2419_v59 }
 0xa6c   :  { %v2421_v55 = vpop.eup %2420  ;;  %vm1916_vm12 = vmor %vm1914_vm11, %vm1915_vm6 }
 0xa6d   :  { %v1911_v43 = vsub.f32 1.0, %v1910_v42  ;;  %v1895_v41 = vmul.f32 %v2421_v55, %v1887_v4  ;;  %vm1900_vm2 = vweird.f32 %v2421_v55  ;;  %v1478_v34 = vpop.permute.xlu0 %1477  ;;  %v3213_v4 = vperm.slane %v1614_v17, %v2847_v29  ;;  %vm3382_vm6 = vmmov %vm3379_vm14 }
 0xa6e   :  { %vm1901_vm13 = vmor %vm1899_vm1, %vm1900_vm2 }
 0xa6f   :  { %v1912_v3 = vmul.f32 %v2419_v59, %v1911_v43  ;;  %v1896_v28 = vsub.f32 1.0, %v1895_v41 }
 0xa71   :  { %v1897_v40 = vmul.f32 %v2421_v55, %v1896_v28  ;;  %v1913_v38 = vadd.f32 %v2419_v59, %v1912_v3  ;;  %v1593_v28 = vrot.slane %v2927_v26, 4 }
 0xa73   :  { %v1898_v7 = vadd.f32 %v2421_v55, %v1897_v40  ;;  %v1917_v60 = vsel %vm1916_vm12, %v2419_v59, %v1913_v38  ;;  %v1934_v62 = vpop.permute.xlu1 %1933  ;;  %v1615_v59 = vrot.slane %v1598_v19, 4  ;;  %v1594_v38 = vsel %vm218_vm7, 0.0, %v1593_v28 }
 0xa74   :  { %v1922_v63 = vsel %vm1919_vm10, %v1921_v14, %v1917_v60  ;;  %vm3383_vm10 = vmmov %vm3382_vm6 }
 0xa75   :  { %v1902_v37 = vsel %vm1901_vm13, %v2421_v55, %v1898_v7  ;;  %v1923_v8 = vmul.f32 %v1922_v63, %v3156_v47  ;;  %v1492_v15 = vpop.permute.xlu0 %1491  ;;  %v1603_v55 = vrot.slane %v2945_v54, 4 }
 0xa76   :  { %v1907_v12 = vsel %vm1904_vm8, %v1906_v44, %v1902_v37 }
 0xa77   :  { %v1908_v10 = vmul.f32 %v1907_v12, %v3162_v57  ;;  %v1937_v11 = vperm.slane %v1923_v8, 3  ;;  %v1604_v3 = vsel %vm218_vm7, 0.0, %v1603_v55 }
 0xa78   :  { %v1612_v48 = vperm.slane %v1604_v3, %v2617_v21 }
 0xa79   :  { %v1936_v27 = vperm.slane %v1908_v10, 3  ;;  %v1939_v52 = vmul.f32 %v1937_v11, %v1934_v62 }
 0xa7b   :  { %v1938_v16 = vmul.f32 %v1936_v27, %v1929_v30  ;;  %v1941_v61 = vsub.f32 %v3156_v47, %v1939_v52  ;;  %v1476_v9 = vpop.permute.xlu1 %1475  ;;  %v1616_v30 = vsel %vm218_vm7, %v1608_v18, %v1615_v59  ;;  %v1602_v18 = vperm.slane %v1594_v38, %v2617_v21 }
 0xa7c   :  { %v1497_v51 = vsel %vm820_vm15, %v1476_v9, %v1484_v13  ;;  %v1624_v36 = vperm.slane %v1616_v30, %v2847_v29 }
 0xa7d   :  { %v1940_v32 = vsub.f32 %v3162_v57, %v1938_v16  ;;  %v3206_v25 = vsel %vm3380_vm9, %v1497_v51, %v1492_v15  ;;  %v3210_v35 = vsel %vm565_vm0, %v1937_v11, %v1941_v61  ;;  %v1637_v57 = vrot.slane %v3213_v4, 4 }
 0xa7e   :  { %1951 = vperm.xlu1 %2352, %v3210_v35   ;;  %v1985_v50 = vsel %vm3379_vm14, 0.0, %v3210_v35  ;;  %v1639_v7 = vrot.slane %v1624_v36, 4  ;;  %v1627_v8 = vrot.slane %v1602_v18, 4 }
 0xa7f   :  { %v3218_v47 = vsel %vm565_vm0, %v1936_v27, %v1940_v32  ;;  %v1638_v41 = vsel %vm218_vm7, 0.0, %v1637_v57  ;;  %vm3381_vm0 = vmmov %vm3380_vm9 }
 0xa80   :  { %1946 = vperm.xlu0 %2353, %v3218_v47   ;;  %v1984_v14 = vsel %vm3382_vm6, 0.0, %v3218_v47  ;;  %v1640_v44 = vsel %vm218_vm7, 0.0, %v1639_v7  ;;  %v1628_v10 = vsel %vm218_vm7, %v1612_v48, %v1627_v8 }
 0xa81   :  { %v3252_v27 = vperm.slane %v1628_v10, %v2847_v29 }
 0xa83   :  { %v1486_v42 = vpop.permute.xlu1 %1485 }
 0xa84   :  { %v1498_v43 = vsel %vm820_vm15, %v1478_v34, %v1486_v42  ;;  %v1625_v34 = vrot.slane %v1612_v48, 4  ;;  %v3262_v42 = vpop.permute.xlu0 %1503 }
 0xa86   :  { %1646 = vrot.lane.b32.xlu1 %v1638_v41, %s2442_s12  ;;  %v1626_v60 = vsel %vm218_vm7, %v1625_v34, %v1602_v18 }
 0xa87   :  { %v1632_v63 = vperm.slane %v1626_v60, %v2847_v29 }
 0xa88   :  { %1650 = vrot.lane.b32.xlu0 %v1624_v36, %s2443_s0 }
 0xa89   :  { %v1641_v37 = vrot.slane %v1632_v63, 4 }
 0xa8b   :  { %v1494_v46 = vpop.permute.xlu1 %1493  ;;  %v1642_v11 = vsel %vm218_vm7, 0.0, %v1641_v37 }
 0xa8c   :  { %v3233_v40 = vsel %vm3381_vm0, %v1498_v43, %v1494_v46 }
 0xa8e   :  { %1993 = vperm.xlu1 %2352, %v1985_v50  }
 0xa90   :  { %1988 = vperm.xlu0 %2353, %v1984_v14  }
 0xa93   :  { %v1277_v62 = vpop.permute.xlu1 %1276 }
 0xa94   :  { %2422 = vrcp.f32 %v1277_v62  ;;  %v1305_v19 = vand.u32 2147483648, %v1277_v62  ;;  %v1303_v17 = vand.u32 2147483647, %v1277_v62  ;;  %vm1299_vm2 = vweird.f32 %v1277_v62 }
 0xa96   :  { %1654 = vrot.lane.b32.xlu1 %v1640_v44, %s2445_s14  ;;  %v1306_v16 = vor.u32 1.1754944e-38, %v1305_v19  ;;  %vm1304_vm1 = vcmp.eq.f32.partialorder %v1303_v17, 8.507059e+37 }
 0xa98   :  { %1658 = vrot.lane.b32.xlu0 %v1632_v63, %s2444_s13 }
 0xa9a   :  { %v2423_v12 = vpop.eup %2422 }
 0xa9b   :  { %v1295_v56 = vmul.f32 %v2423_v12, %v1277_v62  ;;  %vm1300_vm11 = vweird.f32 %v2423_v12  ;;  %v1319_v32 = vpop.permute.xlu1 %1318 }
 0xa9c   :  { %vm1301_vm12 = vmor %vm1299_vm2, %vm1300_vm11  ;;  %vm3384_vm11 = vcmask 261120  }
 0xa9d   :  { %v1296_v21 = vsub.f32 1.0, %v1295_v56  ;;  %vm3385_vm2 = vmmov %vm3383_vm10 }
 0xa9e   :  { %1662 = vrot.lane.b32.xlu1 %v1642_v11, %s2447_s16 }
 0xa9f   :  { %v1297_v52 = vmul.f32 %v2423_v12, %v1296_v21 }
 0xaa0   :  { %1666 = vrot.lane.b32.xlu0 %v3252_v27, %s2446_s15 }
 0xaa1   :  { %v1298_v13 = vadd.f32 %v2423_v12, %v1297_v52 }
 0xaa3   :  { %v1302_v61 = vsel %vm1301_vm12, %v2423_v12, %v1298_v13  ;;  %vm3386_vm12 = vcmask 326656  }
 0xaa4   :  { %v1307_v9 = vsel %vm1304_vm1, %v1306_v16, %v1302_v61  ;;  %vm3387_vm1 = vcmask 392192  }
 0xaa5   :  { %v1308_v15 = vmul.f32 %v1307_v9, %v3189_v22 }
 0xaa7   :  { %v1322_v51 = vperm.slane %v1308_v15, 4 }
 0xaa9   :  { %v1324_v57 = vmul.f32 %v1322_v51, %v1319_v32 }
 0xaab   :  { %v1326_v29 = vsub.f32 %v3189_v22, %v1324_v57 }
 0xaad   :  { %v1328_v59 = vsel %vm3383_vm10, %v1322_v51, %v1326_v29  ;;  %vm3389_vm10 = vcmask 39936  }
 0xaae   :  { %1455 = vrot.lane.b32.xlu0 %v1328_v59, %s2450_s4  ;;  %1392 = vrot.lane.b32.xlu2 %v1328_v59, %s2440_s11 }
 0xaf0   :  { %v1952_v30 = vpop.permute.xlu1 %1951 }
 0xaf1   :  { %2424 = vrcp.f32 %v1952_v30  ;;  %v1980_v50 = vand.u32 2147483648, %v1952_v30  ;;  %v1978_v18 = vand.u32 2147483647, %v1952_v30  ;;  %vm1974_vm8 = vweird.f32 %v1952_v30 }
 0xaf2   :  { %v1947_v55 = vpop.permute.xlu0 %1946 }
 0xaf3   :  { %2426 = vrcp.f32 %v1947_v55  ;;  %v1965_v7 = vand.u32 2147483648, %v1947_v55  ;;  %v1963_v44 = vand.u32 2147483647, %v1947_v55  ;;  %v1981_v63 = vor.u32 1.1754944e-38, %v1980_v50 }
 0xaf4   :  { %vm1959_vm14 = vweird.f32 %v1947_v55 }
 0xaf5   :  { %v1966_v56 = vor.u32 1.1754944e-38, %v1965_v7 }
 0xaf7   :  { %v2425_v43 = vpop.eup %2424 }
 0xaf8   :  { %v1970_v41 = vmul.f32 %v2425_v43, %v1952_v30  ;;  %v1647_v36 = vpop.permute.xlu1 %1646  ;;  %vm1975_vm13 = vweird.f32 %v2425_v43 }
 0xaf9   :  { %v2427_v3 = vpop.eup %2426  ;;  %v1673_v22 = vsel %vm184_vm5, %v3213_v4, %v1647_v36  ;;  %vm1976_vm0 = vmor %vm1974_vm8, %vm1975_vm13  ;;  %vm1979_vm5 = vcmp.eq.f32.partialorder %v1978_v18, 8.507059e+37  ;;  %vm3390_vm13 = vcmask 61480  }
 0xafa   :  { %v1971_v28 = vsub.f32 1.0, %v1970_v41  ;;  %v1955_v48 = vmul.f32 %v2427_v3, %v1947_v55  ;;  %v1651_v46 = vpop.permute.xlu0 %1650  ;;  %vm1960_vm9 = vweird.f32 %v2427_v3  ;;  %vm3391_vm8 = vmmov %vm3390_vm13 }
 0xafb   :  { %v1674_v38 = vsel %vm133_vm3, %v1673_v22, %v1651_v46  ;;  %vm1961_vm6 = vmor %vm1959_vm14, %vm1960_vm9  ;;  %vm1964_vm3 = vcmp.eq.f32.partialorder %v1963_v44, 8.507059e+37  ;;  %vm3394_vm14 = vcmask 457728  }
 0xafc   :  { %v1972_v34 = vmul.f32 %v2425_v43, %v1971_v28  ;;  %v1956_v14 = vsub.f32 1.0, %v1955_v48  ;;  %v2157_v28 = vrot.slane %v2945_v54, 1  ;;  %v2165_v48 = vrot.slane %v2945_v54, 2  ;;  %vm3392_vm9 = vmmov %vm3391_vm8 }
 0xafe   :  { %v1957_v60 = vmul.f32 %v2427_v3, %v1956_v14  ;;  %v1973_v62 = vadd.f32 %v2425_v43, %v1972_v34 }
 0xb00   :  { %v1977_v4 = vsel %vm1976_vm0, %v2425_v43, %v1973_v62  ;;  %v1994_v37 = vpop.permute.xlu1 %1993  ;;  %v1958_v8 = vadd.f32 %v2427_v3, %v1957_v60  ;;  %vm3393_vm0 = vmmov %vm3387_vm1 }
 0xb01   :  { %v1982_v12 = vsel %vm1979_vm5, %v1981_v63, %v1977_v4 }
 0xb02   :  { %v1962_v10 = vsel %vm1961_vm6, %v2427_v3, %v1958_v8  ;;  %v1989_v21 = vpop.permute.xlu0 %1988  ;;  %v1983_v19 = vmul.f32 %v1982_v12, %v3210_v35  ;;  %v1643_v12 = vrot.slane %v3252_v27, 4  ;;  %vm2195_vm6 = vcmask 1041408  }
 0xb03   :  { %v1967_v11 = vsel %vm1964_vm3, %v1966_v56, %v1962_v10  ;;  %vm2198_vm3 = vcmask 519170  }
 0xb04   :  { %v1968_v52 = vmul.f32 %v1967_v11, %v3218_v47  ;;  %v1997_v13 = vperm.slane %v1983_v19, 4  ;;  %v1644_v19 = vsel %vm218_vm7, 0.0, %v1643_v12  ;;  %vm3395_vm7 = vmmov %vm3389_vm10 }
 0xb05   :  { %vm3396_vm5 = vmmov %vm3395_vm7 }
 0xb06   :  { %v1996_v17 = vperm.slane %v1968_v52, 4  ;;  %v1999_v29 = vmul.f32 %v1997_v13, %v1994_v37 }
 0xb08   :  { %v1998_v16 = vmul.f32 %v1996_v17, %v1989_v21  ;;  %v1655_v61 = vpop.permute.xlu1 %1654  ;;  %v1393_v9 = vpop.permute.xlu2 %1392  ;;  %v2001_v30 = vsub.f32 %v3210_v35, %v1999_v29 }
 0xb09   :  { %v1675_v15 = vsel %vm300_vm4, %v1674_v38, %v1655_v61  ;;  %1395 = vxpose.xlu2.b32.start.end [1/1] (short) (narrow) %v1393_v9, 8  ;;  %vm3388_vm4 = vmmov %vm3385_vm2 }
 0xb0a   :  { %v2000_v51 = vsub.f32 %v3218_v47, %v1998_v16  ;;  %v1659_v32 = vpop.permute.xlu0 %1658  ;;  %v2003_v47 = vsel %vm3388_vm4, %v1997_v13, %v2001_v30 }
 0xb0b   :  { %v1676_v57 = vsel %vm3384_vm11, %v1675_v15, %v1659_v32  ;;  %vm2190_vm11 = vcmask 523264  }
 0xb0c   :  { %v2002_v59 = vsel %vm3385_vm2, %v1996_v17, %v2000_v51  ;;  %v2156_v51 = vrot.slane %v2927_v26, 1  ;;  %vm3397_vm2 = vmmov %vm3394_vm14 }
 0xb0d   :  { %2005 = vrot.lane.b32.xlu0 %v2002_v59, %s2440_s11 }
 0xb10   :  { %v1663_v55 = vpop.permute.xlu1 %1662 }
 0xb11   :  { %v1677_v43 = vsel %vm3386_vm12, %v1676_v57, %v1663_v55  ;;  %vm2199_vm12 = vmor %vm2198_vm3, %vm2195_vm6 }
 0xb12   :  { %v1667_v41 = vpop.permute.xlu0 %1666 }
 0xb13   :  { %v3278_v36 = vsel %vm3387_vm1, %v1677_v43, %v1667_v41  ;;  %vm3398_vm1 = vcmask 15360  }
 0xb14   :  { %vm3399_vm4 = vmmov %vm3398_vm1 }
 0xb15   :  { %2067 = vrot.lane.b32.xlu0 %v2003_v47, %s2440_s11 }
 0xb20   :  { %v1456_v3 = vpop.permute.xlu0 %1455 }
 0xb21   :  { %v1460_v50 = vmul.f32 %v2917_v20, %v1456_v3 }
 0xb23   :  { %v1468_v38 = vsel %vm3390_vm13, %v1460_v50, 0.0  ;;  %vm2225_vm13 = vcmask 1041409  }
 0xb24   :  { %v1469_v34 = vrot.slane %v1468_v38, 4 }
 0xb26   :  { %v1470_v60 = vadd.f32 %v1469_v34, %v1468_v38 }
 0xb28   :  { %v1471_v63 = vrot.slane %v1470_v60, 2 }
 0xb2a   :  { %v1472_v10 = vadd.f32 %v1471_v63, %v1470_v60 }
 0xb2c   :  { %v1473_v13 = vrot.slane %v1472_v10, 1 }
 0xb2e   :  { %v1474_v27 = vadd.f32 %v1473_v13, %v1472_v10 }
 0xb72   :  { %2128 = vrot.lane.b32.xlu2 %v2002_v59, %s2450_s4 }
 0xb7a   :  { %2130 = vrot.lane.b32.xlu2 %v2003_v47, %s2450_s4 }
 0xb7f   :  { %v2006_v22 = vpop.permute.xlu0 %2005 }
 0xb80   :  { %2008 = vxpose.xlu1.b32.start.end [1/1] (short) (narrow) %v2006_v22, 8 }
 0xb82   :  { %2152 = vrot.lane.b32.xlu2 %v2945_v54, %s2440_s11 }
 0xb87   :  { %v2068_v35 = vpop.permute.xlu0 %2067 }
 0xb88   :  { %2070 = vxpose.xlu0.b32.start.end [1/1] (short) (narrow) %v2068_v35, 8 }
 0xb8a   :  { %2160 = vrot.lane.b32.xlu2 %v2157_v28, %s2440_s11 }
 0xb92   :  { %2166 = vrot.lane.b32.xlu2 %v2164_v39, %s2440_s11 }
 0xb9a   :  { %2168 = vrot.lane.b32.xlu2 %v2165_v48, %s2440_s11 }
 0xba2   :  { %v1411_v46 = vpop.trf.xlu2 }
 0xba3   :  { %2290 = vmatmul.msk.f32.vlgmr.msra.gmra.mxu0 %vm3389_vm10, %v1411_v46  ;;  %vm2217_vm10 = vcmask 23552  }
 0xbcc   :  { %v2129_v14 = vpop.permute.xlu2 %2128 }
 0xbcd   :  { %v2134_v18 = vmul.f32 %v2927_v26, %v2129_v14 }
 0xbcf   :  { %v2136_v7 = vsel %vm3391_vm8, %v2134_v18, 0.0  ;;  %vm3400_vm8 = vcmask 48128  }
 0xbd0   :  { %v2137_v62 = vrot.slane %v2136_v7, 4 }
 0xbd2   :  { %v2138_v44 = vadd.f32 %v2137_v62, %v2136_v7 }
 0xbd4   :  { %v2139_v4 = vrot.slane %v2138_v44, 2  ;;  %v2131_v37 = vpop.permute.xlu2 %2130 }
 0xbd5   :  { %v2135_v8 = vmul.f32 %v2945_v54, %v2131_v37  ;;  %v1003_v54 = vsel %vm3393_vm0, %v3091_v1, %v3096_v31  ;;  %v1509_v1 = vsub.f32 %v3206_v25, %v3262_v42  ;;  %vm3402_vm0 = vmmov %vm3400_vm8 }
 0xbd6   :  { %v2140_v56 = vadd.f32 %v2139_v4, %v2138_v44  ;;  %v1004_v9 = vsel %vm3394_vm14, %v1003_v54, %v3107_v45  ;;  %vm2253_vm14 = vcmask 1046534  }
 0xbd7   :  { %v2143_v20 = vsel %vm3392_vm9, %v2135_v8, 0.0  ;;  %vm3401_vm9 = vmmov %vm3400_vm8 }
 0xbd8   :  { %v2141_v21 = vrot.slane %v2140_v56, 1  ;;  %v2144_v11 = vrot.slane %v2143_v20, 4 }
 0xbda   :  { %v2145_v52 = vadd.f32 %v2144_v11, %v2143_v20  ;;  %1670 = vrot.lane.b32.xlu1 %v1644_v19, %s2448_s19  ;;  %v2142_v17 = vadd.f32 %v2141_v21, %v2140_v56 }
 0xbdc   :  { %2178 = vrot.lane.b32.xlu2 %v2142_v17, %s2440_s11  ;;  %v2146_v16 = vrot.slane %v2145_v52, 2  ;;  %v2153_v31 = vpop.permute.xlu2 %2152 }
 0xbde   :  { %v2147_v61 = vadd.f32 %v2146_v16, %v2145_v52 }
 0xbe0   :  { %v2148_v15 = vrot.slane %v2147_v61, 1 }
 0xbe2   :  { %1505 = vrot.lane.b32.xlu1 %v1474_v27, %s2440_s11  ;;  %v2149_v32 = vadd.f32 %v2148_v15, %v2147_v61 }
 0xbe4   :  { %2187 = vrot.lane.b32.xlu2 %v1004_v9, %s2451_s6  ;;  %v2161_v29 = vpop.permute.xlu2 %2160 }
 0xbe5   :  { %v2173_v28 = vsel %vm820_vm15, %v2153_v31, %v2161_v29 }
 0xbea   :  { %2158 = vrot.lane.b32.xlu1 %v2156_v51, %s2440_s11 }
 0xbec   :  { %2180 = vrot.lane.b32.xlu2 %v2149_v32, %s2440_s11 }
 0xbf4   :  { %2203 = vrot.lane.b32.xlu2 %v2895_v33, %s2449_s3  ;;  %v2167_v33 = vpop.permute.xlu2 %2166 }
 0xbf6   :  { %2150 = vrot.lane.b32.xlu0 %v2927_v26, %s2440_s11 }
 0xbfc   :  { %2232 = vrot.lane.b32.xlu2 %v1509_v1, %s2449_s3  ;;  %v2169_v30 = vpop.permute.xlu2 %2168 }
 0xbfd   :  { %v2175_v39 = vsel %vm3398_vm1, %v2173_v28, %v2169_v30 }
 0xc20   :  { %v1450_v45 = vpop.f32.mrf.mxu0 }
 0xc21   :  { %2205 = vrot.lane.b32.xlu2 %v1450_v45, %s2449_s3 }
 0xc24   :  { %v2024_v57 = vpop.trf.xlu1 }
 0xc25   :  { %2296 = vmatmul.msk.f32.vlgmr.msrb.gmra.mxu0 %vm3395_vm7, %v2024_v57  ;;  %vm2256_vm7 = vcmask 71685  }
 0xc2c   :  { %v2086_v59 = vpop.trf.xlu0 }
 0xc2d   :  { %2298 = vmatmul.msk.f32.vlgmr.msra.gmra.mxu2 %vm3396_vm5, %v2086_v59  ;;  %vm3403_vm5 = vmmov %vm3402_vm0 }
 0xc36   :  { %v2179_v55 = vpop.permute.xlu2 %2178 }
 0xc3e   :  { %v2188_v26 = vpop.permute.xlu2 %2187 }
 0xc3f   :  { %v2191_v41 = vsel %vm2190_vm11, %v2953_v58, %v2188_v26 }
 0xc46   :  { %v2181_v35 = vpop.permute.xlu2 %2180 }
 0xc4c   :  { %v1671_v25 = vpop.permute.xlu1 %1670 }
 0xc4d   :  { %v1679_v42 = vsel %vm3397_vm2, %v3278_v36, %v1671_v25  ;;  %v2185_v36 = vsub.f32 %v2175_v39, %v2181_v35 }
 0xc4e   :  { %v2194_v43 = vrot.slane %v1679_v42, 6  ;;  %v2204_v14 = vpop.permute.xlu2 %2203 }
 0xc4f   :  { %v2218_v37 = vsel %vm2217_vm10, %v2874_v23, %v2204_v14 }
 0xc50   :  { %v2196_v47 = vsel %vm2195_vm6, %v2191_v41, %v2194_v43 }
 0xc51   :  { %2200 = vst.msk [vmem:[%s3364_s7] sm:$0xf] %vm2199_vm12, %v2196_v47 }
 0xc54   :  { %v1506_v3 = vpop.permute.xlu1 %1505 }
 0xc55   :  { %v1510_v22 = vsub.f32 %v3233_v40, %v1506_v3 }
 0xc56   :  { %v2233_v18 = vpop.permute.xlu2 %2232 }
 0xc57   :  { %2234 = vrot.lane.b32.xlu1 %v1510_v22, %s2449_s3  ;;  %v2246_v23 = vsel %vm2217_vm10, %v834_v53, %v2233_v18 }
 0xc5c   :  { %v2159_v46 = vpop.permute.xlu1 %2158 }
 0xc5f   :  { %2242 = vrot.lane.b32.xlu1 %v2185_v36, %s2452_s24 }
 0xc68   :  { %v2151_v58 = vpop.permute.xlu0 %2150 }
 0xc69   :  { %v2172_v38 = vsel %vm820_vm15, %v2151_v58, %v2159_v46  ;;  %vm2228_vm15 = vcmask 66560  }
 0xc6a   :  { %v2174_v40 = vsel %vm3399_vm4, %v2172_v38, %v2167_v33 }
 0xc6b   :  { %v2184_v34 = vsub.f32 %v2174_v40, %v2179_v55 }
 0xc7b   :  { %v2206_v7 = vpop.permute.xlu2 %2205 }
 0xc7c   :  { %v2219_v44 = vsel %vm2217_vm10, %v2888_v2, %v2206_v7 }
 0xca2   :  { %v2063_v48 = vpop.f32.mrf.mxu0 }
 0xca3   :  { %2211 = vrot.lane.b32.xlu2 %v2063_v48, %s2452_s24 }
 0xcb0   :  { %v2125_v50 = vpop.f32.mrf.mxu2 }
 0xcb1   :  { %2213 = vrot.lane.b32.xlu2 %v2125_v50, %s2452_s24 }
 0xcb9   :  { %2240 = vrot.lane.b32.xlu2 %v2184_v34, %s2452_s24 }
 0xcc9   :  { %v2235_v60 = vpop.permute.xlu1 %2234 }
 0xcca   :  { %v2247_v20 = vsel %vm2217_vm10, %v835_v6, %v2235_v60 }
 0xcd1   :  { %v2243_v8 = vpop.permute.xlu1 %2242 }
 0xcd2   :  { %v2249_v2 = vsel %vm3402_vm0, %v2247_v20, %v2243_v8 }
 0xcd3   :  { %v2252_v21 = vrot.slane %v2249_v2, 7 }
 0xcfd   :  { %v2212_v62 = vpop.permute.xlu2 %2211 }
 0xcfe   :  { %v2220_v56 = vsel %vm3401_vm9, %v2218_v37, %v2212_v62 }
 0xd0b   :  { %v2214_v63 = vpop.permute.xlu2 %2213 }
 0xd0c   :  { %v2221_v4 = vsel %vm3400_vm8, %v2219_v44, %v2214_v63 }
 0xd0d   :  { %v2224_v12 = vrot.slane %v2221_v4, 7 }
 0xd0f   :  { %v2226_v10 = vsel %vm2225_vm13, %v2224_v12, %v2220_v56 }
 0xd10   :  { %2229 = vst.msk [vmem:[%s3365_s8] sm:$0x3] %vm2228_vm15, %v2226_v10 }
 0xd13   :  { %v2241_v11 = vpop.permute.xlu2 %2240 }
 0xd14   :  { %v2248_v0 = vsel %vm3403_vm5, %v2246_v23, %v2241_v11 }
 0xd15   :  { %v2254_v5 = vsel %vm2253_vm14, %v2252_v21, %v2248_v0 }
 0xd16   :  { %2257 = vst.msk [vmem:[%s3366_s9 - $0x5] sm:$0x60] %vm2256_vm7, %v2254_v5 }

</bundles_post_ra>
